<compile_context>
chip_gen: v7x
topology: tpu7x:2x2x1
jax: 0.10.0
libtpu: 0.0.40
codegen_flags: <defaults>
</compile_context>

<pallas_src>
import jax
import jax.numpy as jnp
from jax.experimental import pallas as pl
from jax.experimental.pallas import tpu as pltpu

# ---- model hyper-parameters (compact YOLOv3-style detector) ----------------
NUM_ANCHORS = 3
NUM_CLASSES = 4
HEAD_CH = NUM_ANCHORS * (5 + NUM_CLASSES)      # 27 real head channels
LEAKY_SLOPE = 0.1

C_IN = 3          # RGB input channels
C1 = 16           # conv1 real output channels
C2 = 32           # conv2 / conv3 real output channels
CP = 128          # every channel dim zero-padded to 128 (lane-dense)

H1 = W1 = 16      # input spatial size == conv1 output size (3x3, s1, pad1)
H2 = W2 = 8       # conv2 (s2) / conv3 / head grid size
PAD = 1           # spatial zero padding of every 3x3 conv


# ----------------------------------------------------------------------------
# Fused Pallas kernel: whole forward pass for one image per grid step
# ----------------------------------------------------------------------------
def _leaky(v):
    # slope < 1  =>  max(v, slope*v) == LeakyReLU(v), one mul + one max
    return jnp.maximum(v, LEAKY_SLOPE * v)


def _conv3x3_acc(read_tap, w_ref, ho, wo):
    """3x3 conv as the sum of 9 shifted matmuls.

    read_tap(ky, kx) -> (ho, wo, CP) f32 slice of the spatially padded source.
    w_ref            -> (9, CP, CP) bf16 tap-major weights.
    Returns the f32 (ho*wo, CP) pre-activation.
    """
    acc = jnp.zeros((ho * wo, CP), jnp.float32)
    for t in range(9):
        ky, kx = divmod(t, 3)
        patch = read_tap(ky, kx).reshape(ho * wo, CP).astype(jnp.bfloat16)
        acc = acc + jnp.dot(patch, w_ref[t],
                            preferred_element_type=jnp.float32)
    return acc


def _yolo_fused_kernel(x_ref, w1_ref, b1_ref, w2_ref, b2_ref, w3_ref, b3_ref,
                       wh_ref, bh_ref, mask_ref, sel_ref,
                       o_ref, a1_ref, a2_ref):
    # Zero the padded activation scratch so the conv zero-pad border is exact.
    a1_ref[...] = jnp.zeros_like(a1_ref)
    a2_ref[...] = jnp.zeros_like(a2_ref)

    # ---- block 1: 3x3 s1 conv (real 3 -> 16) + LeakyReLU --------------------
    pre1 = _conv3x3_acc(lambda ky, kx: x_ref[0, ky:ky + H1, kx:kx + W1, :],
                        w1_ref, H1, W1)                       # (256, CP) f32
    a1 = _leaky(pre1 + b1_ref[...])
    a1_ref[PAD:PAD + H1, PAD:PAD + W1, :] = a1.reshape(H1, W1, CP)

    # ---- block 2: 3x3 s2 conv (real 16 -> 32) + LeakyReLU -------------------
    # stride 2 == stride-1 conv over the padded buffer followed by an
    # even-row/even-col selection, done as a tiny constant 0/1 matmul so all
    # ref accesses stay plain unstrided slices.
    pre2_full = _conv3x3_acc(lambda ky, kx: a1_ref[ky:ky + H1, kx:kx + W1, :],
                             w2_ref, H1, W1)                  # (256, CP)
    pre2 = jnp.dot(sel_ref[...], pre2_full,
                   preferred_element_type=jnp.float32)        # (64, CP)
    a2 = _leaky(pre2 + b2_ref[...])
    a2_ref[PAD:PAD + H2, PAD:PAD + W2, :] = a2.reshape(H2, W2, CP)

    # ---- block 3: 3x3 s1 conv (real 32 -> 32) + LeakyReLU -------------------
    pre3 = _conv3x3_acc(lambda ky, kx: a2_ref[ky:ky + H2, kx:kx + W2, :],
                        w3_ref, H2, W2)                       # (64, CP)
    a3 = _leaky(pre3 + b3_ref[...])

    # ---- detection head: 1x1 conv + selective sigmoid -----------------------
    # per-anchor channel order [tx, ty, tw, th, obj, c...]; sigmoid on
    # everything except tw/th (YOLOv3 convention).
    h = jnp.dot(a3.astype(jnp.bfloat16), wh_ref[...],
                preferred_element_type=jnp.float32) + bh_ref[...]
    o_ref[0] = jnp.where(mask_ref[...] != 0.0, jax.nn.sigmoid(h), h)


# ----------------------------------------------------------------------------
# Parameters (synthetic, BN folded) and wrapper
# ----------------------------------------------------------------------------
def init_params(key):
    """Deterministic synthetic weights laid out for the kernel: tap-major
    (ky*3+kx, Cin, Cout), channel dims zero-padded to CP, matmul weights bf16.
    """
    # TODO(synk): real PyTorch weights come as (Cout, Cin, kh, kw) and would
    #             need a (kh, kw, Cin, Cout) permutation before this padding.
    def conv_w(k, cin, cout):
        w = jax.random.normal(k, (9, cin, cout), jnp.float32) / jnp.sqrt(9.0 * cin)
        return jnp.pad(w, ((0, 0), (0, CP - cin), (0, CP - cout))).astype(jnp.bfloat16)

    def head_w(k, cin, cout):
        w = jax.random.normal(k, (cin, cout), jnp.float32) / jnp.sqrt(1.0 * cin)
        return jnp.pad(w, ((0, CP - cin), (0, CP - cout))).astype(jnp.bfloat16)

    ks = jax.random.split(key, 5)
    zeros_b = jnp.zeros((1, CP), jnp.float32)
    head_b = jnp.pad(jax.random.normal(ks[4], (1, HEAD_CH), jnp.float32) * 0.01,
                     ((0, 0), (0, CP - HEAD_CH)))
    single = jnp.array([1, 1, 0, 0, 1] + [1] * NUM_CLASSES, jnp.float32)
    mask = jnp.pad(jnp.tile(single, (NUM_ANCHORS,))[None, :],
                   ((0, 0), (0, CP - HEAD_CH)))
    return {
        "w1": conv_w(ks[0], C_IN, C1), "b1": zeros_b,
        "w2": conv_w(ks[1], C1, C2),   "b2": zeros_b,
        "w3": conv_w(ks[2], C2, C2),   "b3": zeros_b,
        "wh": head_w(ks[3], C2, HEAD_CH), "bh": head_b,
        "mask": mask,
    }


def _stride2_select():
    """(H2*W2, H1*W1) 0/1 matrix picking even-row/even-col positions."""
    o = jnp.arange(H2 * W2)
    src = 2 * W1 * (o // W2) + 2 * (o % W2)
    return (jnp.arange(H1 * W1)[None, :] == src[:, None]).astype(jnp.float32)


@jax.jit
def object_detection_forward(params, x_nchw):
    """x_nchw: [N, 3, H, W] (PyTorch layout).
    Returns the raw YOLO grid (N, NUM_ANCHORS, H/2, W/2, 5 + NUM_CLASSES)."""
    N = x_nchw.shape[0]
    # Tiny input glue on a (N,3,16,16) tensor: NCHW->NHWC, spatial pad for the
    # 3x3 convs, channel pad to CP so everything in-kernel is lane-dense.
    x = jnp.transpose(x_nchw, (0, 2, 3, 1)).astype(jnp.float32)
    x = jnp.pad(x, ((0, 0), (PAD, PAD), (PAD, PAD), (0, CP - C_IN)))
    sel = _stride2_select()

    y = pl.pallas_call(
        _yolo_fused_kernel,
        out_shape=jax.ShapeDtypeStruct((N, H2 * W2, CP), jnp.float32),
        grid=(N,),
        in_specs=[
            pl.BlockSpec((1, H1 + 2 * PAD, W1 + 2 * PAD, CP),
                         lambda n: (n, 0, 0, 0)),                 # padded input
            pl.BlockSpec((9, CP, CP), lambda n: (0, 0, 0)),       # w1
            pl.BlockSpec((1, CP), lambda n: (0, 0)),              # b1
            pl.BlockSpec((9, CP, CP), lambda n: (0, 0, 0)),       # w2
            pl.BlockSpec((1, CP), lambda n: (0, 0)),              # b2
            pl.BlockSpec((9, CP, CP), lambda n: (0, 0, 0)),       # w3
            pl.BlockSpec((1, CP), lambda n: (0, 0)),              # b3
            pl.BlockSpec((CP, CP), lambda n: (0, 0)),             # head weight
            pl.BlockSpec((1, CP), lambda n: (0, 0)),              # head bias
            pl.BlockSpec((1, CP), lambda n: (0, 0)),              # sigmoid mask
            pl.BlockSpec((H2 * W2, H1 * W1), lambda n: (0, 0)),   # stride-2 sel
        ],
        out_specs=pl.BlockSpec((1, H2 * W2, CP), lambda n: (n, 0, 0)),
        scratch_shapes=[
            pltpu.VMEM((H1 + 2 * PAD, W1 + 2 * PAD, CP), jnp.float32),  # a1 pad
            pltpu.VMEM((H2 + 2 * PAD, W2 + 2 * PAD, CP), jnp.float32),  # a2 pad
        ],
        compiler_params=pltpu.CompilerParams(
            dimension_semantics=("parallel",)),
    )(x, params["w1"], params["b1"], params["w2"], params["b2"],
      params["w3"], params["b3"], params["wh"], params["bh"],
      params["mask"], sel)

    # lane-dense (N, 64, 128) kernel output -> (N, A, Ho, Wo, 5+C) raw preds
    y = y[:, :, :HEAD_CH].reshape(N, H2, W2, NUM_ANCHORS, 5 + NUM_CLASSES)
    return jnp.transpose(y, (0, 3, 1, 2, 4))


if __name__ == "__main__":
    key = jax.random.PRNGKey(0)
    k_param, k_data = jax.random.split(key)
    params = init_params(k_param)
    x = jax.random.normal(k_data, (2, 3, 16, 16), jnp.float32)   # NCHW input

    out = object_detection_forward(params, x)
    jax.block_until_ready(out)

    assert out.shape == (2, NUM_ANCHORS, 8, 8, 5 + NUM_CLASSES)
    assert jnp.isfinite(out).all()
    print("KERNEL_OK")
</pallas_src>

<mosaic_0001>
module attributes {stable_mosaic.version = 11 : i64} {
  func.func @_yolo_fused_kernel(%arg0: i32, %arg1: memref<1x18x18x128xf32, #tpu.memory_space<vmem>>, %arg2: memref<9x128x128xbf16, #tpu.memory_space<vmem>>, %arg3: memref<1x128xf32, #tpu.memory_space<vmem>>, %arg4: memref<9x128x128xbf16, #tpu.memory_space<vmem>>, %arg5: memref<1x128xf32, #tpu.memory_space<vmem>>, %arg6: memref<9x128x128xbf16, #tpu.memory_space<vmem>>, %arg7: memref<1x128xf32, #tpu.memory_space<vmem>>, %arg8: memref<128x128xbf16, #tpu.memory_space<vmem>>, %arg9: memref<1x128xf32, #tpu.memory_space<vmem>>, %arg10: memref<1x128xf32, #tpu.memory_space<vmem>>, %arg11: memref<64x256xf32, #tpu.memory_space<vmem>>, %arg12: memref<1x64x128xf32, #tpu.memory_space<vmem>>, %arg13: memref<18x18x128xf32, #tpu.memory_space<vmem>>, %arg14: memref<10x10x128xf32, #tpu.memory_space<vmem>>) attributes {dimension_semantics = [#tpu.dimension_semantics<parallel>], iteration_bounds = array<i64: 2>, scalar_prefetch = 0 : i64, scratch_operands = 2 : i64, tpu.core_type = #tpu.core_type<tc>, window_params = [{transform_indices = @transform_0, window_bounds = array<i64: 1, 18, 18, 128>}, {pipeline_mode = #tpu.pipeline_mode<synchronous>, transform_indices = @transform_1, window_bounds = array<i64: 9, 128, 128>}, {pipeline_mode = #tpu.pipeline_mode<synchronous>, transform_indices = @transform_2, window_bounds = array<i64: 1, 128>}, {pipeline_mode = #tpu.pipeline_mode<synchronous>, transform_indices = @transform_3, window_bounds = array<i64: 9, 128, 128>}, {pipeline_mode = #tpu.pipeline_mode<synchronous>, transform_indices = @transform_4, window_bounds = array<i64: 1, 128>}, {pipeline_mode = #tpu.pipeline_mode<synchronous>, transform_indices = @transform_5, window_bounds = array<i64: 9, 128, 128>}, {pipeline_mode = #tpu.pipeline_mode<synchronous>, transform_indices = @transform_6, window_bounds = array<i64: 1, 128>}, {pipeline_mode = #tpu.pipeline_mode<synchronous>, transform_indices = @transform_7, window_bounds = array<i64: 128, 128>}, {pipeline_mode = #tpu.pipeline_mode<synchronous>, transform_indices = @transform_8, window_bounds = array<i64: 1, 128>}, {pipeline_mode = #tpu.pipeline_mode<synchronous>, transform_indices = @transform_9, window_bounds = array<i64: 1, 128>}, {pipeline_mode = #tpu.pipeline_mode<synchronous>, transform_indices = @transform_10, window_bounds = array<i64: 64, 256>}, {transform_indices = @transform_11, window_bounds = array<i64: 1, 64, 128>}]} {
    %cst = arith.constant 0.000000e+00 : f32
    %0 = vector.broadcast %cst : f32 to vector<18x18x128xf32>
    %c0 = arith.constant 0 : index
    %c0_0 = arith.constant 0 : index
    %c0_1 = arith.constant 0 : index
    %1 = vector.load %arg13[%c0, %c0_0, %c0_1] : memref<18x18x128xf32, #tpu.memory_space<vmem>>, vector<18x18x128xf32>
    tpu.vector_store %arg13[%c0, %c0_0, %c0_1], %0 {strides = array<i32>} : memref<18x18x128xf32, #tpu.memory_space<vmem>>, vector<18x18x128xf32>,
    %cst_2 = arith.constant 0.000000e+00 : f32
    %2 = vector.broadcast %cst_2 : f32 to vector<10x10x128xf32>
    %c0_3 = arith.constant 0 : index
    %c0_4 = arith.constant 0 : index
    %c0_5 = arith.constant 0 : index
    %3 = vector.load %arg14[%c0_3, %c0_4, %c0_5] : memref<10x10x128xf32, #tpu.memory_space<vmem>>, vector<10x10x128xf32>
    tpu.vector_store %arg14[%c0_3, %c0_4, %c0_5], %2 {strides = array<i32>} : memref<10x10x128xf32, #tpu.memory_space<vmem>>, vector<10x10x128xf32>,
    %cst_6 = arith.constant 0.000000e+00 : f32
    %4 = vector.broadcast %cst_6 : f32 to vector<256x128xf32>
    %c0_7 = arith.constant 0 : index
    %c0_8 = arith.constant 0 : index
    %c0_9 = arith.constant 0 : index
    %c0_10 = arith.constant 0 : index
    %5 = vector.load %arg1[%c0_7, %c0_8, %c0_9, %c0_10] : memref<1x18x18x128xf32, #tpu.memory_space<vmem>>, vector<1x16x16x128xf32>
    %6 = vector.shape_cast %5 : vector<1x16x16x128xf32> to vector<16x16x128xf32>
    %7 = vector.shape_cast %6 : vector<16x16x128xf32> to vector<256x128xf32>
    %8 = arith.truncf %7 : vector<256x128xf32> to vector<256x128xbf16>
    %c0_11 = arith.constant 0 : index
    %c0_12 = arith.constant 0 : index
    %c0_13 = arith.constant 0 : index
    %9 = vector.load %arg2[%c0_11, %c0_12, %c0_13] : memref<9x128x128xbf16, #tpu.memory_space<vmem>>, vector<1x128x128xbf16>
    %10 = vector.shape_cast %9 : vector<1x128x128xbf16> to vector<128x128xbf16>
    %cst_14 = arith.constant dense<0.000000e+00> : vector<256x128xf32>
    %11 = tpu.matmul %8, %10, %cst_14 {dimension_numbers = #tpu.dot_dimension_numbers<[1], [0], [0], [1], [0, 0, 1, 1], [], []>} : vector<256x128xbf16>, vector<128x128xbf16>, vector<256x128xf32> -> vector<256x128xf32>
    %12 = arith.addf %4, %11 : vector<256x128xf32>
    %c0_15 = arith.constant 0 : index
    %c0_16 = arith.constant 0 : index
    %c1 = arith.constant 1 : index
    %c0_17 = arith.constant 0 : index
    %13 = vector.load %arg1[%c0_15, %c0_16, %c1, %c0_17] : memref<1x18x18x128xf32, #tpu.memory_space<vmem>>, vector<1x16x16x128xf32>
    %14 = vector.shape_cast %13 : vector<1x16x16x128xf32> to vector<16x16x128xf32>
    %15 = vector.shape_cast %14 : vector<16x16x128xf32> to vector<256x128xf32>
    %16 = arith.truncf %15 : vector<256x128xf32> to vector<256x128xbf16>
    %c1_18 = arith.constant 1 : index
    %c0_19 = arith.constant 0 : index
    %c0_20 = arith.constant 0 : index
    %17 = vector.load %arg2[%c1_18, %c0_19, %c0_20] : memref<9x128x128xbf16, #tpu.memory_space<vmem>>, vector<1x128x128xbf16>
    %18 = vector.shape_cast %17 : vector<1x128x128xbf16> to vector<128x128xbf16>
    %cst_21 = arith.constant dense<0.000000e+00> : vector<256x128xf32>
    %19 = tpu.matmul %16, %18, %cst_21 {dimension_numbers = #tpu.dot_dimension_numbers<[1], [0], [0], [1], [0, 0, 1, 1], [], []>} : vector<256x128xbf16>, vector<128x128xbf16>, vector<256x128xf32> -> vector<256x128xf32>
    %20 = arith.addf %12, %19 : vector<256x128xf32>
    %c0_22 = arith.constant 0 : index
    %c0_23 = arith.constant 0 : index
    %c2 = arith.constant 2 : index
    %c0_24 = arith.constant 0 : index
    %21 = vector.load %arg1[%c0_22, %c0_23, %c2, %c0_24] : memref<1x18x18x128xf32, #tpu.memory_space<vmem>>, vector<1x16x16x128xf32>
    %22 = vector.shape_cast %21 : vector<1x16x16x128xf32> to vector<16x16x128xf32>
    %23 = vector.shape_cast %22 : vector<16x16x128xf32> to vector<256x128xf32>
    %24 = arith.truncf %23 : vector<256x128xf32> to vector<256x128xbf16>
    %c2_25 = arith.constant 2 : index
    %c0_26 = arith.constant 0 : index
    %c0_27 = arith.constant 0 : index
    %25 = vector.load %arg2[%c2_25, %c0_26, %c0_27] : memref<9x128x128xbf16, #tpu.memory_space<vmem>>, vector<1x128x128xbf16>
    %26 = vector.shape_cast %25 : vector<1x128x128xbf16> to vector<128x128xbf16>
    %cst_28 = arith.constant dense<0.000000e+00> : vector<256x128xf32>
    %27 = tpu.matmul %24, %26, %cst_28 {dimension_numbers = #tpu.dot_dimension_numbers<[1], [0], [0], [1], [0, 0, 1, 1], [], []>} : vector<256x128xbf16>, vector<128x128xbf16>, vector<256x128xf32> -> vector<256x128xf32>
    %28 = arith.addf %20, %27 : vector<256x128xf32>
    %c0_29 = arith.constant 0 : index
    %c1_30 = arith.constant 1 : index
    %c0_31 = arith.constant 0 : index
    %c0_32 = arith.constant 0 : index
    %29 = vector.load %arg1[%c0_29, %c1_30, %c0_31, %c0_32] : memref<1x18x18x128xf32, #tpu.memory_space<vmem>>, vector<1x16x16x128xf32>
    %30 = vector.shape_cast %29 : vector<1x16x16x128xf32> to vector<16x16x128xf32>
    %31 = vector.shape_cast %30 : vector<16x16x128xf32> to vector<256x128xf32>
    %32 = arith.truncf %31 : vector<256x128xf32> to vector<256x128xbf16>
    %c3 = arith.constant 3 : index
    %c0_33 = arith.constant 0 : index
    %c0_34 = arith.constant 0 : index
    %33 = vector.load %arg2[%c3, %c0_33, %c0_34] : memref<9x128x128xbf16, #tpu.memory_space<vmem>>, vector<1x128x128xbf16>
    %34 = vector.shape_cast %33 : vector<1x128x128xbf16> to vector<128x128xbf16>
    %cst_35 = arith.constant dense<0.000000e+00> : vector<256x128xf32>
    %35 = tpu.matmul %32, %34, %cst_35 {dimension_numbers = #tpu.dot_dimension_numbers<[1], [0], [0], [1], [0, 0, 1, 1], [], []>} : vector<256x128xbf16>, vector<128x128xbf16>, vector<256x128xf32> -> vector<256x128xf32>
    %36 = arith.addf %28, %35 : vector<256x128xf32>
    %c0_36 = arith.constant 0 : index
    %c1_37 = arith.constant 1 : index
    %c1_38 = arith.constant 1 : index
    %c0_39 = arith.constant 0 : index
    %37 = vector.load %arg1[%c0_36, %c1_37, %c1_38, %c0_39] : memref<1x18x18x128xf32, #tpu.memory_space<vmem>>, vector<1x16x16x128xf32>
    %38 = vector.shape_cast %37 : vector<1x16x16x128xf32> to vector<16x16x128xf32>
    %39 = vector.shape_cast %38 : vector<16x16x128xf32> to vector<256x128xf32>
    %40 = arith.truncf %39 : vector<256x128xf32> to vector<256x128xbf16>
    %c4 = arith.constant 4 : index
    %c0_40 = arith.constant 0 : index
    %c0_41 = arith.constant 0 : index
    %41 = vector.load %arg2[%c4, %c0_40, %c0_41] : memref<9x128x128xbf16, #tpu.memory_space<vmem>>, vector<1x128x128xbf16>
    %42 = vector.shape_cast %41 : vector<1x128x128xbf16> to vector<128x128xbf16>
    %cst_42 = arith.constant dense<0.000000e+00> : vector<256x128xf32>
    %43 = tpu.matmul %40, %42, %cst_42 {dimension_numbers = #tpu.dot_dimension_numbers<[1], [0], [0], [1], [0, 0, 1, 1], [], []>} : vector<256x128xbf16>, vector<128x128xbf16>, vector<256x128xf32> -> vector<256x128xf32>
    %44 = arith.addf %36, %43 : vector<256x128xf32>
    %c0_43 = arith.constant 0 : index
    %c1_44 = arith.constant 1 : index
    %c2_45 = arith.constant 2 : index
    %c0_46 = arith.constant 0 : index
    %45 = vector.load %arg1[%c0_43, %c1_44, %c2_45, %c0_46] : memref<1x18x18x128xf32, #tpu.memory_space<vmem>>, vector<1x16x16x128xf32>
    %46 = vector.shape_cast %45 : vector<1x16x16x128xf32> to vector<16x16x128xf32>
    %47 = vector.shape_cast %46 : vector<16x16x128xf32> to vector<256x128xf32>
    %48 = arith.truncf %47 : vector<256x128xf32> to vector<256x128xbf16>
    %c5 = arith.constant 5 : index
    %c0_47 = arith.constant 0 : index
    %c0_48 = arith.constant 0 : index
    %49 = vector.load %arg2[%c5, %c0_47, %c0_48] : memref<9x128x128xbf16, #tpu.memory_space<vmem>>, vector<1x128x128xbf16>
    %50 = vector.shape_cast %49 : vector<1x128x128xbf16> to vector<128x128xbf16>
    %cst_49 = arith.constant dense<0.000000e+00> : vector<256x128xf32>
    %51 = tpu.matmul %48, %50, %cst_49 {dimension_numbers = #tpu.dot_dimension_numbers<[1], [0], [0], [1], [0, 0, 1, 1], [], []>} : vector<256x128xbf16>, vector<128x128xbf16>, vector<256x128xf32> -> vector<256x128xf32>
    %52 = arith.addf %44, %51 : vector<256x128xf32>
    %c0_50 = arith.constant 0 : index
    %c2_51 = arith.constant 2 : index
    %c0_52 = arith.constant 0 : index
    %c0_53 = arith.constant 0 : index
    %53 = vector.load %arg1[%c0_50, %c2_51, %c0_52, %c0_53] : memref<1x18x18x128xf32, #tpu.memory_space<vmem>>, vector<1x16x16x128xf32>
    %54 = vector.shape_cast %53 : vector<1x16x16x128xf32> to vector<16x16x128xf32>
    %55 = vector.shape_cast %54 : vector<16x16x128xf32> to vector<256x128xf32>
    %56 = arith.truncf %55 : vector<256x128xf32> to vector<256x128xbf16>
    %c6 = arith.constant 6 : index
    %c0_54 = arith.constant 0 : index
    %c0_55 = arith.constant 0 : index
    %57 = vector.load %arg2[%c6, %c0_54, %c0_55] : memref<9x128x128xbf16, #tpu.memory_space<vmem>>, vector<1x128x128xbf16>
    %58 = vector.shape_cast %57 : vector<1x128x128xbf16> to vector<128x128xbf16>
    %cst_56 = arith.constant dense<0.000000e+00> : vector<256x128xf32>
    %59 = tpu.matmul %56, %58, %cst_56 {dimension_numbers = #tpu.dot_dimension_numbers<[1], [0], [0], [1], [0, 0, 1, 1], [], []>} : vector<256x128xbf16>, vector<128x128xbf16>, vector<256x128xf32> -> vector<256x128xf32>
    %60 = arith.addf %52, %59 : vector<256x128xf32>
    %c0_57 = arith.constant 0 : index
    %c2_58 = arith.constant 2 : index
    %c1_59 = arith.constant 1 : index
    %c0_60 = arith.constant 0 : index
    %61 = vector.load %arg1[%c0_57, %c2_58, %c1_59, %c0_60] : memref<1x18x18x128xf32, #tpu.memory_space<vmem>>, vector<1x16x16x128xf32>
    %62 = vector.shape_cast %61 : vector<1x16x16x128xf32> to vector<16x16x128xf32>
    %63 = vector.shape_cast %62 : vector<16x16x128xf32> to vector<256x128xf32>
    %64 = arith.truncf %63 : vector<256x128xf32> to vector<256x128xbf16>
    %c7 = arith.constant 7 : index
    %c0_61 = arith.constant 0 : index
    %c0_62 = arith.constant 0 : index
    %65 = vector.load %arg2[%c7, %c0_61, %c0_62] : memref<9x128x128xbf16, #tpu.memory_space<vmem>>, vector<1x128x128xbf16>
    %66 = vector.shape_cast %65 : vector<1x128x128xbf16> to vector<128x128xbf16>
    %cst_63 = arith.constant dense<0.000000e+00> : vector<256x128xf32>
    %67 = tpu.matmul %64, %66, %cst_63 {dimension_numbers = #tpu.dot_dimension_numbers<[1], [0], [0], [1], [0, 0, 1, 1], [], []>} : vector<256x128xbf16>, vector<128x128xbf16>, vector<256x128xf32> -> vector<256x128xf32>
    %68 = arith.addf %60, %67 : vector<256x128xf32>
    %c0_64 = arith.constant 0 : index
    %c2_65 = arith.constant 2 : index
    %c2_66 = arith.constant 2 : index
    %c0_67 = arith.constant 0 : index
    %69 = vector.load %arg1[%c0_64, %c2_65, %c2_66, %c0_67] : memref<1x18x18x128xf32, #tpu.memory_space<vmem>>, vector<1x16x16x128xf32>
    %70 = vector.shape_cast %69 : vector<1x16x16x128xf32> to vector<16x16x128xf32>
    %71 = vector.shape_cast %70 : vector<16x16x128xf32> to vector<256x128xf32>
    %72 = arith.truncf %71 : vector<256x128xf32> to vector<256x128xbf16>
    %c8 = arith.constant 8 : index
    %c0_68 = arith.constant 0 : index
    %c0_69 = arith.constant 0 : index
    %73 = vector.load %arg2[%c8, %c0_68, %c0_69] : memref<9x128x128xbf16, #tpu.memory_space<vmem>>, vector<1x128x128xbf16>
    %74 = vector.shape_cast %73 : vector<1x128x128xbf16> to vector<128x128xbf16>
    %cst_70 = arith.constant dense<0.000000e+00> : vector<256x128xf32>
    %75 = tpu.matmul %72, %74, %cst_70 {dimension_numbers = #tpu.dot_dimension_numbers<[1], [0], [0], [1], [0, 0, 1, 1], [], []>} : vector<256x128xbf16>, vector<128x128xbf16>, vector<256x128xf32> -> vector<256x128xf32>
    %76 = arith.addf %68, %75 : vector<256x128xf32>
    %c0_71 = arith.constant 0 : index
    %c0_72 = arith.constant 0 : index
    %77 = vector.load %arg3[%c0_71, %c0_72] : memref<1x128xf32, #tpu.memory_space<vmem>>, vector<1x128xf32>
    %78 = vector.broadcast %77 : vector<1x128xf32> to vector<256x128xf32>
    %79 = arith.addf %76, %78 : vector<256x128xf32>
    %cst_73 = arith.constant 1.000000e-01 : f32
    %80 = vector.broadcast %cst_73 : f32 to vector<256x128xf32>
    %81 = arith.mulf %80, %79 : vector<256x128xf32>
    %82 = arith.maximumf %79, %81 : vector<256x128xf32>
    %83 = vector.shape_cast %82 : vector<256x128xf32> to vector<16x16x128xf32>
    %c1_74 = arith.constant 1 : index
    %c1_75 = arith.constant 1 : index
    %c0_76 = arith.constant 0 : index
    %84 = vector.load %arg13[%c1_74, %c1_75, %c0_76] : memref<18x18x128xf32, #tpu.memory_space<vmem>>, vector<16x16x128xf32>
    tpu.vector_store %arg13[%c1_74, %c1_75, %c0_76], %83 {strides = array<i32>} : memref<18x18x128xf32, #tpu.memory_space<vmem>>, vector<16x16x128xf32>,
    %cst_77 = arith.constant 0.000000e+00 : f32
    %85 = vector.broadcast %cst_77 : f32 to vector<256x128xf32>
    %c0_78 = arith.constant 0 : index
    %c0_79 = arith.constant 0 : index
    %c0_80 = arith.constant 0 : index
    %86 = vector.load %arg13[%c0_78, %c0_79, %c0_80] : memref<18x18x128xf32, #tpu.memory_space<vmem>>, vector<16x16x128xf32>
    %87 = vector.shape_cast %86 : vector<16x16x128xf32> to vector<256x128xf32>
    %88 = arith.truncf %87 : vector<256x128xf32> to vector<256x128xbf16>
    %c0_81 = arith.constant 0 : index
    %c0_82 = arith.constant 0 : index
    %c0_83 = arith.constant 0 : index
    %89 = vector.load %arg4[%c0_81, %c0_82, %c0_83] : memref<9x128x128xbf16, #tpu.memory_space<vmem>>, vector<1x128x128xbf16>
    %90 = vector.shape_cast %89 : vector<1x128x128xbf16> to vector<128x128xbf16>
    %cst_84 = arith.constant dense<0.000000e+00> : vector<256x128xf32>
    %91 = tpu.matmul %88, %90, %cst_84 {dimension_numbers = #tpu.dot_dimension_numbers<[1], [0], [0], [1], [0, 0, 1, 1], [], []>} : vector<256x128xbf16>, vector<128x128xbf16>, vector<256x128xf32> -> vector<256x128xf32>
    %92 = arith.addf %85, %91 : vector<256x128xf32>
    %c0_85 = arith.constant 0 : index
    %c1_86 = arith.constant 1 : index
    %c0_87 = arith.constant 0 : index
    %93 = vector.load %arg13[%c0_85, %c1_86, %c0_87] : memref<18x18x128xf32, #tpu.memory_space<vmem>>, vector<16x16x128xf32>
    %94 = vector.shape_cast %93 : vector<16x16x128xf32> to vector<256x128xf32>
    %95 = arith.truncf %94 : vector<256x128xf32> to vector<256x128xbf16>
    %c1_88 = arith.constant 1 : index
    %c0_89 = arith.constant 0 : index
    %c0_90 = arith.constant 0 : index
    %96 = vector.load %arg4[%c1_88, %c0_89, %c0_90] : memref<9x128x128xbf16, #tpu.memory_space<vmem>>, vector<1x128x128xbf16>
    %97 = vector.shape_cast %96 : vector<1x128x128xbf16> to vector<128x128xbf16>
    %cst_91 = arith.constant dense<0.000000e+00> : vector<256x128xf32>
    %98 = tpu.matmul %95, %97, %cst_91 {dimension_numbers = #tpu.dot_dimension_numbers<[1], [0], [0], [1], [0, 0, 1, 1], [], []>} : vector<256x128xbf16>, vector<128x128xbf16>, vector<256x128xf32> -> vector<256x128xf32>
    %99 = arith.addf %92, %98 : vector<256x128xf32>
    %c0_92 = arith.constant 0 : index
    %c2_93 = arith.constant 2 : index
    %c0_94 = arith.constant 0 : index
    %100 = vector.load %arg13[%c0_92, %c2_93, %c0_94] : memref<18x18x128xf32, #tpu.memory_space<vmem>>, vector<16x16x128xf32>
    %101 = vector.shape_cast %100 : vector<16x16x128xf32> to vector<256x128xf32>
    %102 = arith.truncf %101 : vector<256x128xf32> to vector<256x128xbf16>
    %c2_95 = arith.constant 2 : index
    %c0_96 = arith.constant 0 : index
    %c0_97 = arith.constant 0 : index
    %103 = vector.load %arg4[%c2_95, %c0_96, %c0_97] : memref<9x128x128xbf16, #tpu.memory_space<vmem>>, vector<1x128x128xbf16>
    %104 = vector.shape_cast %103 : vector<1x128x128xbf16> to vector<128x128xbf16>
    %cst_98 = arith.constant dense<0.000000e+00> : vector<256x128xf32>
    %105 = tpu.matmul %102, %104, %cst_98 {dimension_numbers = #tpu.dot_dimension_numbers<[1], [0], [0], [1], [0, 0, 1, 1], [], []>} : vector<256x128xbf16>, vector<128x128xbf16>, vector<256x128xf32> -> vector<256x128xf32>
    %106 = arith.addf %99, %105 : vector<256x128xf32>
    %c1_99 = arith.constant 1 : index
    %c0_100 = arith.constant 0 : index
    %c0_101 = arith.constant 0 : index
    %107 = vector.load %arg13[%c1_99, %c0_100, %c0_101] : memref<18x18x128xf32, #tpu.memory_space<vmem>>, vector<16x16x128xf32>
    %108 = vector.shape_cast %107 : vector<16x16x128xf32> to vector<256x128xf32>
    %109 = arith.truncf %108 : vector<256x128xf32> to vector<256x128xbf16>
    %c3_102 = arith.constant 3 : index
    %c0_103 = arith.constant 0 : index
    %c0_104 = arith.constant 0 : index
    %110 = vector.load %arg4[%c3_102, %c0_103, %c0_104] : memref<9x128x128xbf16, #tpu.memory_space<vmem>>, vector<1x128x128xbf16>
    %111 = vector.shape_cast %110 : vector<1x128x128xbf16> to vector<128x128xbf16>
    %cst_105 = arith.constant dense<0.000000e+00> : vector<256x128xf32>
    %112 = tpu.matmul %109, %111, %cst_105 {dimension_numbers = #tpu.dot_dimension_numbers<[1], [0], [0], [1], [0, 0, 1, 1], [], []>} : vector<256x128xbf16>, vector<128x128xbf16>, vector<256x128xf32> -> vector<256x128xf32>
    %113 = arith.addf %106, %112 : vector<256x128xf32>
    %c1_106 = arith.constant 1 : index
    %c1_107 = arith.constant 1 : index
    %c0_108 = arith.constant 0 : index
    %114 = vector.load %arg13[%c1_106, %c1_107, %c0_108] : memref<18x18x128xf32, #tpu.memory_space<vmem>>, vector<16x16x128xf32>
    %115 = vector.shape_cast %114 : vector<16x16x128xf32> to vector<256x128xf32>
    %116 = arith.truncf %115 : vector<256x128xf32> to vector<256x128xbf16>
    %c4_109 = arith.constant 4 : index
    %c0_110 = arith.constant 0 : index
    %c0_111 = arith.constant 0 : index
    %117 = vector.load %arg4[%c4_109, %c0_110, %c0_111] : memref<9x128x128xbf16, #tpu.memory_space<vmem>>, vector<1x128x128xbf16>
    %118 = vector.shape_cast %117 : vector<1x128x128xbf16> to vector<128x128xbf16>
    %cst_112 = arith.constant dense<0.000000e+00> : vector<256x128xf32>
    %119 = tpu.matmul %116, %118, %cst_112 {dimension_numbers = #tpu.dot_dimension_numbers<[1], [0], [0], [1], [0, 0, 1, 1], [], []>} : vector<256x128xbf16>, vector<128x128xbf16>, vector<256x128xf32> -> vector<256x128xf32>
    %120 = arith.addf %113, %119 : vector<256x128xf32>
    %c1_113 = arith.constant 1 : index
    %c2_114 = arith.constant 2 : index
    %c0_115 = arith.constant 0 : index
    %121 = vector.load %arg13[%c1_113, %c2_114, %c0_115] : memref<18x18x128xf32, #tpu.memory_space<vmem>>, vector<16x16x128xf32>
    %122 = vector.shape_cast %121 : vector<16x16x128xf32> to vector<256x128xf32>
    %123 = arith.truncf %122 : vector<256x128xf32> to vector<256x128xbf16>
    %c5_116 = arith.constant 5 : index
    %c0_117 = arith.constant 0 : index
    %c0_118 = arith.constant 0 : index
    %124 = vector.load %arg4[%c5_116, %c0_117, %c0_118] : memref<9x128x128xbf16, #tpu.memory_space<vmem>>, vector<1x128x128xbf16>
    %125 = vector.shape_cast %124 : vector<1x128x128xbf16> to vector<128x128xbf16>
    %cst_119 = arith.constant dense<0.000000e+00> : vector<256x128xf32>
    %126 = tpu.matmul %123, %125, %cst_119 {dimension_numbers = #tpu.dot_dimension_numbers<[1], [0], [0], [1], [0, 0, 1, 1], [], []>} : vector<256x128xbf16>, vector<128x128xbf16>, vector<256x128xf32> -> vector<256x128xf32>
    %127 = arith.addf %120, %126 : vector<256x128xf32>
    %c2_120 = arith.constant 2 : index
    %c0_121 = arith.constant 0 : index
    %c0_122 = arith.constant 0 : index
    %128 = vector.load %arg13[%c2_120, %c0_121, %c0_122] : memref<18x18x128xf32, #tpu.memory_space<vmem>>, vector<16x16x128xf32>
    %129 = vector.shape_cast %128 : vector<16x16x128xf32> to vector<256x128xf32>
    %130 = arith.truncf %129 : vector<256x128xf32> to vector<256x128xbf16>
    %c6_123 = arith.constant 6 : index
    %c0_124 = arith.constant 0 : index
    %c0_125 = arith.constant 0 : index
    %131 = vector.load %arg4[%c6_123, %c0_124, %c0_125] : memref<9x128x128xbf16, #tpu.memory_space<vmem>>, vector<1x128x128xbf16>
    %132 = vector.shape_cast %131 : vector<1x128x128xbf16> to vector<128x128xbf16>
    %cst_126 = arith.constant dense<0.000000e+00> : vector<256x128xf32>
    %133 = tpu.matmul %130, %132, %cst_126 {dimension_numbers = #tpu.dot_dimension_numbers<[1], [0], [0], [1], [0, 0, 1, 1], [], []>} : vector<256x128xbf16>, vector<128x128xbf16>, vector<256x128xf32> -> vector<256x128xf32>
    %134 = arith.addf %127, %133 : vector<256x128xf32>
    %c2_127 = arith.constant 2 : index
    %c1_128 = arith.constant 1 : index
    %c0_129 = arith.constant 0 : index
    %135 = vector.load %arg13[%c2_127, %c1_128, %c0_129] : memref<18x18x128xf32, #tpu.memory_space<vmem>>, vector<16x16x128xf32>
    %136 = vector.shape_cast %135 : vector<16x16x128xf32> to vector<256x128xf32>
    %137 = arith.truncf %136 : vector<256x128xf32> to vector<256x128xbf16>
    %c7_130 = arith.constant 7 : index
    %c0_131 = arith.constant 0 : index
    %c0_132 = arith.constant 0 : index
    %138 = vector.load %arg4[%c7_130, %c0_131, %c0_132] : memref<9x128x128xbf16, #tpu.memory_space<vmem>>, vector<1x128x128xbf16>
    %139 = vector.shape_cast %138 : vector<1x128x128xbf16> to vector<128x128xbf16>
    %cst_133 = arith.constant dense<0.000000e+00> : vector<256x128xf32>
    %140 = tpu.matmul %137, %139, %cst_133 {dimension_numbers = #tpu.dot_dimension_numbers<[1], [0], [0], [1], [0, 0, 1, 1], [], []>} : vector<256x128xbf16>, vector<128x128xbf16>, vector<256x128xf32> -> vector<256x128xf32>
    %141 = arith.addf %134, %140 : vector<256x128xf32>
    %c2_134 = arith.constant 2 : index
    %c2_135 = arith.constant 2 : index
    %c0_136 = arith.constant 0 : index
    %142 = vector.load %arg13[%c2_134, %c2_135, %c0_136] : memref<18x18x128xf32, #tpu.memory_space<vmem>>, vector<16x16x128xf32>
    %143 = vector.shape_cast %142 : vector<16x16x128xf32> to vector<256x128xf32>
    %144 = arith.truncf %143 : vector<256x128xf32> to vector<256x128xbf16>
    %c8_137 = arith.constant 8 : index
    %c0_138 = arith.constant 0 : index
    %c0_139 = arith.constant 0 : index
    %145 = vector.load %arg4[%c8_137, %c0_138, %c0_139] : memref<9x128x128xbf16, #tpu.memory_space<vmem>>, vector<1x128x128xbf16>
    %146 = vector.shape_cast %145 : vector<1x128x128xbf16> to vector<128x128xbf16>
    %cst_140 = arith.constant dense<0.000000e+00> : vector<256x128xf32>
    %147 = tpu.matmul %144, %146, %cst_140 {dimension_numbers = #tpu.dot_dimension_numbers<[1], [0], [0], [1], [0, 0, 1, 1], [], []>} : vector<256x128xbf16>, vector<128x128xbf16>, vector<256x128xf32> -> vector<256x128xf32>
    %148 = arith.addf %141, %147 : vector<256x128xf32>
    %c0_141 = arith.constant 0 : index
    %c0_142 = arith.constant 0 : index
    %149 = vector.load %arg11[%c0_141, %c0_142] : memref<64x256xf32, #tpu.memory_space<vmem>>, vector<64x256xf32>
    %cst_143 = arith.constant dense<0.000000e+00> : vector<64x128xf32>
    %150 = tpu.matmul %149, %148, %cst_143 {dimension_numbers = #tpu.dot_dimension_numbers<[1], [0], [0], [1], [0, 0, 1, 1], [], []>} : vector<64x256xf32>, vector<256x128xf32>, vector<64x128xf32> -> vector<64x128xf32>
    %c0_144 = arith.constant 0 : index
    %c0_145 = arith.constant 0 : index
    %151 = vector.load %arg5[%c0_144, %c0_145] : memref<1x128xf32, #tpu.memory_space<vmem>>, vector<1x128xf32>
    %152 = vector.broadcast %151 : vector<1x128xf32> to vector<64x128xf32>
    %153 = arith.addf %150, %152 : vector<64x128xf32>
    %cst_146 = arith.constant 1.000000e-01 : f32
    %154 = vector.broadcast %cst_146 : f32 to vector<64x128xf32>
    %155 = arith.mulf %154, %153 : vector<64x128xf32>
    %156 = arith.maximumf %153, %155 : vector<64x128xf32>
    %157 = vector.shape_cast %156 : vector<64x128xf32> to vector<8x8x128xf32>
    %c1_147 = arith.constant 1 : index
    %c1_148 = arith.constant 1 : index
    %c0_149 = arith.constant 0 : index
    %158 = vector.load %arg14[%c1_147, %c1_148, %c0_149] : memref<10x10x128xf32, #tpu.memory_space<vmem>>, vector<8x8x128xf32>
    tpu.vector_store %arg14[%c1_147, %c1_148, %c0_149], %157 {strides = array<i32>} : memref<10x10x128xf32, #tpu.memory_space<vmem>>, vector<8x8x128xf32>,
    %cst_150 = arith.constant 0.000000e+00 : f32
    %159 = vector.broadcast %cst_150 : f32 to vector<64x128xf32>
    %c0_151 = arith.constant 0 : index
    %c0_152 = arith.constant 0 : index
    %c0_153 = arith.constant 0 : index
    %160 = vector.load %arg14[%c0_151, %c0_152, %c0_153] : memref<10x10x128xf32, #tpu.memory_space<vmem>>, vector<8x8x128xf32>
    %161 = vector.shape_cast %160 : vector<8x8x128xf32> to vector<64x128xf32>
    %162 = arith.truncf %161 : vector<64x128xf32> to vector<64x128xbf16>
    %c0_154 = arith.constant 0 : index
    %c0_155 = arith.constant 0 : index
    %c0_156 = arith.constant 0 : index
    %163 = vector.load %arg6[%c0_154, %c0_155, %c0_156] : memref<9x128x128xbf16, #tpu.memory_space<vmem>>, vector<1x128x128xbf16>
    %164 = vector.shape_cast %163 : vector<1x128x128xbf16> to vector<128x128xbf16>
    %cst_157 = arith.constant dense<0.000000e+00> : vector<64x128xf32>
    %165 = tpu.matmul %162, %164, %cst_157 {dimension_numbers = #tpu.dot_dimension_numbers<[1], [0], [0], [1], [0, 0, 1, 1], [], []>} : vector<64x128xbf16>, vector<128x128xbf16>, vector<64x128xf32> -> vector<64x128xf32>
    %166 = arith.addf %159, %165 : vector<64x128xf32>
    %c0_158 = arith.constant 0 : index
    %c1_159 = arith.constant 1 : index
    %c0_160 = arith.constant 0 : index
    %167 = vector.load %arg14[%c0_158, %c1_159, %c0_160] : memref<10x10x128xf32, #tpu.memory_space<vmem>>, vector<8x8x128xf32>
    %168 = vector.shape_cast %167 : vector<8x8x128xf32> to vector<64x128xf32>
    %169 = arith.truncf %168 : vector<64x128xf32> to vector<64x128xbf16>
    %c1_161 = arith.constant 1 : index
    %c0_162 = arith.constant 0 : index
    %c0_163 = arith.constant 0 : index
    %170 = vector.load %arg6[%c1_161, %c0_162, %c0_163] : memref<9x128x128xbf16, #tpu.memory_space<vmem>>, vector<1x128x128xbf16>
    %171 = vector.shape_cast %170 : vector<1x128x128xbf16> to vector<128x128xbf16>
    %cst_164 = arith.constant dense<0.000000e+00> : vector<64x128xf32>
    %172 = tpu.matmul %169, %171, %cst_164 {dimension_numbers = #tpu.dot_dimension_numbers<[1], [0], [0], [1], [0, 0, 1, 1], [], []>} : vector<64x128xbf16>, vector<128x128xbf16>, vector<64x128xf32> -> vector<64x128xf32>
    %173 = arith.addf %166, %172 : vector<64x128xf32>
    %c0_165 = arith.constant 0 : index
    %c2_166 = arith.constant 2 : index
    %c0_167 = arith.constant 0 : index
    %174 = vector.load %arg14[%c0_165, %c2_166, %c0_167] : memref<10x10x128xf32, #tpu.memory_space<vmem>>, vector<8x8x128xf32>
    %175 = vector.shape_cast %174 : vector<8x8x128xf32> to vector<64x128xf32>
    %176 = arith.truncf %175 : vector<64x128xf32> to vector<64x128xbf16>
    %c2_168 = arith.constant 2 : index
    %c0_169 = arith.constant 0 : index
    %c0_170 = arith.constant 0 : index
    %177 = vector.load %arg6[%c2_168, %c0_169, %c0_170] : memref<9x128x128xbf16, #tpu.memory_space<vmem>>, vector<1x128x128xbf16>
    %178 = vector.shape_cast %177 : vector<1x128x128xbf16> to vector<128x128xbf16>
    %cst_171 = arith.constant dense<0.000000e+00> : vector<64x128xf32>
    %179 = tpu.matmul %176, %178, %cst_171 {dimension_numbers = #tpu.dot_dimension_numbers<[1], [0], [0], [1], [0, 0, 1, 1], [], []>} : vector<64x128xbf16>, vector<128x128xbf16>, vector<64x128xf32> -> vector<64x128xf32>
    %180 = arith.addf %173, %179 : vector<64x128xf32>
    %c1_172 = arith.constant 1 : index
    %c0_173 = arith.constant 0 : index
    %c0_174 = arith.constant 0 : index
    %181 = vector.load %arg14[%c1_172, %c0_173, %c0_174] : memref<10x10x128xf32, #tpu.memory_space<vmem>>, vector<8x8x128xf32>
    %182 = vector.shape_cast %181 : vector<8x8x128xf32> to vector<64x128xf32>
    %183 = arith.truncf %182 : vector<64x128xf32> to vector<64x128xbf16>
    %c3_175 = arith.constant 3 : index
    %c0_176 = arith.constant 0 : index
    %c0_177 = arith.constant 0 : index
    %184 = vector.load %arg6[%c3_175, %c0_176, %c0_177] : memref<9x128x128xbf16, #tpu.memory_space<vmem>>, vector<1x128x128xbf16>
    %185 = vector.shape_cast %184 : vector<1x128x128xbf16> to vector<128x128xbf16>
    %cst_178 = arith.constant dense<0.000000e+00> : vector<64x128xf32>
    %186 = tpu.matmul %183, %185, %cst_178 {dimension_numbers = #tpu.dot_dimension_numbers<[1], [0], [0], [1], [0, 0, 1, 1], [], []>} : vector<64x128xbf16>, vector<128x128xbf16>, vector<64x128xf32> -> vector<64x128xf32>
    %187 = arith.addf %180, %186 : vector<64x128xf32>
    %c1_179 = arith.constant 1 : index
    %c1_180 = arith.constant 1 : index
    %c0_181 = arith.constant 0 : index
    %188 = vector.load %arg14[%c1_179, %c1_180, %c0_181] : memref<10x10x128xf32, #tpu.memory_space<vmem>>, vector<8x8x128xf32>
    %189 = vector.shape_cast %188 : vector<8x8x128xf32> to vector<64x128xf32>
    %190 = arith.truncf %189 : vector<64x128xf32> to vector<64x128xbf16>
    %c4_182 = arith.constant 4 : index
    %c0_183 = arith.constant 0 : index
    %c0_184 = arith.constant 0 : index
    %191 = vector.load %arg6[%c4_182, %c0_183, %c0_184] : memref<9x128x128xbf16, #tpu.memory_space<vmem>>, vector<1x128x128xbf16>
    %192 = vector.shape_cast %191 : vector<1x128x128xbf16> to vector<128x128xbf16>
    %cst_185 = arith.constant dense<0.000000e+00> : vector<64x128xf32>
    %193 = tpu.matmul %190, %192, %cst_185 {dimension_numbers = #tpu.dot_dimension_numbers<[1], [0], [0], [1], [0, 0, 1, 1], [], []>} : vector<64x128xbf16>, vector<128x128xbf16>, vector<64x128xf32> -> vector<64x128xf32>
    %194 = arith.addf %187, %193 : vector<64x128xf32>
    %c1_186 = arith.constant 1 : index
    %c2_187 = arith.constant 2 : index
    %c0_188 = arith.constant 0 : index
    %195 = vector.load %arg14[%c1_186, %c2_187, %c0_188] : memref<10x10x128xf32, #tpu.memory_space<vmem>>, vector<8x8x128xf32>
    %196 = vector.shape_cast %195 : vector<8x8x128xf32> to vector<64x128xf32>
    %197 = arith.truncf %196 : vector<64x128xf32> to vector<64x128xbf16>
    %c5_189 = arith.constant 5 : index
    %c0_190 = arith.constant 0 : index
    %c0_191 = arith.constant 0 : index
    %198 = vector.load %arg6[%c5_189, %c0_190, %c0_191] : memref<9x128x128xbf16, #tpu.memory_space<vmem>>, vector<1x128x128xbf16>
    %199 = vector.shape_cast %198 : vector<1x128x128xbf16> to vector<128x128xbf16>
    %cst_192 = arith.constant dense<0.000000e+00> : vector<64x128xf32>
    %200 = tpu.matmul %197, %199, %cst_192 {dimension_numbers = #tpu.dot_dimension_numbers<[1], [0], [0], [1], [0, 0, 1, 1], [], []>} : vector<64x128xbf16>, vector<128x128xbf16>, vector<64x128xf32> -> vector<64x128xf32>
    %201 = arith.addf %194, %200 : vector<64x128xf32>
    %c2_193 = arith.constant 2 : index
    %c0_194 = arith.constant 0 : index
    %c0_195 = arith.constant 0 : index
    %202 = vector.load %arg14[%c2_193, %c0_194, %c0_195] : memref<10x10x128xf32, #tpu.memory_space<vmem>>, vector<8x8x128xf32>
    %203 = vector.shape_cast %202 : vector<8x8x128xf32> to vector<64x128xf32>
    %204 = arith.truncf %203 : vector<64x128xf32> to vector<64x128xbf16>
    %c6_196 = arith.constant 6 : index
    %c0_197 = arith.constant 0 : index
    %c0_198 = arith.constant 0 : index
    %205 = vector.load %arg6[%c6_196, %c0_197, %c0_198] : memref<9x128x128xbf16, #tpu.memory_space<vmem>>, vector<1x128x128xbf16>
    %206 = vector.shape_cast %205 : vector<1x128x128xbf16> to vector<128x128xbf16>
    %cst_199 = arith.constant dense<0.000000e+00> : vector<64x128xf32>
    %207 = tpu.matmul %204, %206, %cst_199 {dimension_numbers = #tpu.dot_dimension_numbers<[1], [0], [0], [1], [0, 0, 1, 1], [], []>} : vector<64x128xbf16>, vector<128x128xbf16>, vector<64x128xf32> -> vector<64x128xf32>
    %208 = arith.addf %201, %207 : vector<64x128xf32>
    %c2_200 = arith.constant 2 : index
    %c1_201 = arith.constant 1 : index
    %c0_202 = arith.constant 0 : index
    %209 = vector.load %arg14[%c2_200, %c1_201, %c0_202] : memref<10x10x128xf32, #tpu.memory_space<vmem>>, vector<8x8x128xf32>
    %210 = vector.shape_cast %209 : vector<8x8x128xf32> to vector<64x128xf32>
    %211 = arith.truncf %210 : vector<64x128xf32> to vector<64x128xbf16>
    %c7_203 = arith.constant 7 : index
    %c0_204 = arith.constant 0 : index
    %c0_205 = arith.constant 0 : index
    %212 = vector.load %arg6[%c7_203, %c0_204, %c0_205] : memref<9x128x128xbf16, #tpu.memory_space<vmem>>, vector<1x128x128xbf16>
    %213 = vector.shape_cast %212 : vector<1x128x128xbf16> to vector<128x128xbf16>
    %cst_206 = arith.constant dense<0.000000e+00> : vector<64x128xf32>
    %214 = tpu.matmul %211, %213, %cst_206 {dimension_numbers = #tpu.dot_dimension_numbers<[1], [0], [0], [1], [0, 0, 1, 1], [], []>} : vector<64x128xbf16>, vector<128x128xbf16>, vector<64x128xf32> -> vector<64x128xf32>
    %215 = arith.addf %208, %214 : vector<64x128xf32>
    %c2_207 = arith.constant 2 : index
    %c2_208 = arith.constant 2 : index
    %c0_209 = arith.constant 0 : index
    %216 = vector.load %arg14[%c2_207, %c2_208, %c0_209] : memref<10x10x128xf32, #tpu.memory_space<vmem>>, vector<8x8x128xf32>
    %217 = vector.shape_cast %216 : vector<8x8x128xf32> to vector<64x128xf32>
    %218 = arith.truncf %217 : vector<64x128xf32> to vector<64x128xbf16>
    %c8_210 = arith.constant 8 : index
    %c0_211 = arith.constant 0 : index
    %c0_212 = arith.constant 0 : index
    %219 = vector.load %arg6[%c8_210, %c0_211, %c0_212] : memref<9x128x128xbf16, #tpu.memory_space<vmem>>, vector<1x128x128xbf16>
    %220 = vector.shape_cast %219 : vector<1x128x128xbf16> to vector<128x128xbf16>
    %cst_213 = arith.constant dense<0.000000e+00> : vector<64x128xf32>
    %221 = tpu.matmul %218, %220, %cst_213 {dimension_numbers = #tpu.dot_dimension_numbers<[1], [0], [0], [1], [0, 0, 1, 1], [], []>} : vector<64x128xbf16>, vector<128x128xbf16>, vector<64x128xf32> -> vector<64x128xf32>
    %222 = arith.addf %215, %221 : vector<64x128xf32>
    %c0_214 = arith.constant 0 : index
    %c0_215 = arith.constant 0 : index
    %223 = vector.load %arg7[%c0_214, %c0_215] : memref<1x128xf32, #tpu.memory_space<vmem>>, vector<1x128xf32>
    %224 = vector.broadcast %223 : vector<1x128xf32> to vector<64x128xf32>
    %225 = arith.addf %222, %224 : vector<64x128xf32>
    %cst_216 = arith.constant 1.000000e-01 : f32
    %226 = vector.broadcast %cst_216 : f32 to vector<64x128xf32>
    %227 = arith.mulf %226, %225 : vector<64x128xf32>
    %228 = arith.maximumf %225, %227 : vector<64x128xf32>
    %229 = arith.truncf %228 : vector<64x128xf32> to vector<64x128xbf16>
    %c0_217 = arith.constant 0 : index
    %c0_218 = arith.constant 0 : index
    %230 = vector.load %arg8[%c0_217, %c0_218] : memref<128x128xbf16, #tpu.memory_space<vmem>>, vector<128x128xbf16>
    %cst_219 = arith.constant dense<0.000000e+00> : vector<64x128xf32>
    %231 = tpu.matmul %229, %230, %cst_219 {dimension_numbers = #tpu.dot_dimension_numbers<[1], [0], [0], [1], [0, 0, 1, 1], [], []>} : vector<64x128xbf16>, vector<128x128xbf16>, vector<64x128xf32> -> vector<64x128xf32>
    %c0_220 = arith.constant 0 : index
    %c0_221 = arith.constant 0 : index
    %232 = vector.load %arg9[%c0_220, %c0_221] : memref<1x128xf32, #tpu.memory_space<vmem>>, vector<1x128xf32>
    %233 = vector.broadcast %232 : vector<1x128xf32> to vector<64x128xf32>
    %234 = arith.addf %231, %233 : vector<64x128xf32>
    %c0_222 = arith.constant 0 : index
    %c0_223 = arith.constant 0 : index
    %235 = vector.load %arg10[%c0_222, %c0_223] : memref<1x128xf32, #tpu.memory_space<vmem>>, vector<1x128xf32>
    %cst_224 = arith.constant 0.000000e+00 : f32
    %236 = vector.broadcast %cst_224 : f32 to vector<1x128xf32>
    %237 = arith.cmpf one, %235, %236 : vector<1x128xf32>
    %238 = arith.negf %234 : vector<64x128xf32>
    %239 = math.exp %238 : vector<64x128xf32>
    %cst_225 = arith.constant 1.000000e+00 : f32
    %240 = vector.broadcast %cst_225 : f32 to vector<64x128xf32>
    %241 = arith.addf %240, %239 : vector<64x128xf32>
    %242 = arith.divf %240, %241 : vector<64x128xf32>
    %243 = vector.shape_cast %237 : vector<1x128xi1> to vector<1x128xi1>
    %244 = vector.broadcast %243 : vector<1x128xi1> to vector<64x128xi1>
    %245 = arith.select %244, %242, %234 : vector<64x128xi1>, vector<64x128xf32>
    %c0_226 = arith.constant 0 : index
    %c0_227 = arith.constant 0 : index
    %c0_228 = arith.constant 0 : index
    %246 = vector.load %arg12[%c0_226, %c0_227, %c0_228] : memref<1x64x128xf32, #tpu.memory_space<vmem>>, vector<1x64x128xf32>
    %247 = vector.shape_cast %246 : vector<1x64x128xf32> to vector<64x128xf32>
    %248 = vector.shape_cast %245 : vector<64x128xf32> to vector<1x64x128xf32>
    tpu.vector_store %arg12[%c0_226, %c0_227, %c0_228], %248 {strides = array<i32>} : memref<1x64x128xf32, #tpu.memory_space<vmem>>, vector<1x64x128xf32>,
    return
  }
  func.func @transform_0(%arg0: i32) -> (i32, i32, i32, i32) {
    %c0_i32 = arith.constant 0 : i32
    %c0_i32_0 = arith.constant 0 : i32
    %c0_i32_1 = arith.constant 0 : i32
    %c0_i32_2 = arith.constant 0 : i32
    return %arg0, %c0_i32, %c0_i32_0, %c0_i32_1 : i32, i32, i32, i32
  }
  func.func @transform_1(%arg0: i32) -> (i32, i32, i32) {
    %c0_i32 = arith.constant 0 : i32
    %c0_i32_0 = arith.constant 0 : i32
    %c0_i32_1 = arith.constant 0 : i32
    %c0_i32_2 = arith.constant 0 : i32
    return %c0_i32, %c0_i32_0, %c0_i32_1 : i32, i32, i32
  }
  func.func @transform_2(%arg0: i32) -> (i32, i32) {
    %c0_i32 = arith.constant 0 : i32
    %c0_i32_0 = arith.constant 0 : i32
    %c0_i32_1 = arith.constant 0 : i32
    return %c0_i32, %c0_i32_0 : i32, i32
  }
  func.func @transform_3(%arg0: i32) -> (i32, i32, i32) {
    %c0_i32 = arith.constant 0 : i32
    %c0_i32_0 = arith.constant 0 : i32
    %c0_i32_1 = arith.constant 0 : i32
    %c0_i32_2 = arith.constant 0 : i32
    return %c0_i32, %c0_i32_0, %c0_i32_1 : i32, i32, i32
  }
  func.func @transform_4(%arg0: i32) -> (i32, i32) {
    %c0_i32 = arith.constant 0 : i32
    %c0_i32_0 = arith.constant 0 : i32
    %c0_i32_1 = arith.constant 0 : i32
    return %c0_i32, %c0_i32_0 : i32, i32
  }
  func.func @transform_5(%arg0: i32) -> (i32, i32, i32) {
    %c0_i32 = arith.constant 0 : i32
    %c0_i32_0 = arith.constant 0 : i32
    %c0_i32_1 = arith.constant 0 : i32
    %c0_i32_2 = arith.constant 0 : i32
    return %c0_i32, %c0_i32_0, %c0_i32_1 : i32, i32, i32
  }
  func.func @transform_6(%arg0: i32) -> (i32, i32) {
    %c0_i32 = arith.constant 0 : i32
    %c0_i32_0 = arith.constant 0 : i32
    %c0_i32_1 = arith.constant 0 : i32
    return %c0_i32, %c0_i32_0 : i32, i32
  }
  func.func @transform_7(%arg0: i32) -> (i32, i32) {
    %c0_i32 = arith.constant 0 : i32
    %c0_i32_0 = arith.constant 0 : i32
    %c0_i32_1 = arith.constant 0 : i32
    return %c0_i32, %c0_i32_0 : i32, i32
  }
  func.func @transform_8(%arg0: i32) -> (i32, i32) {
    %c0_i32 = arith.constant 0 : i32
    %c0_i32_0 = arith.constant 0 : i32
    %c0_i32_1 = arith.constant 0 : i32
    return %c0_i32, %c0_i32_0 : i32, i32
  }
  func.func @transform_9(%arg0: i32) -> (i32, i32) {
    %c0_i32 = arith.constant 0 : i32
    %c0_i32_0 = arith.constant 0 : i32
    %c0_i32_1 = arith.constant 0 : i32
    return %c0_i32, %c0_i32_0 : i32, i32
  }
  func.func @transform_10(%arg0: i32) -> (i32, i32) {
    %c0_i32 = arith.constant 0 : i32
    %c0_i32_0 = arith.constant 0 : i32
    %c0_i32_1 = arith.constant 0 : i32
    return %c0_i32, %c0_i32_0 : i32, i32
  }
  func.func @transform_11(%arg0: i32) -> (i32, i32, i32) {
    %c0_i32 = arith.constant 0 : i32
    %c0_i32_0 = arith.constant 0 : i32
    %c0_i32_1 = arith.constant 0 : i32
    return %arg0, %c0_i32, %c0_i32_0 : i32, i32, i32
  }
}

</mosaic_0001>

<bundles_post_ra>
// kernel: object_detection_forward.1
= control target key start
LH: loop header
LB: loop body
LE: loop exit
PB: predicated region body
PF: predicated region fallthrough
CT: control target
= control target key end

     0   :  { %s11262_s17 = smov 0   ;;  %s13079_s0 = inlined_call_operand.vmem [shape: f32[2,18,18,128], index: 0, kind: input, shape index: {}]   ;;  %s13080_s1 = inlined_call_operand.vmem [shape: bf16[9,128,128], index: 1, kind: input, shape index: {}]   ;;  %s13081_s2 = inlined_call_operand.vmem [shape: f32[1,128], index: 2, kind: input, shape index: {}]   ;;  %s13082_s3 = inlined_call_operand.vmem [shape: bf16[9,128,128], index: 3, kind: input, shape index: {}]   ;;  %s13083_s4 = inlined_call_operand.vmem [shape: f32[1,128], index: 4, kind: input, shape index: {}]   ;;  %s13084_s5 = inlined_call_operand.vmem [shape: bf16[9,128,128], index: 5, kind: input, shape index: {}]   ;;  %s13085_s6 = inlined_call_operand.vmem [shape: f32[1,128], index: 6, kind: input, shape index: {}]   ;;  %s13086_s7 = inlined_call_operand.vmem [shape: bf16[128,128], index: 7, kind: input, shape index: {}]   ;;  %s13087_s8 = inlined_call_operand.vmem [shape: f32[1,128], index: 8, kind: input, shape index: {}]   ;;  %s13088_s9 = inlined_call_operand.vmem [shape: f32[1,128], index: 9, kind: input, shape index: {}]   ;;  %s13089_s10 = inlined_call_operand.vmem [shape: f32[64,256], index: 10, kind: input, shape index: {}]   ;;  %s13090_s11 = inlined_call_operand.vmem [shape: f32[2,64,128], index: 11, kind: output, shape index: {}]  }
   0x1 LB: > { %s7764_s18 = sadd.s32 4294967295, %s11198_s17   ;;  %p7768_p0 = scmp.ge.s32.totalorder %s11198_s17, 1  ;;  %s11198_s17 = sphi %s11262_s17, %s21_s17  }
   0x2   : > { %p337_p1 = scmp.lt.s32.totalorder %s11198_s17, 3 }
   0x4   : > { %p338_p2 = pnand %p7768_p0, %p337_p1 }
   0x5   : > { %v10934_v0 = vld [vmem:[%s13080_s1 + $0x40] sm:$0xff] (!%p338_p2)   ;;  %p377_p3 = scmp.lt.s32.totalorder (!%p338_p2), %s7764_s18, 1  ;;  %v10935_v1 = vld [vmem:[%s13080_s1 + $0x48] sm:$0xff] (!%p338_p2)   ;;  %v10936_v2 = vld [vmem:[%s13080_s1 + $0x50] sm:$0xff] (!%p338_p2)  }
   0x6   : > { %341 = sbr.rel (%p338_p2) target bundleno = 2412 (0x96c), region = 64  ;;  %9195 = vmatprep.subr.bf16.mxu0 (!%p338_p2), %v10934_v0  ;;  %v10937_v3 = vld [vmem:[%s13080_s1 + $0x58] sm:$0xff] (!%p338_p2)   ;;  %v10938_v7 = vld [vmem:[%s13080_s1 + $0x60] sm:$0xff] (!%p338_p2)   ;;  %v10939_v8 = vld [vmem:[%s13080_s1 + $0x68] sm:$0xff] (!%p338_p2)  }
   0x7   : > { %9196 = vmatpush3.bf16.msra.mxu0 (!%p338_p2), %v10934_v0  ;;  %v10940_v9 = vld [vmem:[%s13080_s1 + $0x70] sm:$0xff] (!%p338_p2)   ;;  %v10941_v10 = vld [vmem:[%s13080_s1 + $0x78] sm:$0xff] (!%p338_p2)   ;;  %v10942_v15 = vld [vmem:[%s13080_s1] sm:$0xff] (!%p338_p2)  }
   0x8   : > { %9197 = vmatprep.subr.bf16.mxu0 (!%p338_p2), %v10935_v1  ;;  %v10943_v18 = vld [vmem:[%s13080_s1 + $0x8] sm:$0xff] (!%p338_p2)   ;;  %v10944_v23 = vld [vmem:[%s13080_s1 + $0x10] sm:$0xff] (!%p338_p2)   ;;  %v10945_v26 = vld [vmem:[%s13080_s1 + $0x18] sm:$0xff] (!%p338_p2)  }
   0x9   : > { %v10946_v31 = vld [vmem:[%s13080_s1 + $0x20] sm:$0xff] (!%p338_p2)   ;;  %v10947_v34 = vld [vmem:[%s13080_s1 + $0x28] sm:$0xff] (!%p338_p2)   ;;  %v10948_v39 = vld [vmem:[%s13080_s1 + $0x30] sm:$0xff] (!%p338_p2)  }
   0xa   : > { %v10949_v41 = vld [vmem:[%s13080_s1 + $0x38] sm:$0xff] (!%p338_p2)   ;;  %v10950_v47 = vld [vmem:[%s13080_s1 + $0x80] sm:$0xff] (!%p338_p2)  }
   0xb   : > { %9198 = vmatpush3.bf16.msra.mxu0 (!%p338_p2), %v10935_v1 }
   0xc   : > { %9199 = vmatprep.subr.bf16.mxu0 (!%p338_p2), %v10936_v2 }
   0xd   : > { %s13092_s18 = smov (!%p377_p3, %s7764_s18), 1 }
   0xe   : > { %s10923_s25 = smul.u32 432, %s13092_s18  ;;  %s8586_s29 = sshll.u32 %s13092_s18, 6 }
   0xf   : > { %9200 = vmatpush3.bf16.msra.mxu0 %v10936_v2  ;;  %s386_s13 = scalar_lea.vmem %s13090_s11, %s8586_s29 }
  0x10   : > { %s11285_s28 = scalar_lea.vmem %s13079_s0, %s10923_s25  ;;  %9201 = vmatprep.subr.bf16.mxu0 %v10937_v3 }
  0x11   : > { %v526_v4 = vld [vmem:[%s11285_s28 + $0x1] sm:$0xff]  ;;  %v527_v5 = vld [vmem:[%s11285_s28 + $0x9] sm:$0xff]  ;;  %v528_v11 = vld [vmem:[%s11285_s28 + $0x19] sm:$0xff] }
  0x12   : > { %v558_v6 = vpack.c.bf16 %v527_v5, %v526_v4  ;;  %v529_v12 = vld [vmem:[%s11285_s28 + $0x21] sm:$0xff]  ;;  %v530_v13 = vld [vmem:[%s11285_s28 + $0x31] sm:$0xff]  ;;  %v531_v14 = vld [vmem:[%s11285_s28 + $0x39] sm:$0xff] }
  0x13   : > { %9202 = vmatpush3.bf16.msra.mxu0 %v10937_v3  ;;  %v11311_v16 = vpack.c.bf16 %v529_v12, %v528_v11  ;;  %v11313_v17 = vpack.c.bf16 %v531_v14, %v530_v13  ;;  %v532_v19 = vld [vmem:[%s11285_s28 + $0x49] sm:$0xff]  ;;  %v533_v20 = vld [vmem:[%s11285_s28 + $0x51] sm:$0xff]  ;;  %v534_v21 = vld [vmem:[%s11285_s28 + $0x61] sm:$0xff] }
  0x14   : > { %9211 = vmatprep.mubr.bf16.mxu0 %v558_v6  ;;  %9203 = vmatprep.subr.bf16.mxu0 %v10938_v7  ;;  %v535_v22 = vld [vmem:[%s11285_s28 + $0x69] sm:$0xff]  ;;  %v11327_v24 = vpack.c.bf16 %v533_v20, %v532_v19  ;;  %v536_v27 = vld [vmem:[%s11285_s28 + $0x79] sm:$0xff]  ;;  %v537_v28 = vld [vmem:[%s11285_s28 + $0x81] sm:$0xff] }
  0x15   : > { %v11329_v25 = vpack.c.bf16 %v535_v22, %v534_v21  ;;  %v538_v29 = vld [vmem:[%s11285_s28 + $0x91] sm:$0xff]  ;;  %v539_v30 = vld [vmem:[%s11285_s28 + $0x99] sm:$0xff]  ;;  %v11343_v32 = vpack.c.bf16 %v537_v28, %v536_v27  ;;  %v540_v35 = vld [vmem:[%s11285_s28 + $0xa9] sm:$0xff] }
  0x16   : > { %v11345_v33 = vpack.c.bf16 %v539_v30, %v538_v29  ;;  %v541_v36 = vld [vmem:[%s11285_s28 + $0xb1] sm:$0xff]  ;;  %v542_v37 = vld [vmem:[%s11285_s28 + $0xc1] sm:$0xff]  ;;  %v543_v38 = vld [vmem:[%s11285_s28 + $0xc9] sm:$0xff] }
  0x17   : > { %9204 = vmatpush3.bf16.msra.mxu0 %v10938_v7  ;;  %v11359_v40 = vpack.c.bf16 %v541_v36, %v540_v35  ;;  %v11364_v42 = vpack.c.bf16 %v543_v38, %v542_v37  ;;  %v544_v43 = vld [vmem:[%s11285_s28 + $0xd9] sm:$0xff]  ;;  %v545_v44 = vld [vmem:[%s11285_s28 + $0xe1] sm:$0xff]  ;;  %v546_v45 = vld [vmem:[%s11285_s28 + $0xf1] sm:$0xff] }
  0x18   : > { %9205 = vmatprep.subr.bf16.mxu0 %v10939_v8  ;;  %v547_v46 = vld [vmem:[%s11285_s28 + $0xf9] sm:$0xff]  ;;  %v11375_v48 = vpack.c.bf16 %v545_v44, %v544_v43  ;;  %v548_v50 = vld [vmem:[%s11285_s28 + $0x109] sm:$0xff]  ;;  %v549_v51 = vld [vmem:[%s11285_s28 + $0x111] sm:$0xff] }
  0x19   : > { %v11377_v49 = vpack.c.bf16 %v547_v46, %v546_v45  ;;  %v550_v52 = vld [vmem:[%s11285_s28 + $0x121] sm:$0xff]  ;;  %v551_v53 = vld [vmem:[%s11285_s28 + $0x129] sm:$0xff]  ;;  %v11385_v54 = vpack.c.bf16 %v549_v51, %v548_v50  ;;  %v552_v56 = vld [vmem:[%s11285_s28 + $0x139] sm:$0xff] }
  0x1a   : > { %v11387_v55 = vpack.c.bf16 %v551_v53, %v550_v52  ;;  %v553_v57 = vld [vmem:[%s11285_s28 + $0x141] sm:$0xff]  ;;  %v554_v58 = vld [vmem:[%s11285_s28 + $0x151] sm:$0xff]  ;;  %v555_v59 = vld [vmem:[%s11285_s28 + $0x159] sm:$0xff] }
  0x1b   : > { %9206 = vmatpush3.bf16.msra.mxu0 %v10939_v8  ;;  %v11395_v60 = vpack.c.bf16 %v553_v57, %v552_v56  ;;  %v11397_v61 = vpack.c.bf16 %v555_v59, %v554_v58  ;;  %v556_v62 = vld [vmem:[%s11285_s28 + $0x169] sm:$0xff]  ;;  %v557_v63 = vld [vmem:[%s11285_s28 + $0x171] sm:$0xff]  ;;  %v462_v0 = vld [vmem:[%s11285_s28] sm:$0xff] }
  0x1c   : > { %9207 = vmatprep.subr.bf16.mxu0 %v10940_v9  ;;  %v463_v1 = vld [vmem:[%s11285_s28 + $0x8] sm:$0xff]  ;;  %v11405_v2 = vpack.c.bf16 %v557_v63, %v556_v62  ;;  %v464_v4 = vld [vmem:[%s11285_s28 + $0x18] sm:$0xff]  ;;  %v465_v5 = vld [vmem:[%s11285_s28 + $0x20] sm:$0xff] }
  0x1d   : > { %v494_v3 = vpack.c.bf16 %v463_v1, %v462_v0  ;;  %v466_v6 = vld [vmem:[%s11285_s28 + $0x30] sm:$0xff]  ;;  %v467_v7 = vld [vmem:[%s11285_s28 + $0x38] sm:$0xff]  ;;  %v11412_v8 = vpack.c.bf16 %v465_v5, %v464_v4  ;;  %v468_v11 = vld [vmem:[%s11285_s28 + $0x48] sm:$0xff] }
  0x1e   : > { %v469_v12 = vld [vmem:[%s11285_s28 + $0x50] sm:$0xff]  ;;  %v470_v13 = vld [vmem:[%s11285_s28 + $0x60] sm:$0xff]  ;;  %v471_v14 = vld [vmem:[%s11285_s28 + $0x68] sm:$0xff] }
  0x1f   : > { %9208 = vmatpush3.bf16.msra.mxu0 %v10940_v9  ;;  %v10951_v9 = vld [vmem:[%s13080_s1 + $0x88] sm:$0xff]   ;;  %v10953_v19 = vld [vmem:[%s13080_s1 + $0x98] sm:$0xff]   ;;  %v11433_v20 = vpack.c.bf16 %v471_v14, %v470_v13  ;;  %v473_v22 = vld [vmem:[%s11285_s28 + $0x80] sm:$0xff] }
  0x20   : > { %9209 = vmatprep.subr.bf16.mxu0 %v10941_v10  ;;  %v472_v21 = vld [vmem:[%s11285_s28 + $0x78] sm:$0xff]  ;;  %v10954_v27 = vld [vmem:[%s13080_s1 + $0xa0] sm:$0xff]   ;;  %v10955_v29 = vld [vmem:[%s13080_s1 + $0xa8] sm:$0xff]  }
  0x21   : > { %v11444_v28 = vpack.c.bf16 %v473_v22, %v472_v21  ;;  %v478_v35 = vld [vmem:[%s11285_s28 + $0xc0] sm:$0xff]  ;;  %v479_v36 = vld [vmem:[%s11285_s28 + $0xc8] sm:$0xff]  ;;  %v10956_v37 = vld [vmem:[%s13080_s1 + $0xb0] sm:$0xff]  }
  0x22   : > { %v480_v43 = vld [vmem:[%s11285_s28 + $0xd8] sm:$0xff]  ;;  %v481_v44 = vld [vmem:[%s11285_s28 + $0xe0] sm:$0xff]  ;;  %v482_v45 = vld [vmem:[%s11285_s28 + $0xf0] sm:$0xff] }
  0x23   : > { %9210 = vmatpush3.bf16.msra.mxu0 %v10941_v10  ;;  %v11417_v10 = vpack.c.bf16 %v467_v7, %v466_v6  ;;  %v483_v46 = vld [vmem:[%s11285_s28 + $0xf8] sm:$0xff]  ;;  %v11476_v50 = vpack.c.bf16 %v481_v44, %v480_v43  ;;  %v484_v52 = vld [vmem:[%s11285_s28 + $0x108] sm:$0xff]  ;;  %v485_v53 = vld [vmem:[%s11285_s28 + $0x110] sm:$0xff] }
  0x24   : > { %9243 = vmatprep.subr.bf16.mxu0 %v10942_v15  ;;  %v11478_v51 = vpack.c.bf16 %v483_v46, %v482_v45  ;;  %v486_v56 = vld [vmem:[%s11285_s28 + $0x120] sm:$0xff]  ;;  %v487_v57 = vld [vmem:[%s11285_s28 + $0x128] sm:$0xff]  ;;  %v11486_v58 = vpack.c.bf16 %v485_v53, %v484_v52  ;;  %v488_v62 = vld [vmem:[%s11285_s28 + $0x138] sm:$0xff] }
  0x25   : > { %v11488_v59 = vpack.c.bf16 %v487_v57, %v486_v56  ;;  %v489_v63 = vld [vmem:[%s11285_s28 + $0x140] sm:$0xff]  ;;  %v490_v0 = vld [vmem:[%s11285_s28 + $0x150] sm:$0xff]  ;;  %v491_v1 = vld [vmem:[%s11285_s28 + $0x158] sm:$0xff] }
  0x26   : > { %9212 = vmatmul.mubr.bf16.vlgmr.msra.gmra.mrb[0].mxu0 %v11311_v16  ;;  %v11498_v4 = vpack.c.bf16 %v491_v1, %v490_v0  ;;  %v492_v5 = vld [vmem:[%s11285_s28 + $0x168] sm:$0xff]  ;;  %v493_v6 = vld [vmem:[%s11285_s28 + $0x170] sm:$0xff]  ;;  %v1011_v13 = vld [vmem:[%s11285_s28 + $0x1a] sm:$0xff] }
  0x27   : > { %9215 = vmatprep.mubr.bf16.mxu0 %v11313_v17  ;;  %9244 = vmatpush3.bf16.msra.mxu0 %v10942_v15  ;;  %v10952_v15 = vld [vmem:[%s13080_s1 + $0x90] sm:$0xff]   ;;  %v1009_v7 = vld [vmem:[%s11285_s28 + $0x2] sm:$0xff]  ;;  %v1022_v45 = vld [vmem:[%s11285_s28 + $0x9a] sm:$0xff] }
  0x28   : > { %9245 = vmatprep.subr.bf16.mxu0 %v10943_v18  ;;  %v1012_v14 = vld [vmem:[%s11285_s28 + $0x22] sm:$0xff]  ;;  %v1021_v44 = vld [vmem:[%s11285_s28 + $0x92] sm:$0xff]  ;;  %v1023_v56 = vld [vmem:[%s11285_s28 + $0xaa] sm:$0xff] }
  0x29   : > { %v11513_v21 = vpack.c.bf16 %v1012_v14, %v1011_v13  ;;  %v10959_v22 = vld [vmem:[%s13080_s1 + $0xc8] sm:$0xff]   ;;  %v10962_v46 = vld [vmem:[%s13080_s1 + $0xe0] sm:$0xff]   ;;  %v11550_v53 = vpack.c.bf16 %v1022_v45, %v1021_v44  ;;  %v1024_v57 = vld [vmem:[%s11285_s28 + $0xb2] sm:$0xff] }
  0x2a   : > { %v1020_v43 = vld [vmem:[%s11285_s28 + $0x82] sm:$0xff]  ;;  %v10964_v0 = vld [vmem:[%s13080_s1 + $0xf0] sm:$0xff]   ;;  %v11561_v1 = vpack.c.bf16 %v1024_v57, %v1023_v56  ;;  %v1030_v13 = vld [vmem:[%s11285_s28 + $0xfa] sm:$0xff] }
  0x2b   : > { %9246 = vmatpush3.bf16.msra.mxu0 %v10943_v18  ;;  %v11428_v18 = vpack.c.bf16 %v469_v12, %v468_v11  ;;  %v11506_v11 = vpack.c.bf16 %v493_v6, %v492_v5  ;;  %v10963_v52 = vld [vmem:[%s13080_s1 + $0xe8] sm:$0xff]   ;;  %v10965_v5 = vld [vmem:[%s13080_s1 + $0xf8] sm:$0xff]   ;;  %v10966_v14 = vld [vmem:[%s13080_s1 + $0x100] sm:$0xff]  }
  0x2c   : > { %9247 = vmatprep.subr.bf16.mxu0 %v10944_v23  ;;  %v1038_v44 = vld [vmem:[%s11285_s28 + $0x15a] sm:$0xff]  ;;  %v1040_v56 = vld [vmem:[%s11285_s28 + $0x172] sm:$0xff] }
  0x2e   : > { %9216 = vmatmul.mubr.bf16.gmra.mrb[4].mxu0 %v11327_v24 }
  0x2f   : > { %9219 = vmatprep.mubr.bf16.mxu0 %v11329_v25  ;;  %9248 = vmatpush3.bf16.msra.mxu0 %v10944_v23  ;;  %v474_v23 = vld [vmem:[%s11285_s28 + $0x90] sm:$0xff] }
  0x30   : > { %9249 = vmatprep.subr.bf16.mxu0 %v10945_v26 }
  0x33   : > { %9250 = vmatpush3.bf16.msra.mxu0 %v10945_v26  ;;  %v475_v26 = vld [vmem:[%s11285_s28 + $0x98] sm:$0xff] }
  0x34   : > { %9251 = vmatprep.subr.bf16.mxu0 %v10946_v31  ;;  %v11449_v30 = vpack.c.bf16 %v475_v26, %v474_v23  ;;  %v1015_v26 = vld [vmem:[%s11285_s28 + $0x4a] sm:$0xff] }
  0x36   : > { %9220 = vmatmul.mubr.bf16.gmra.mrb[8].mxu0 %v11343_v32 }
  0x37   : > { %9223 = vmatprep.mubr.bf16.mxu0 %v11345_v33  ;;  %9252 = vmatpush3.bf16.msra.mxu0 %v10946_v31  ;;  %v476_v31 = vld [vmem:[%s11285_s28 + $0xa8] sm:$0xff] }
  0x38   : > { %9253 = vmatprep.subr.bf16.mxu0 %v10947_v34 }
  0x3b   : > { %9254 = vmatpush3.bf16.msra.mxu0 %v10947_v34  ;;  %v477_v34 = vld [vmem:[%s11285_s28 + $0xb0] sm:$0xff] }
  0x3c   : > { %9255 = vmatprep.subr.bf16.mxu0 %v10948_v39  ;;  %v11460_v38 = vpack.c.bf16 %v477_v34, %v476_v31  ;;  %v1018_v31 = vld [vmem:[%s11285_s28 + $0x6a] sm:$0xff] }
  0x3d   : > { %v10960_v34 = vld [vmem:[%s13080_s1 + $0xd0] sm:$0xff]  }
  0x3e   : > { %9224 = vmatmul.mubr.bf16.gmra.mrb[12].mxu0 %v11359_v40 }
  0x3f   : > { %9227 = vmatprep.mubr.bf16.mxu0 %v11364_v42  ;;  %9256 = vmatpush3.bf16.msra.mxu0 %v10948_v39  ;;  %v10957_v39 = vld [vmem:[%s13080_s1 + $0xb8] sm:$0xff]  }
  0x40   : > { %9257 = vmatprep.subr.bf16.mxu0 %v10949_v41 }
  0x43   : > { %9258 = vmatpush3.bf16.msra.mxu0 %v10949_v41  ;;  %v11465_v41 = vpack.c.bf16 %v479_v36, %v478_v35  ;;  %v10961_v36 = vld [vmem:[%s13080_s1 + $0xd8] sm:$0xff]  }
  0x44   : > { %9291 = vmatprep.subr.bf16.mxu0 %v10950_v47 }
  0x46   : > { %9228 = vmatmul.mubr.bf16.gmra.mrb[16].mxu0 %v11375_v48 }
  0x47   : > { %9231 = vmatprep.mubr.bf16.mxu0 %v11377_v49 }
  0x4e   : > { %9232 = vmatmul.mubr.bf16.gmra.mrb[20].mxu0 %v11385_v54 }
  0x4f   : > { %9235 = vmatprep.mubr.bf16.mxu0 %v11387_v55 }
  0x56   : > { %9236 = vmatmul.mubr.bf16.gmra.mrb[24].mxu0 %v11395_v60 }
  0x57   : > { %9239 = vmatprep.mubr.bf16.mxu0 %v11397_v61 }
  0x5e   : > { %9240 = vmatmul.mubr.bf16.gmra.mrb[28].mxu0 %v11405_v2 }
  0x5f   : > { %9259 = vmatprep.mubr.bf16.mxu0 %v494_v3  ;;  %v11496_v3 = vpack.c.bf16 %v489_v63, %v488_v62  ;;  %v1025_v62 = vld [vmem:[%s11285_s28 + $0xc2] sm:$0xff]  ;;  %v1026_v63 = vld [vmem:[%s11285_s28 + $0xca] sm:$0xff] }
  0x60   : > { %v11566_v6 = vpack.c.bf16 %v1026_v63, %v1025_v62  ;;  %v10967_v62 = vld [vmem:[%s13080_s1 + $0x108] sm:$0xff]   ;;  %v10968_v63 = vld [vmem:[%s13080_s1 + $0x110] sm:$0xff]  }
  0x66   : > { %9260 = vmatmul.mubr.bf16.vlgmr.msra.gmra.mrb[0].mxu0 %v11412_v8 }
  0x67   : > { %9263 = vmatprep.mubr.bf16.mxu0 %v11417_v10  ;;  %9292 = vmatpush3.bf16.msra.mxu0 %v10950_v47  ;;  %v10958_v47 = vld [vmem:[%s13080_s1 + $0xc0] sm:$0xff]  }
  0x68   : > { %9293 = vmatprep.subr.bf16.mxu0 %v10951_v9 }
  0x6b   : > { %9294 = vmatpush3.bf16.msra.mxu0 %v10951_v9  ;;  %v1010_v9 = vld [vmem:[%s11285_s28 + $0xa] sm:$0xff] }
  0x6c   : > { %9295 = vmatprep.subr.bf16.mxu0 %v10952_v15  ;;  %v1041_v12 = vpack.c.bf16 %v1010_v9, %v1009_v7  ;;  %v1027_v7 = vld [vmem:[%s11285_s28 + $0xda] sm:$0xff]  ;;  %v1028_v9 = vld [vmem:[%s11285_s28 + $0xe2] sm:$0xff] }
  0x6e   : > { %9264 = vmatmul.mubr.bf16.gmra.mrb[4].mxu0 %v11428_v18 }
  0x6f   : > { %9267 = vmatprep.mubr.bf16.mxu0 %v11433_v20  ;;  %9296 = vmatpush3.bf16.msra.mxu0 %v10952_v15  ;;  %v1013_v15 = vld [vmem:[%s11285_s28 + $0x32] sm:$0xff] }
  0x70   : > { %9297 = vmatprep.subr.bf16.mxu0 %v10953_v19 }
  0x73   : > { %9298 = vmatpush3.bf16.msra.mxu0 %v10953_v19  ;;  %v1014_v19 = vld [vmem:[%s11285_s28 + $0x3a] sm:$0xff] }
  0x74   : > { %9299 = vmatprep.subr.bf16.mxu0 %v10954_v27  ;;  %v11518_v23 = vpack.c.bf16 %v1014_v19, %v1013_v15  ;;  %v11577_v15 = vpack.c.bf16 %v1028_v9, %v1027_v7  ;;  %v10972_v7 = vld [vmem:[%s13080_s1 + $0x130] sm:$0xff]   ;;  %v10973_v9 = vld [vmem:[%s13080_s1 + $0x138] sm:$0xff]  }
  0x76   : > { %9268 = vmatmul.mubr.bf16.gmra.mrb[8].mxu0 %v11444_v28 }
  0x77   : > { %9271 = vmatprep.mubr.bf16.mxu0 %v11449_v30  ;;  %9300 = vmatpush3.bf16.msra.mxu0 %v10954_v27  ;;  %v1016_v27 = vld [vmem:[%s11285_s28 + $0x52] sm:$0xff] }
  0x78   : > { %9301 = vmatprep.subr.bf16.mxu0 %v10955_v29  ;;  %v11529_v35 = vpack.c.bf16 %v1016_v27, %v1015_v26  ;;  %v1032_v26 = vld [vmem:[%s11285_s28 + $0x112] sm:$0xff]  ;;  %v1033_v27 = vld [vmem:[%s11285_s28 + $0x122] sm:$0xff] }
  0x7b   : > { %9302 = vmatpush3.bf16.msra.mxu0 %v10955_v29  ;;  %v1017_v29 = vld [vmem:[%s11285_s28 + $0x62] sm:$0xff] }
  0x7c   : > { %9303 = vmatprep.subr.bf16.mxu0 %v10956_v37 }
  0x7e   : > { %9272 = vmatmul.mubr.bf16.gmra.mrb[12].mxu0 %v11460_v38 }
  0x7f   : > { %9275 = vmatprep.mubr.bf16.mxu0 %v11465_v41  ;;  %9304 = vmatpush3.bf16.msra.mxu0 %v10956_v37  ;;  %v11534_v37 = vpack.c.bf16 %v1018_v31, %v1017_v29  ;;  %v1034_v29 = vld [vmem:[%s11285_s28 + $0x12a] sm:$0xff] }
  0x80   : > { %9305 = vmatprep.subr.bf16.mxu0 %v10957_v39 }
  0x83   : > { %9306 = vmatpush3.bf16.msra.mxu0 %v10957_v39  ;;  %v1019_v39 = vld [vmem:[%s11285_s28 + $0x7a] sm:$0xff] }
  0x84   : > { %9339 = vmatprep.subr.bf16.mxu0 %v10958_v47 }
  0x86   : > { %9276 = vmatmul.mubr.bf16.gmra.mrb[16].mxu0 %v11476_v50 }
  0x87   : > { %9279 = vmatprep.mubr.bf16.mxu0 %v11478_v51 }
  0x8e   : > { %9280 = vmatmul.mubr.bf16.gmra.mrb[20].mxu0 %v11486_v58 }
  0x8f   : > { %9283 = vmatprep.mubr.bf16.mxu0 %v11488_v59 }
  0x96   : > { %9284 = vmatmul.mubr.bf16.gmra.mrb[24].mxu0 %v11496_v3 }
  0x97   : > { %9287 = vmatprep.mubr.bf16.mxu0 %v11498_v4 }
  0x9e   : > { %9288 = vmatmul.mubr.bf16.gmra.mrb[28].mxu0 %v11506_v11 }
  0x9f   : > { %9307 = vmatprep.mubr.bf16.mxu0 %v1041_v12  ;;  %v1029_v12 = vld [vmem:[%s11285_s28 + $0xf2] sm:$0xff] }
  0xa0   : > { %v11579_v19 = vpack.c.bf16 %v1030_v13, %v1029_v12  ;;  %v10974_v12 = vld [vmem:[%s13080_s1 + $0x140] sm:$0xff]  }
  0xa1   : > { %v7858_v13 = vld [vmem:[%s11285_s28 + $0x180] sm:$0xff] }
  0xa6   : > { %9308 = vmatmul.mubr.bf16.vlgmr.msra.gmra.mrb[0].mxu0 %v11513_v21 }
  0xa7   : > { %9311 = vmatprep.mubr.bf16.mxu0 %v11518_v23  ;;  %9340 = vmatpush3.bf16.msra.mxu0 %v10958_v47  ;;  %v11545_v47 = vpack.c.bf16 %v1020_v43, %v1019_v39  ;;  %v1036_v39 = vld [vmem:[%s11285_s28 + $0x142] sm:$0xff]  ;;  %v1037_v43 = vld [vmem:[%s11285_s28 + $0x152] sm:$0xff] }
  0xa8   : > { %9341 = vmatprep.subr.bf16.mxu0 %v10959_v22 }
  0xab   : > { %9342 = vmatpush3.bf16.msra.mxu0 %v10959_v22  ;;  %v1031_v22 = vld [vmem:[%s11285_s28 + $0x10a] sm:$0xff] }
  0xac   : > { %9343 = vmatprep.subr.bf16.mxu0 %v10960_v34  ;;  %v11587_v31 = vpack.c.bf16 %v1032_v26, %v1031_v22  ;;  %v10975_v26 = vld [vmem:[%s13080_s1 + $0x148] sm:$0xff]  }
  0xae   : > { %9312 = vmatmul.mubr.bf16.gmra.mrb[4].mxu0 %v11529_v35 }
  0xaf   : > { %9315 = vmatprep.mubr.bf16.mxu0 %v11534_v37  ;;  %9344 = vmatpush3.bf16.msra.mxu0 %v10960_v34  ;;  %v11589_v34 = vpack.c.bf16 %v1034_v29, %v1033_v27  ;;  %v10976_v27 = vld [vmem:[%s13080_s1 + $0x150] sm:$0xff]   ;;  %v8056_v29 = vld [vmem:[%s11285_s28 + $0x61] sm:$0xff] }
  0xb0   : > { %9345 = vmatprep.subr.bf16.mxu0 %v10961_v36 }
  0xb3   : > { %9346 = vmatpush3.bf16.msra.mxu0 %v10961_v36  ;;  %v1035_v36 = vld [vmem:[%s11285_s28 + $0x13a] sm:$0xff] }
  0xb4   : > { %9347 = vmatprep.subr.bf16.mxu0 %v10962_v46  ;;  %v11597_v45 = vpack.c.bf16 %v1036_v39, %v1035_v36  ;;  %v11011_v36 = vld [vmem:[%s13082_s3 + $0x90] sm:$0xff]  }
  0xb6   : > { %9316 = vmatmul.mubr.bf16.gmra.mrb[8].mxu0 %v11545_v47 }
  0xb7   : > { %9319 = vmatprep.mubr.bf16.mxu0 %v11550_v53  ;;  %9348 = vmatpush3.bf16.msra.mxu0 %v10962_v46  ;;  %v11599_v46 = vpack.c.bf16 %v1038_v44, %v1037_v43  ;;  %v10999_v43 = vld [vmem:[%s13080_s1 + $0x208] sm:$0xff]   ;;  %v8058_v44 = vld [vmem:[%s11285_s28 + $0x79] sm:$0xff] }
  0xb8   : > { %9349 = vmatprep.subr.bf16.mxu0 %v10963_v52 }
  0xbb   : > { %9350 = vmatpush3.bf16.msra.mxu0 %v10963_v52  ;;  %v1039_v52 = vld [vmem:[%s11285_s28 + $0x16a] sm:$0xff] }
  0xbc   : > { %9351 = vmatprep.subr.bf16.mxu0 %v10964_v0  ;;  %v11605_v57 = vpack.c.bf16 %v1040_v56, %v1039_v52  ;;  %v8061_v52 = vld [vmem:[%s11285_s28 + $0x99] sm:$0xff]  ;;  %v11000_v56 = vld [vmem:[%s13080_s1 + $0x210] sm:$0xff]  }
  0xbe   : > { %9320 = vmatmul.mubr.bf16.gmra.mrb[12].mxu0 %v11561_v1 }
  0xbf   : > { %9323 = vmatprep.mubr.bf16.mxu0 %v11566_v6  ;;  %9352 = vmatpush3.bf16.msra.mxu0 %v10964_v0  ;;  %v10970_v0 = vld [vmem:[%s13080_s1 + $0x120] sm:$0xff]  }
  0xc0   : > { %9353 = vmatprep.subr.bf16.mxu0 %v10965_v5 }
  0xc3   : > { %9354 = vmatpush3.bf16.msra.mxu0 %v10965_v5  ;;  %v10971_v5 = vld [vmem:[%s13080_s1 + $0x128] sm:$0xff]  }
  0xc4   : > { %9387 = vmatprep.subr.bf16.mxu0 %v10966_v14 }
  0xc6   : > { %9324 = vmatmul.mubr.bf16.gmra.mrb[16].mxu0 %v11577_v15 }
  0xc7   : > { %9327 = vmatprep.mubr.bf16.mxu0 %v11579_v19 }
  0xce   : > { %9328 = vmatmul.mubr.bf16.gmra.mrb[20].mxu0 %v11587_v31 }
  0xcf   : > { %9331 = vmatprep.mubr.bf16.mxu0 %v11589_v34 }
  0xd6   : > { %9332 = vmatmul.mubr.bf16.gmra.mrb[24].mxu0 %v11597_v45 }
  0xd7   : > { %9335 = vmatprep.mubr.bf16.mxu0 %v11599_v46 }
  0xde   : > { %9336 = vmatmul.mubr.bf16.gmra.mrb[28].mxu0 %v11605_v57 }
  0xdf   : > { %9355 = vmatprep.mubr.bf16.mxu0 %v11412_v8  ;;  %v10969_v8 = vld [vmem:[%s13080_s1 + $0x118] sm:$0xff]  }
  0xe6   : > { %9356 = vmatmul.mubr.bf16.vlgmr.msra.gmra.mrb[0].mxu0 %v11417_v10 }
  0xe7   : > { %9359 = vmatprep.mubr.bf16.mxu0 %v11428_v18  ;;  %9388 = vmatpush3.bf16.msra.mxu0 %v10966_v14  ;;  %v7859_v14 = vld [vmem:[%s11285_s28 + $0x188] sm:$0xff] }
  0xe8   : > { %9389 = vmatprep.subr.bf16.mxu0 %v10967_v62  ;;  %v11649_v22 = vpack.c.bf16 %v7859_v14, %v7858_v13  ;;  %v11003_v14 = vld [vmem:[%s13080_s1 + $0x228] sm:$0xff]  }
  0xeb   : > { %9390 = vmatpush3.bf16.msra.mxu0 %v10967_v62 }
  0xec   : > { %9391 = vmatprep.subr.bf16.mxu0 %v10968_v63 }
  0xee   : > { %9360 = vmatmul.mubr.bf16.gmra.mrb[4].mxu0 %v11433_v20 }
  0xef   : > { %9363 = vmatprep.mubr.bf16.mxu0 %v11444_v28  ;;  %9392 = vmatpush3.bf16.msra.mxu0 %v10968_v63  ;;  %v11001_v63 = vld [vmem:[%s13080_s1 + $0x218] sm:$0xff]  }
  0xf0   : > { %9393 = vmatprep.subr.bf16.mxu0 %v10969_v8 }
  0xf3   : > { %9394 = vmatpush3.bf16.msra.mxu0 %v10969_v8  ;;  %v8062_v8 = vld [vmem:[%s11285_s28 + $0xa9] sm:$0xff] }
  0xf4   : > { %9395 = vmatprep.subr.bf16.mxu0 %v10970_v0 }
  0xf6   : > { %9364 = vmatmul.mubr.bf16.gmra.mrb[8].mxu0 %v11449_v30 }
  0xf7   : > { %9367 = vmatprep.mubr.bf16.mxu0 %v11460_v38  ;;  %9396 = vmatpush3.bf16.msra.mxu0 %v10970_v0  ;;  %v8063_v0 = vld [vmem:[%s11285_s28 + $0xb1] sm:$0xff] }
  0xf8   : > { %9397 = vmatprep.subr.bf16.mxu0 %v10971_v5 }
  0xfb   : > { %9398 = vmatpush3.bf16.msra.mxu0 %v10971_v5  ;;  %v8064_v5 = vld [vmem:[%s11285_s28 + $0xc1] sm:$0xff] }
  0xfc   : > { %9399 = vmatprep.subr.bf16.mxu0 %v10972_v7 }
  0xfe   : > { %9368 = vmatmul.mubr.bf16.gmra.mrb[12].mxu0 %v11465_v41 }
  0xff   : > { %9371 = vmatprep.mubr.bf16.mxu0 %v11476_v50  ;;  %9400 = vmatpush3.bf16.msra.mxu0 %v10972_v7  ;;  %v8065_v7 = vld [vmem:[%s11285_s28 + $0xc9] sm:$0xff] }
 0x100   : > { %9401 = vmatprep.subr.bf16.mxu0 %v10973_v9  ;;  %v2579_v13 = vpack.c.bf16 %v8065_v7, %v8064_v5  ;;  %v8127_v5 = vld [vmem:[%s11285_s28 + $0x112] sm:$0xff]  ;;  %v8128_v7 = vld [vmem:[%s11285_s28 + $0x122] sm:$0xff] }
 0x103   : > { %9402 = vmatpush3.bf16.msra.mxu0 %v10973_v9  ;;  %v11002_v9 = vld [vmem:[%s13080_s1 + $0x220] sm:$0xff]  }
 0x104   : > { %9435 = vmatprep.subr.bf16.mxu0 %v10974_v12 }
 0x106   : > { %9372 = vmatmul.mubr.bf16.gmra.mrb[16].mxu0 %v11478_v51 }
 0x107   : > { %9375 = vmatprep.mubr.bf16.mxu0 %v11486_v58 }
 0x10e   : > { %9376 = vmatmul.mubr.bf16.gmra.mrb[20].mxu0 %v11488_v59 }
 0x10f   : > { %9379 = vmatprep.mubr.bf16.mxu0 %v11496_v3 }
 0x116   : > { %9380 = vmatmul.mubr.bf16.gmra.mrb[24].mxu0 %v11498_v4 }
 0x117   : > { %9383 = vmatprep.mubr.bf16.mxu0 %v11506_v11 }
 0x11e   : > { %9384 = vmatmul.mubr.bf16.gmra.mrb[28].mxu0 %v11649_v22 }
 0x11f   : > { %9403 = vmatprep.mubr.bf16.mxu0 %v11311_v16  ;;  %v10977_v16 = vld [vmem:[%s13080_s1 + $0x158] sm:$0xff]  }
 0x126   : > { %9404 = vmatmul.mubr.bf16.vlgmr.msra.gmra.mrb[0].mxu0 %v11313_v17  ;;  %v10978_v17 = vld [vmem:[%s13080_s1 + $0x160] sm:$0xff]  }
 0x127   : > { %9407 = vmatprep.mubr.bf16.mxu0 %v11327_v24  ;;  %9436 = vmatpush3.bf16.msra.mxu0 %v10974_v12  ;;  %v10979_v24 = vld [vmem:[%s13080_s1 + $0x168] sm:$0xff]   ;;  %v2578_v12 = vpack.c.bf16 %v8063_v0, %v8062_v8 }
 0x128   : > { %9437 = vmatprep.subr.bf16.mxu0 %v10975_v26  ;;  %v8126_v0 = vld [vmem:[%s11285_s28 + $0x10a] sm:$0xff] }
 0x12b   : > { %9438 = vmatpush3.bf16.msra.mxu0 %v10975_v26  ;;  %v8067_v26 = vld [vmem:[%s11285_s28 + $0xe1] sm:$0xff] }
 0x12c   : > { %9439 = vmatprep.subr.bf16.mxu0 %v10976_v27 }
 0x12e   : > { %9408 = vmatmul.mubr.bf16.gmra.mrb[4].mxu0 %v11329_v25  ;;  %v10980_v25 = vld [vmem:[%s13080_s1 + $0x170] sm:$0xff]  }
 0x12f   : > { %9411 = vmatprep.mubr.bf16.mxu0 %v11343_v32  ;;  %9440 = vmatpush3.bf16.msra.mxu0 %v10976_v27  ;;  %v10981_v32 = vld [vmem:[%s13080_s1 + $0x178] sm:$0xff]  }
 0x130   : > { %9441 = vmatprep.subr.bf16.mxu0 %v10977_v16  ;;  %v8068_v27 = vld [vmem:[%s11285_s28 + $0xf1] sm:$0xff] }
 0x133   : > { %9442 = vmatpush3.bf16.msra.mxu0 %v10977_v16  ;;  %v8069_v16 = vld [vmem:[%s11285_s28 + $0xf9] sm:$0xff] }
 0x134   : > { %9443 = vmatprep.subr.bf16.mxu0 %v10978_v17 }
 0x136   : > { %9412 = vmatmul.mubr.bf16.gmra.mrb[8].mxu0 %v11345_v33  ;;  %v10982_v33 = vld [vmem:[%s13080_s1 + $0x180] sm:$0xff]  }
 0x137   : > { %9415 = vmatprep.mubr.bf16.mxu0 %v11359_v40  ;;  %9444 = vmatpush3.bf16.msra.mxu0 %v10978_v17  ;;  %v7914_v40 = vld [vmem:[%s11285_s28 + $0x181] sm:$0xff]  ;;  %v11004_v17 = vld [vmem:[%s13080_s1 + $0x230] sm:$0xff]  }
 0x138   : > { %9445 = vmatprep.subr.bf16.mxu0 %v10979_v24 }
 0x13b   : > { %9446 = vmatpush3.bf16.msra.mxu0 %v10979_v24 }
 0x13c   : > { %9447 = vmatprep.subr.bf16.mxu0 %v10980_v25 }
 0x13e   : > { %9416 = vmatmul.mubr.bf16.gmra.mrb[12].mxu0 %v11364_v42  ;;  %v7915_v42 = vld [vmem:[%s11285_s28 + $0x189] sm:$0xff] }
 0x13f   : > { %9419 = vmatprep.mubr.bf16.mxu0 %v11375_v48  ;;  %9448 = vmatpush3.bf16.msra.mxu0 %v10980_v25  ;;  %v11693_v48 = vpack.c.bf16 %v7915_v42, %v7914_v40  ;;  %v2581_v25 = vpack.c.bf16 %v8069_v16, %v8068_v27  ;;  %v8071_v40 = vld [vmem:[%s11285_s28 + $0x111] sm:$0xff]  ;;  %v8072_v42 = vld [vmem:[%s11285_s28 + $0x121] sm:$0xff] }
 0x140   : > { %9449 = vmatprep.subr.bf16.mxu0 %v10981_v32  ;;  %v8133_v27 = vld [vmem:[%s11285_s28 + $0x15a] sm:$0xff] }
 0x143   : > { %9450 = vmatpush3.bf16.msra.mxu0 %v10981_v32  ;;  %v11005_v32 = vld [vmem:[%s13080_s1 + $0x238] sm:$0xff]  }
 0x144   : > { %9483 = vmatprep.subr.bf16.mxu0 %v10982_v33 }
 0x146   : > { %9420 = vmatmul.mubr.bf16.gmra.mrb[16].mxu0 %v11377_v49  ;;  %v10983_v49 = vld [vmem:[%s13080_s1 + $0x188] sm:$0xff]  }
 0x147   : > { %9423 = vmatprep.mubr.bf16.mxu0 %v11385_v54  ;;  %v10984_v54 = vld [vmem:[%s13080_s1 + $0x190] sm:$0xff]  }
 0x14e   : > { %9424 = vmatmul.mubr.bf16.gmra.mrb[20].mxu0 %v11387_v55  ;;  %v10985_v55 = vld [vmem:[%s13080_s1 + $0x198] sm:$0xff]  }
 0x14f   : > { %9427 = vmatprep.mubr.bf16.mxu0 %v11395_v60  ;;  %v10986_v60 = vld [vmem:[%s13080_s1 + $0x1a0] sm:$0xff]  }
 0x156   : > { %9428 = vmatmul.mubr.bf16.gmra.mrb[24].mxu0 %v11397_v61  ;;  %v10987_v61 = vld [vmem:[%s13080_s1 + $0x1a8] sm:$0xff]  }
 0x157   : > { %9431 = vmatprep.mubr.bf16.mxu0 %v11405_v2  ;;  %v10988_v2 = vld [vmem:[%s13080_s1 + $0x1b0] sm:$0xff]  }
 0x15e   : > { %9432 = vmatmul.mubr.bf16.gmra.mrb[28].mxu0 %v11693_v48 }
 0x15f   : > { %9451 = vmatprep.mubr.bf16.mxu0 %v11513_v21  ;;  %v10989_v21 = vld [vmem:[%s13080_s1 + $0x1b8] sm:$0xff]  }
 0x166   : > { %9452 = vmatmul.mubr.bf16.vlgmr.msra.gmra.mrb[0].mxu0 %v11518_v23  ;;  %v10990_v23 = vld [vmem:[%s13080_s1 + $0x1c0] sm:$0xff]  }
 0x167   : > { %9455 = vmatprep.mubr.bf16.mxu0 %v11529_v35  ;;  %9484 = vmatpush3.bf16.msra.mxu0 %v10982_v33  ;;  %v7970_v35 = vld [vmem:[%s11285_s28 + $0x182] sm:$0xff] }
 0x168   : > { %9485 = vmatprep.subr.bf16.mxu0 %v10983_v49  ;;  %v8070_v33 = vld [vmem:[%s11285_s28 + $0x109] sm:$0xff] }
 0x16b   : > { %9486 = vmatpush3.bf16.msra.mxu0 %v10983_v49  ;;  %v8073_v49 = vld [vmem:[%s11285_s28 + $0x129] sm:$0xff] }
 0x16c   : > { %9487 = vmatprep.subr.bf16.mxu0 %v10984_v54 }
 0x16e   : > { %9456 = vmatmul.mubr.bf16.gmra.mrb[4].mxu0 %v11534_v37  ;;  %v7971_v37 = vld [vmem:[%s11285_s28 + $0x18a] sm:$0xff] }
 0x16f   : > { %9459 = vmatprep.mubr.bf16.mxu0 %v11545_v47  ;;  %9488 = vmatpush3.bf16.msra.mxu0 %v10984_v54  ;;  %v11737_v47 = vpack.c.bf16 %v7971_v37, %v7970_v35  ;;  %v11006_v54 = vld [vmem:[%s13082_s3 + $0x40] sm:$0xff]  }
 0x170   : > { %9489 = vmatprep.subr.bf16.mxu0 %v10985_v55 }
 0x173   : > { %9490 = vmatpush3.bf16.msra.mxu0 %v10985_v55  ;;  %v2582_v55 = vpack.c.bf16 %v8071_v40, %v8070_v33  ;;  %v8138_v33 = vld [vmem:[%s11285_s28 + $0x19a] sm:$0xff]  ;;  %v8139_v40 = vld [vmem:[%s11285_s28 + $0x1a2] sm:$0xff] }
 0x174   : > { %9491 = vmatprep.subr.bf16.mxu0 %v10986_v60 }
 0x176   : > { %9460 = vmatmul.mubr.bf16.gmra.mrb[8].mxu0 %v11550_v53  ;;  %v10991_v53 = vld [vmem:[%s13080_s1 + $0x1c8] sm:$0xff]  }
 0x177   : > { %9463 = vmatprep.mubr.bf16.mxu0 %v11561_v1  ;;  %9492 = vmatpush3.bf16.msra.mxu0 %v10986_v60  ;;  %v10992_v1 = vld [vmem:[%s13080_s1 + $0x1d0] sm:$0xff]   ;;  %v2583_v60 = vpack.c.bf16 %v8073_v49, %v8072_v42  ;;  %v2894_v42 = vpack.c.bf16 %v8139_v40, %v8138_v33  ;;  %v11012_v49 = vld [vmem:[%s13082_s3 + $0x58] sm:$0xff]  }
 0x178   : > { %9493 = vmatprep.subr.bf16.mxu0 %v10987_v61 }
 0x17b   : > { %9494 = vmatpush3.bf16.msra.mxu0 %v10987_v61  ;;  %v8074_v61 = vld [vmem:[%s11285_s28 + $0x139] sm:$0xff] }
 0x17c   : > { %9495 = vmatprep.subr.bf16.mxu0 %v10988_v2 }
 0x17e   : > { %9464 = vmatmul.mubr.bf16.gmra.mrb[12].mxu0 %v11566_v6  ;;  %v8053_v6 = vld [vmem:[%s11285_s28 + $0x39] sm:$0xff] }
 0x17f   : > { %9467 = vmatprep.mubr.bf16.mxu0 %v11577_v15  ;;  %9496 = vmatpush3.bf16.msra.mxu0 %v10988_v2  ;;  %v8075_v2 = vld [vmem:[%s11285_s28 + $0x141] sm:$0xff] }
 0x180   : > { %9497 = vmatprep.subr.bf16.mxu0 %v10989_v21  ;;  %v2584_v35 = vpack.c.bf16 %v8075_v2, %v8074_v61  ;;  %v11018_v61 = vld [vmem:[%s13082_s3 + $0x70] sm:$0xff]   ;;  %v11017_v2 = vld [vmem:[%s13082_s3 + $0xa8] sm:$0xff]  }
 0x183   : > { %9498 = vmatpush3.bf16.msra.mxu0 %v10989_v21  ;;  %v8076_v21 = vld [vmem:[%s11285_s28 + $0x151] sm:$0xff] }
 0x184   : > { %9531 = vmatprep.subr.bf16.mxu0 %v10990_v23 }
 0x186   : > { %9468 = vmatmul.mubr.bf16.gmra.mrb[16].mxu0 %v11579_v19 }
 0x187   : > { %9471 = vmatprep.mubr.bf16.mxu0 %v11587_v31  ;;  %v8057_v31 = vld [vmem:[%s11285_s28 + $0x69] sm:$0xff] }
 0x188   : > { %v2575_v39 = vpack.c.bf16 %v8057_v31, %v8056_v29  ;;  %v11010_v29 = vld [vmem:[%s13082_s3 + $0x50] sm:$0xff]  }
 0x18e   : > { %9472 = vmatmul.mubr.bf16.gmra.mrb[20].mxu0 %v11589_v34 }
 0x18f   : > { %9475 = vmatprep.mubr.bf16.mxu0 %v11597_v45  ;;  %v8059_v45 = vld [vmem:[%s11285_s28 + $0x81] sm:$0xff] }
 0x196   : > { %9476 = vmatmul.mubr.bf16.gmra.mrb[24].mxu0 %v11599_v46  ;;  %v8060_v46 = vld [vmem:[%s11285_s28 + $0x91] sm:$0xff] }
 0x197   : > { %9479 = vmatprep.mubr.bf16.mxu0 %v11605_v57  ;;  %v2576_v57 = vpack.c.bf16 %v8059_v45, %v8058_v44  ;;  %v2577_v62 = vpack.c.bf16 %v8061_v52, %v8060_v46  ;;  %v8121_v44 = vld [vmem:[%s11285_s28 + $0xca] sm:$0xff]  ;;  %v8122_v52 = vld [vmem:[%s11285_s28 + $0xda] sm:$0xff] }
 0x19e   : > { %9480 = vmatmul.mubr.bf16.gmra.mrb[28].mxu0 %v11737_v47 }
 0x19f   : > { %9499 = vmatprep.mubr.bf16.mxu0 %v11417_v10  ;;  %v10993_v10 = vld [vmem:[%s13080_s1 + $0x1d8] sm:$0xff]  }
 0x1a6   : > { %9500 = vmatmul.mubr.bf16.vlgmr.msra.gmra.mrb[0].mxu0 %v11428_v18  ;;  %v10994_v18 = vld [vmem:[%s13080_s1 + $0x1e0] sm:$0xff]  }
 0x1a7   : > { %9503 = vmatprep.mubr.bf16.mxu0 %v11433_v20  ;;  %9532 = vmatpush3.bf16.msra.mxu0 %v10990_v23  ;;  %v10995_v20 = vld [vmem:[%s13080_s1 + $0x1e8] sm:$0xff]   ;;  %v8077_v23 = vld [vmem:[%s11285_s28 + $0x159] sm:$0xff] }
 0x1a8   : > { %9533 = vmatprep.subr.bf16.mxu0 %v10991_v53  ;;  %v2585_v37 = vpack.c.bf16 %v8077_v23, %v8076_v21  ;;  %v11020_v21 = vld [vmem:[%s13082_s3 + $0x78] sm:$0xff]  }
 0x1ab   : > { %9534 = vmatpush3.bf16.msra.mxu0 %v10991_v53  ;;  %v8078_v53 = vld [vmem:[%s11285_s28 + $0x169] sm:$0xff] }
 0x1ac   : > { %9535 = vmatprep.subr.bf16.mxu0 %v10992_v1 }
 0x1ae   : > { %9504 = vmatmul.mubr.bf16.gmra.mrb[4].mxu0 %v11444_v28  ;;  %v10996_v28 = vld [vmem:[%s13080_s1 + $0x1f0] sm:$0xff]  }
 0x1af   : > { %9507 = vmatprep.mubr.bf16.mxu0 %v11449_v30  ;;  %9536 = vmatpush3.bf16.msra.mxu0 %v10992_v1  ;;  %v10997_v30 = vld [vmem:[%s13080_s1 + $0x1f8] sm:$0xff]  }
 0x1b0   : > { %9537 = vmatprep.subr.bf16.mxu0 %v10993_v10  ;;  %v8079_v1 = vld [vmem:[%s11285_s28 + $0x171] sm:$0xff] }
 0x1b3   : > { %9538 = vmatpush3.bf16.msra.mxu0 %v10993_v10  ;;  %v2586_v10 = vpack.c.bf16 %v8079_v1, %v8078_v53  ;;  %v11019_v53 = vld [vmem:[%s13082_s3 + $0xb0] sm:$0xff]   ;;  %v11021_v1 = vld [vmem:[%s13082_s3 + $0xb8] sm:$0xff]  }
 0x1b4   : > { %9539 = vmatprep.subr.bf16.mxu0 %v10994_v18 }
 0x1b6   : > { %9508 = vmatmul.mubr.bf16.gmra.mrb[8].mxu0 %v11460_v38  ;;  %v11773_v38 = vld [vmem:[%s13080_s1 + $0x200] sm:$0xff]  }
 0x1b7   : > { %9511 = vmatprep.mubr.bf16.mxu0 %v11465_v41  ;;  %9540 = vmatpush3.bf16.msra.mxu0 %v10994_v18  ;;  %v8026_v41 = vld [vmem:[%s11285_s28 + $0x198] sm:$0xff] }
 0x1b8   : > { %9541 = vmatprep.subr.bf16.mxu0 %v10995_v20  ;;  %v8082_v18 = vld [vmem:[%s11285_s28 + $0x199] sm:$0xff] }
 0x1bb   : > { %9542 = vmatpush3.bf16.msra.mxu0 %v10995_v20  ;;  %v8083_v20 = vld [vmem:[%s11285_s28 + $0x1a1] sm:$0xff] }
 0x1bc   : > { %9543 = vmatprep.subr.bf16.mxu0 %v10996_v28 }
 0x1be   : > { %9512 = vmatmul.mubr.bf16.gmra.mrb[12].mxu0 %v11476_v50  ;;  %v8027_v50 = vld [vmem:[%s11285_s28 + $0x1a0] sm:$0xff] }
 0x1bf   : > { %9515 = vmatprep.mubr.bf16.mxu0 %v11478_v51  ;;  %9544 = vmatpush3.bf16.msra.mxu0 %v10996_v28  ;;  %v8052_v51 = vld [vmem:[%s11285_s28 + $0x31] sm:$0xff]  ;;  %v2282_v15 = vpack.c.bf16 %v8027_v50, %v8026_v41 }
 0x1c0   : > { %9545 = vmatprep.subr.bf16.mxu0 %v10997_v30  ;;  %v2573_v19 = vpack.c.bf16 %v8053_v6, %v8052_v51  ;;  %v8108_v28 = vld [vmem:[%s11285_s28 + $0x32] sm:$0xff]  ;;  %v8110_v50 = vld [vmem:[%s11285_s28 + $0x4a] sm:$0xff]  ;;  %v8112_v6 = vld [vmem:[%s11285_s28 + $0x62] sm:$0xff] }
 0x1c1   : > { %v8111_v51 = vld [vmem:[%s11285_s28 + $0x52] sm:$0xff] }
 0x1c3   : > { %9546 = vmatpush3.bf16.msra.mxu0 %v10997_v30  ;;  %v8109_v30 = vld [vmem:[%s11285_s28 + $0x3a] sm:$0xff] }
 0x1c4   : > { %9579 = vmatprep.subr.bf16.mxu0 %v11773_v38  ;;  %v2879_v41 = vpack.c.bf16 %v8109_v30, %v8108_v28  ;;  %v11022_v28 = vld [vmem:[%s13082_s3] sm:$0xff]  }
 0x1c5   : > { %v12010_v30 = vld [vmem:[%s13082_s3 + $0xc0] sm:$0xff]  }
 0x1c6   : > { %9516 = vmatmul.mubr.bf16.gmra.mrb[16].mxu0 %v11486_v58  ;;  %v11789_v58 = vld [vmem:[%s13082_s3 + $0x80] sm:$0xff]  }
 0x1c7   : > { %9519 = vmatprep.mubr.bf16.mxu0 %v11488_v59  ;;  %v11792_v59 = vld [vmem:[%s11285_s28 + $0x49] sm:$0xff]  ;;  %9723 = vmatprep.subr.bf16.mxu1 %v11789_v58 }
 0x1c8   : > { %9724 = vmatpush3.bf16.msra.mxu1 %v11789_v58 }
 0x1ce   : > { %9520 = vmatmul.mubr.bf16.gmra.mrb[20].mxu0 %v11496_v3  ;;  %v11795_v3 = vld [vmem:[%s11285_s28 + $0x51] sm:$0xff] }
 0x1cf   : > { %9523 = vmatprep.mubr.bf16.mxu0 %v11498_v4  ;;  %v11800_v4 = vld [vmem:[%s13082_s3 + $0x88] sm:$0xff]   ;;  %v2574_v34 = vpack.c.bf16 %v11795_v3, %v11792_v59  ;;  %v8114_v59 = vld [vmem:[%s11285_s28 + $0x7a] sm:$0xff] }
 0x1d0   : > { %9725 = vmatprep.subr.bf16.mxu1 %v11800_v4  ;;  %v8115_v3 = vld [vmem:[%s11285_s28 + $0x82] sm:$0xff] }
 0x1d1   : > { %9726 = vmatpush3.bf16.msra.mxu1 %v11800_v4  ;;  %v8116_v4 = vld [vmem:[%s11285_s28 + $0x92] sm:$0xff]  ;;  %v2882_v31 = vpack.c.bf16 %v8115_v3, %v8114_v59 }
 0x1d2   : > { %9727 = vmatprep.subr.bf16.mxu1 %v11011_v36 }
 0x1d5   : > { %9728 = vmatpush3.bf16.msra.mxu1 %v11011_v36  ;;  %v8118_v36 = vld [vmem:[%s11285_s28 + $0xaa] sm:$0xff] }
 0x1d6   : > { %9524 = vmatmul.mubr.bf16.gmra.mrb[24].mxu0 %v11506_v11  ;;  %v11200_v11 = vmov 0.0  }
 0x1d7   : > { %9527 = vmatprep.mubr.bf16.mxu0 %v11649_v22  ;;  %394 = vst [vmem:[#allocation2 + $0x30] sm:$0xff] %v11200_v11  ;;  %395 = vst [vmem:[#allocation2 + $0x38] sm:$0xff] %v11200_v11  ;;  %v8066_v22 = vld [vmem:[%s11285_s28 + $0xd9] sm:$0xff] }
 0x1d8   : > { %388 = vst [vmem:[#allocation2] sm:$0xff] %v11200_v11  ;;  %389 = vst [vmem:[#allocation2 + $0x8] sm:$0xff] %v11200_v11  ;;  %v2580_v24 = vpack.c.bf16 %v8067_v26, %v8066_v22  ;;  %v8131_v22 = vld [vmem:[%s11285_s28 + $0x142] sm:$0xff]  ;;  %v8132_v26 = vld [vmem:[%s11285_s28 + $0x152] sm:$0xff] }
 0x1d9   : > { %390 = vst [vmem:[#allocation2 + $0x10] sm:$0x3] %v11200_v11  ;;  %391 = vst [vmem:[#allocation2 + $0x18] sm:$0xff] %v11200_v11 }
 0x1da   : > { %392 = vst [vmem:[#allocation2 + $0x20] sm:$0xff] %v11200_v11  ;;  %393 = vst [vmem:[#allocation2 + $0x28] sm:$0x3] %v11200_v11 }
 0x1db   : > { %396 = vst [vmem:[#allocation2 + $0x40] sm:$0x3] %v11200_v11  ;;  %397 = vst [vmem:[#allocation2 + $0x48] sm:$0xff] %v11200_v11 }
 0x1dc   : > { %398 = vst [vmem:[#allocation2 + $0x50] sm:$0xff] %v11200_v11  ;;  %399 = vst [vmem:[#allocation2 + $0x58] sm:$0x3] %v11200_v11 }
 0x1dd   : > { %400 = vst [vmem:[#allocation2 + $0x60] sm:$0xff] %v11200_v11  ;;  %401 = vst [vmem:[#allocation2 + $0x68] sm:$0xff] %v11200_v11 }
 0x1de   : > { %9528 = vmatmul.mubr.bf16.gmra.mrb[28].mxu0 %v2282_v15  ;;  %402 = vst [vmem:[#allocation2 + $0x70] sm:$0x3] %v11200_v11  ;;  %403 = vst [vmem:[#allocation2 + $0x78] sm:$0xff] %v11200_v11  ;;  %v8113_v15 = vld [vmem:[%s11285_s28 + $0x6a] sm:$0xff] }
 0x1df   : > { %9547 = vmatprep.mubr.bf16.mxu0 %v2573_v19  ;;  %404 = vst [vmem:[#allocation2 + $0x80] sm:$0xff] %v11200_v11  ;;  %405 = vst [vmem:[#allocation2 + $0x88] sm:$0x3] %v11200_v11  ;;  %v2880_v19 = vpack.c.bf16 %v8111_v51, %v8110_v50  ;;  %v2881_v58 = vpack.c.bf16 %v8113_v15, %v8112_v6  ;;  %v3353_v23 = vld [vmem:[#allocation2 + $0x1] sm:$0xff] }
 0x1e0   : > { %406 = vst [vmem:[#allocation2 + $0x90] sm:$0xff] %v11200_v11  ;;  %407 = vst [vmem:[#allocation2 + $0x98] sm:$0xff] %v11200_v11 }
 0x1e1   : > { %408 = vst [vmem:[#allocation2 + $0xa0] sm:$0x3] %v11200_v11  ;;  %409 = vst [vmem:[#allocation2 + $0xa8] sm:$0xff] %v11200_v11 }
 0x1e2   : > { %410 = vst [vmem:[#allocation2 + $0xb0] sm:$0xff] %v11200_v11  ;;  %411 = vst [vmem:[#allocation2 + $0xb8] sm:$0x3] %v11200_v11 }
 0x1e3   : > { %412 = vst [vmem:[#allocation2 + $0xc0] sm:$0xff] %v11200_v11  ;;  %413 = vst [vmem:[#allocation2 + $0xc8] sm:$0xff] %v11200_v11 }
 0x1e4   : > { %414 = vst [vmem:[#allocation2 + $0xd0] sm:$0x3] %v11200_v11  ;;  %415 = vst [vmem:[#allocation2 + $0xd8] sm:$0xff] %v11200_v11 }
 0x1e5   : > { %416 = vst [vmem:[#allocation2 + $0xe0] sm:$0xff] %v11200_v11  ;;  %417 = vst [vmem:[#allocation2 + $0xe8] sm:$0x3] %v11200_v11 }
 0x1e6   : > { %418 = vst [vmem:[#allocation2 + $0xf0] sm:$0xff] %v11200_v11  ;;  %419 = vst [vmem:[#allocation2 + $0xf8] sm:$0xff] %v11200_v11  ;;  %9548 = vmatmul.mubr.bf16.vlgmr.msra.gmra.mrb[0].mxu0 %v2574_v34 }
 0x1e7   : > { %420 = vst [vmem:[#allocation2 + $0x100] sm:$0x3] %v11200_v11  ;;  %421 = vst [vmem:[#allocation2 + $0x108] sm:$0xff] %v11200_v11  ;;  %9551 = vmatprep.mubr.bf16.mxu0 %v2575_v39  ;;  %9580 = vmatpush3.bf16.msra.mxu0 %v11773_v38  ;;  %v2588_v38 = vpack.c.bf16 %v8083_v20, %v8082_v18  ;;  %v8119_v39 = vld [vmem:[%s11285_s28 + $0xb2] sm:$0xff]  ;;  %v3837_v18 = vld [vmem:[#allocation2 + $0xa] sm:$0xff] }
 0x1e8   : > { %422 = vst [vmem:[#allocation2 + $0x110] sm:$0xff] %v11200_v11  ;;  %423 = vst [vmem:[#allocation2 + $0x118] sm:$0x3] %v11200_v11  ;;  %9581 = vmatprep.subr.bf16.mxu0 %v10999_v43  ;;  %v2884_v45 = vpack.c.bf16 %v8119_v39, %v8118_v36 }
 0x1e9   : > { %424 = vst [vmem:[#allocation2 + $0x120] sm:$0xff] %v11200_v11  ;;  %425 = vst [vmem:[#allocation2 + $0x128] sm:$0xff] %v11200_v11 }
 0x1ea   : > { %426 = vst [vmem:[#allocation2 + $0x130] sm:$0x3] %v11200_v11  ;;  %427 = vst [vmem:[#allocation2 + $0x138] sm:$0xff] %v11200_v11 }
 0x1eb   : > { %428 = vst [vmem:[#allocation2 + $0x140] sm:$0xff] %v11200_v11  ;;  %429 = vst [vmem:[#allocation2 + $0x148] sm:$0x3] %v11200_v11  ;;  %9582 = vmatpush3.bf16.msra.mxu0 %v10999_v43  ;;  %v8120_v43 = vld [vmem:[%s11285_s28 + $0xc2] sm:$0xff] }
 0x1ec   : > { %430 = vst [vmem:[#allocation2 + $0x150] sm:$0xff] %v11200_v11  ;;  %431 = vst [vmem:[#allocation2 + $0x158] sm:$0xff] %v11200_v11  ;;  %9583 = vmatprep.subr.bf16.mxu0 %v11000_v56  ;;  %v2885_v46 = vpack.c.bf16 %v8121_v44, %v8120_v43 }
 0x1ed   : > { %432 = vst [vmem:[#allocation2 + $0x160] sm:$0x3] %v11200_v11  ;;  %433 = vst [vmem:[#allocation2 + $0x168] sm:$0xff] %v11200_v11 }
 0x1ee   : > { %434 = vst [vmem:[#allocation2 + $0x170] sm:$0xff] %v11200_v11  ;;  %435 = vst [vmem:[#allocation2 + $0x178] sm:$0x3] %v11200_v11  ;;  %9552 = vmatmul.mubr.bf16.gmra.mrb[4].mxu0 %v2576_v57  ;;  %v8124_v57 = vld [vmem:[%s11285_s28 + $0xf2] sm:$0xff] }
 0x1ef   : > { %436 = vst [vmem:[#allocation2 + $0x180] sm:$0xff] %v11200_v11  ;;  %437 = vst [vmem:[#allocation2 + $0x188] sm:$0xff] %v11200_v11  ;;  %9555 = vmatprep.mubr.bf16.mxu0 %v2577_v62  ;;  %9584 = vmatpush3.bf16.msra.mxu0 %v11000_v56  ;;  %v8123_v56 = vld [vmem:[%s11285_s28 + $0xe2] sm:$0xff]  ;;  %v8125_v62 = vld [vmem:[%s11285_s28 + $0xfa] sm:$0xff] }
 0x1f0   : > { %438 = vst [vmem:[#allocation2 + $0x190] sm:$0x3] %v11200_v11  ;;  %439 = vst [vmem:[#allocation2 + $0x198] sm:$0xff] %v11200_v11  ;;  %9585 = vmatprep.subr.bf16.mxu0 %v11001_v63  ;;  %v2887_v8 = vpack.c.bf16 %v8125_v62, %v8124_v57  ;;  %v11024_v57 = vld [vmem:[%s13082_s3 + $0x8] sm:$0xff]  }
 0x1f1   : > { %440 = vst [vmem:[#allocation2 + $0x1a0] sm:$0xff] %v11200_v11  ;;  %441 = vst [vmem:[#allocation2 + $0x1a8] sm:$0x3] %v11200_v11 }
 0x1f2   : > { %442 = vst [vmem:[#allocation3] sm:$0xff] %v11200_v11  ;;  %443 = vst [vmem:[#allocation3 + $0x8] sm:$0x3] %v11200_v11 }
 0x1f3   : > { %444 = vst [vmem:[#allocation3 + $0x10] sm:$0xff] %v11200_v11  ;;  %445 = vst [vmem:[#allocation3 + $0x18] sm:$0x3] %v11200_v11  ;;  %9586 = vmatpush3.bf16.msra.mxu0 %v11001_v63  ;;  %v2886_v63 = vpack.c.bf16 %v8123_v56, %v8122_v52 }
 0x1f4   : > { %446 = vst [vmem:[#allocation3 + $0x20] sm:$0xff] %v11200_v11  ;;  %447 = vst [vmem:[#allocation3 + $0x28] sm:$0x3] %v11200_v11  ;;  %9587 = vmatprep.subr.bf16.mxu0 %v11002_v9 }
 0x1f5   : > { %448 = vst [vmem:[#allocation3 + $0x30] sm:$0xff] %v11200_v11  ;;  %449 = vst [vmem:[#allocation3 + $0x38] sm:$0x3] %v11200_v11 }
 0x1f6   : > { %450 = vst [vmem:[#allocation3 + $0x40] sm:$0xff] %v11200_v11  ;;  %451 = vst [vmem:[#allocation3 + $0x48] sm:$0x3] %v11200_v11  ;;  %9556 = vmatmul.mubr.bf16.gmra.mrb[8].mxu0 %v2578_v12  ;;  %v2888_v12 = vpack.c.bf16 %v8127_v5, %v8126_v0 }
 0x1f7   : > { %452 = vst [vmem:[#allocation3 + $0x50] sm:$0xff] %v11200_v11  ;;  %453 = vst [vmem:[#allocation3 + $0x58] sm:$0x3] %v11200_v11  ;;  %9559 = vmatprep.mubr.bf16.mxu0 %v2579_v13  ;;  %9588 = vmatpush3.bf16.msra.mxu0 %v11002_v9  ;;  %v8129_v9 = vld [vmem:[%s11285_s28 + $0x12a] sm:$0xff] }
 0x1f8   : > { %454 = vst [vmem:[#allocation3 + $0x60] sm:$0xff] %v11200_v11  ;;  %455 = vst [vmem:[#allocation3 + $0x68] sm:$0x3] %v11200_v11  ;;  %9589 = vmatprep.subr.bf16.mxu0 %v11003_v14  ;;  %v2889_v13 = vpack.c.bf16 %v8129_v9, %v8128_v7 }
 0x1f9   : > { %456 = vst [vmem:[#allocation3 + $0x70] sm:$0xff] %v11200_v11  ;;  %457 = vst [vmem:[#allocation3 + $0x78] sm:$0x3] %v11200_v11 }
 0x1fa   : > { %458 = vst [vmem:[#allocation3 + $0x80] sm:$0xff] %v11200_v11  ;;  %459 = vst [vmem:[#allocation3 + $0x88] sm:$0x3] %v11200_v11 }
 0x1fb   : > { %460 = vst [vmem:[#allocation3 + $0x90] sm:$0xff] %v11200_v11  ;;  %461 = vst [vmem:[#allocation3 + $0x98] sm:$0x3] %v11200_v11  ;;  %9590 = vmatpush3.bf16.msra.mxu0 %v11003_v14  ;;  %v8117_v11 = vld [vmem:[%s11285_s28 + $0x9a] sm:$0xff] }
 0x1fc   : > { %9591 = vmatprep.subr.bf16.mxu0 %v11004_v17  ;;  %v2883_v34 = vpack.c.bf16 %v8117_v11, %v8116_v4  ;;  %v8130_v14 = vld [vmem:[%s11285_s28 + $0x13a] sm:$0xff] }
 0x1fd   : > { %v2890_v16 = vpack.c.bf16 %v8131_v22, %v8130_v14  ;;  %v11026_v14 = vld [vmem:[%s13082_s3 + $0x10] sm:$0xff]  }
 0x1fe   : > { %9560 = vmatmul.mubr.bf16.gmra.mrb[12].mxu0 %v2580_v24  ;;  %v8134_v24 = vld [vmem:[%s11285_s28 + $0x16a] sm:$0xff] }
 0x1ff   : > { %9563 = vmatprep.mubr.bf16.mxu0 %v2581_v25  ;;  %9592 = vmatpush3.bf16.msra.mxu0 %v11004_v17  ;;  %v2891_v17 = vpack.c.bf16 %v8133_v27, %v8132_v26  ;;  %v8135_v25 = vld [vmem:[%s11285_s28 + $0x172] sm:$0xff] }
 0x200   : > { %9593 = vmatprep.subr.bf16.mxu0 %v11005_v32 }
 0x203   : > { %9594 = vmatpush3.bf16.msra.mxu0 %v11005_v32  ;;  %v2892_v32 = vpack.c.bf16 %v8135_v25, %v8134_v24 }
 0x204   : > { %9627 = vmatprep.subr.bf16.mxu0 %v11006_v54 }
 0x206   : > { %9564 = vmatmul.mubr.bf16.gmra.mrb[16].mxu0 %v2582_v55  ;;  %v11016_v55 = vld [vmem:[%s13082_s3 + $0x68] sm:$0xff]  }
 0x207   : > { %9567 = vmatprep.mubr.bf16.mxu0 %v2583_v60  ;;  %v11015_v60 = vld [vmem:[%s13082_s3 + $0xa0] sm:$0xff]  }
 0x20e   : > { %9568 = vmatmul.mubr.bf16.gmra.mrb[20].mxu0 %v2584_v35  ;;  %v3354_v35 = vld [vmem:[#allocation2 + $0x9] sm:$0xff] }
 0x20f   : > { %9571 = vmatprep.mubr.bf16.mxu0 %v2585_v37  ;;  %v3385_v37 = vpack.c.bf16 %v3354_v35, %v3353_v23  ;;  %v11028_v23 = vld [vmem:[%s13082_s3 + $0x18] sm:$0xff]  }
 0x216   : > { %9572 = vmatmul.mubr.bf16.gmra.mrb[24].mxu0 %v2586_v10  ;;  %v3836_v10 = vld [vmem:[#allocation2 + $0x2] sm:$0xff] }
 0x217   : > { %9575 = vmatprep.mubr.bf16.mxu0 %v11693_v48  ;;  %v11008_v48 = vld [vmem:[%s13082_s3 + $0x48] sm:$0xff]   ;;  %v3868_v20 = vpack.c.bf16 %v3837_v18, %v3836_v10 }
 0x219   : > { %9739 = vmatprep.mubr.bf16.mxu1 %v3868_v20 }
 0x21e   : > { %9576 = vmatmul.mubr.bf16.gmra.mrb[28].mxu0 %v2588_v38  ;;  %v12016_v38 = vld [vmem:[%s13081_s2] ss:$0 sm:$0xff] }
 0x21f   : > { %9595 = vmatprep.mubr.bf16.mxu0 %v2879_v41 }
 0x226   : > { %9596 = vmatmul.mubr.bf16.vlgmr.msra.gmra.mrb[0].mxu0 %v2880_v19 }
 0x227   : > { %9599 = vmatprep.mubr.bf16.mxu0 %v2881_v58  ;;  %9628 = vmatpush3.bf16.msra.mxu0 %v11006_v54  ;;  %v11014_v54 = vld [vmem:[%s13082_s3 + $0x60] sm:$0xff]  }
 0x228   : > { %9629 = vmatprep.subr.bf16.mxu0 %v11008_v48 }
 0x22b   : > { %9630 = vmatpush3.bf16.msra.mxu0 %v11008_v48 }
 0x22c   : > { %9631 = vmatprep.subr.bf16.mxu0 %v11010_v29 }
 0x22e   : > { %9600 = vmatmul.mubr.bf16.gmra.mrb[4].mxu0 %v2882_v31 }
 0x22f   : > { %9603 = vmatprep.mubr.bf16.mxu0 %v2883_v34  ;;  %9632 = vmatpush3.bf16.msra.mxu0 %v11010_v29 }
 0x230   : > { %9633 = vmatprep.subr.bf16.mxu0 %v11012_v49 }
 0x233   : > { %9634 = vmatpush3.bf16.msra.mxu0 %v11012_v49 }
 0x234   : > { %9635 = vmatprep.subr.bf16.mxu0 %v11014_v54 }
 0x236   : > { %9604 = vmatmul.mubr.bf16.gmra.mrb[8].mxu0 %v2884_v45 }
 0x237   : > { %9607 = vmatprep.mubr.bf16.mxu0 %v2885_v46  ;;  %9636 = vmatpush3.bf16.msra.mxu0 %v11014_v54 }
 0x238   : > { %9637 = vmatprep.subr.bf16.mxu0 %v11016_v55 }
 0x23b   : > { %9638 = vmatpush3.bf16.msra.mxu0 %v11016_v55 }
 0x23c   : > { %9639 = vmatprep.subr.bf16.mxu0 %v11018_v61 }
 0x23e   : > { %9608 = vmatmul.mubr.bf16.gmra.mrb[12].mxu0 %v2886_v63 }
 0x23f   : > { %9611 = vmatprep.mubr.bf16.mxu0 %v2887_v8  ;;  %9640 = vmatpush3.bf16.msra.mxu0 %v11018_v61 }
 0x240   : > { %9641 = vmatprep.subr.bf16.mxu0 %v11020_v21 }
 0x243   : > { %9642 = vmatpush3.bf16.msra.mxu0 %v11020_v21  ;;  %v11025_v21 = vld [vmem:[%s13082_s3 + $0xc8] sm:$0xff]  }
 0x244   : > { %9675 = vmatprep.subr.bf16.mxu0 %v11022_v28 }
 0x246   : > { %9612 = vmatmul.mubr.bf16.gmra.mrb[16].mxu0 %v2888_v12 }
 0x247   : > { %9615 = vmatprep.mubr.bf16.mxu0 %v2889_v13 }
 0x24e   : > { %9616 = vmatmul.mubr.bf16.gmra.mrb[20].mxu0 %v2890_v16 }
 0x24f   : > { %9619 = vmatprep.mubr.bf16.mxu0 %v2891_v17 }
 0x256   : > { %9620 = vmatmul.mubr.bf16.gmra.mrb[24].mxu0 %v2892_v32 }
 0x257   : > { %9623 = vmatprep.mubr.bf16.mxu0 %v11737_v47  ;;  %v11013_v47 = vld [vmem:[%s13082_s3 + $0x98] sm:$0xff]  }
 0x258   : > { %9729 = vmatprep.subr.bf16.mxu1 %v11013_v47 }
 0x259   : > { %9730 = vmatpush3.bf16.msra.mxu1 %v11013_v47 }
 0x25a   : > { %9731 = vmatprep.subr.bf16.mxu1 %v11015_v60 }
 0x25d   : > { %9732 = vmatpush3.bf16.msra.mxu1 %v11015_v60 }
 0x25e   : > { %9624 = vmatmul.mubr.bf16.gmra.mrb[28].mxu0 %v2894_v42  ;;  %9733 = vmatprep.subr.bf16.mxu1 %v11017_v2 }
 0x25f   : > { %9643 = vmatprep.mubr.bf16.mxu0 %v3385_v37 }
 0x261   : > { %9734 = vmatpush3.bf16.msra.mxu1 %v11017_v2 }
 0x262   : > { %9735 = vmatprep.subr.bf16.mxu1 %v11019_v53 }
 0x265   : > { %9736 = vmatpush3.bf16.msra.mxu1 %v11019_v53 }
 0x266   : > { %9737 = vmatprep.subr.bf16.mxu1 %v11021_v1 }
 0x269   : > { %9738 = vmatpush3.bf16.msra.mxu1 %v11021_v1 }
 0x26a   : > { %9771 = vmatprep.subr.bf16.mxu1 %v12010_v30 }
 0x2f9   : > { %v9597_v41 = vpop.f32.mrb[0].mxu0 }
 0x2fa   : > { %v3162_v50 = vadd.f32 %v9597_v41, %v12016_v38  ;;  %v2994_v51 = vpop.f32.mrb[1].mxu0  ;;  %v11030_v41 = vld [vmem:[%s13082_s3 + $0x20] sm:$0xff]  }
 0x2fb   : > { %v3160_v6 = vadd.f32 %v12016_v38, %v2994_v51  ;;  %v9598_v15 = vpop.f32.mrb[2].mxu0 }
 0x2fc   : > { %v3194_v19 = vmul.f32 0.1, %v3162_v50  ;;  %v3163_v58 = vadd.f32 %v9598_v15, %v12016_v38  ;;  %v2997_v48 = vpop.f32.mrb[3].mxu0 }
 0x2fd   : > { %v3192_v59 = vmul.f32 0.1, %v3160_v6  ;;  %v3161_v3 = vadd.f32 %v12016_v38, %v2997_v48 }
 0x2fe   : > { %v3226_v4 = vmax.f32 %v3162_v50, %v3194_v19  ;;  %v3195_v11 = vmul.f32 0.1, %v3163_v58 }
 0x2ff   : > { %v3224_v29 = vmax.f32 %v3160_v6, %v3192_v59  ;;  %v3193_v31 = vmul.f32 0.1, %v3161_v3 }
 0x300   : > { %3259 = vst [vmem:[#allocation2 + $0x31] sm:$0xff] %v3226_v4  ;;  %v3227_v34 = vmax.f32 %v3163_v58, %v3195_v11 }
 0x301   : > { %3257 = vst [vmem:[#allocation2 + $0x19] sm:$0xff] %v3224_v29  ;;  %v3225_v36 = vmax.f32 %v3161_v3, %v3193_v31  ;;  %v9601_v39 = vpop.f32.mrb[4].mxu0 }
 0x302   : > { %3260 = vst [vmem:[#allocation2 + $0x39] sm:$0xff] %v3227_v34  ;;  %v3166_v43 = vadd.f32 %v9601_v39, %v12016_v38  ;;  %v3010_v44 = vpop.f32.mrb[5].mxu0  ;;  %v3387_v45 = vpack.c.bf16 %v3227_v34, %v3226_v4 }
 0x303   : > { %3258 = vst [vmem:[#allocation2 + $0x21] sm:$0xff] %v3225_v36  ;;  %v3164_v46 = vadd.f32 %v12016_v38, %v3010_v44  ;;  %v9602_v52 = vpop.f32.mrb[6].mxu0  ;;  %v3386_v56 = vpack.c.bf16 %v3225_v36, %v3224_v29  ;;  %v11032_v44 = vld [vmem:[%s13082_s3 + $0x28] sm:$0xff]  }
 0x304   : > { %v3198_v62 = vmul.f32 0.1, %v3166_v43  ;;  %v3167_v63 = vadd.f32 %v9602_v52, %v12016_v38  ;;  %v3013_v8 = vpop.f32.mrb[7].mxu0 }
 0x305   : > { %v3196_v0 = vmul.f32 0.1, %v3164_v46  ;;  %v3165_v5 = vadd.f32 %v12016_v38, %v3013_v8  ;;  %9644 = vmatmul.mubr.bf16.vlgmr.msra.gmra.mrb[32].mxu0 %v3386_v56  ;;  %v11031_v8 = vld [vmem:[%s13082_s3 + $0xe0] sm:$0xff]  }
 0x306   : > { %v3230_v7 = vmax.f32 %v3166_v43, %v3198_v62  ;;  %v3199_v9 = vmul.f32 0.1, %v3167_v63  ;;  %9647 = vmatprep.mubr.bf16.mxu0 %v3387_v45  ;;  %9676 = vmatpush3.bf16.msra.mxu0 %v11022_v28  ;;  %v11027_v28 = vld [vmem:[%s13082_s3 + $0xd0] sm:$0xff]   ;;  %v11029_v43 = vld [vmem:[%s13082_s3 + $0xd8] sm:$0xff]  }
 0x307   : > { %v3228_v12 = vmax.f32 %v3164_v46, %v3196_v0  ;;  %v3197_v13 = vmul.f32 0.1, %v3165_v5  ;;  %9677 = vmatprep.subr.bf16.mxu0 %v11024_v57  ;;  %v11034_v0 = vld [vmem:[%s13082_s3 + $0x30] sm:$0xff]  }
 0x308   : > { %3263 = vst [vmem:[#allocation2 + $0x61] sm:$0xff] %v3230_v7  ;;  %v3231_v22 = vmax.f32 %v3167_v63, %v3199_v9 }
 0x309   : > { %3261 = vst [vmem:[#allocation2 + $0x49] sm:$0xff] %v3228_v12  ;;  %v3229_v26 = vmax.f32 %v3165_v5, %v3197_v13  ;;  %v9605_v27 = vpop.f32.mrb[8].mxu0  ;;  %v3840_v16 = vld [vmem:[#allocation2 + $0x32] sm:$0xff]  ;;  %v3841_v17 = vld [vmem:[#allocation2 + $0x3a] sm:$0xff] }
 0x30a   : > { %3264 = vst [vmem:[#allocation2 + $0x69] sm:$0xff] %v3231_v22  ;;  %v3170_v24 = vadd.f32 %v9605_v27, %v12016_v38  ;;  %v3026_v25 = vpop.f32.mrb[9].mxu0  ;;  %v3838_v32 = vld [vmem:[#allocation2 + $0x1a] sm:$0xff]  ;;  %v3839_v33 = vld [vmem:[#allocation2 + $0x22] sm:$0xff]  ;;  %v3389_v40 = vpack.c.bf16 %v3231_v22, %v3230_v7  ;;  %9678 = vmatpush3.bf16.msra.mxu0 %v11024_v57  ;;  %v3870_v2 = vpack.c.bf16 %v3841_v17, %v3840_v16 }
 0x30b   : > { %3262 = vst [vmem:[#allocation2 + $0x51] sm:$0xff] %v3229_v26  ;;  %v3168_v42 = vadd.f32 %v12016_v38, %v3026_v25  ;;  %v9606_v49 = vpop.f32.mrb[10].mxu0  ;;  %v3869_v54 = vpack.c.bf16 %v3839_v33, %v3838_v32  ;;  %v3388_v47 = vpack.c.bf16 %v3229_v26, %v3228_v12  ;;  %9679 = vmatprep.subr.bf16.mxu0 %v11026_v14 }
 0x30c   : > { %v3202_v55 = vmul.f32 0.1, %v3170_v24  ;;  %v3171_v60 = vadd.f32 %v9606_v49, %v12016_v38  ;;  %v3029_v61 = vpop.f32.mrb[11].mxu0  ;;  %v11033_v49 = vld [vmem:[%s13082_s3 + $0xe8] sm:$0xff]  }
 0x30d   : > { %v3200_v35 = vmul.f32 0.1, %v3168_v42  ;;  %v3169_v37 = vadd.f32 %v12016_v38, %v3029_v61  ;;  %9740 = vmatmul.mubr.bf16.vlgmr.msra.gmra.mrb[0].mxu1 %v3869_v54  ;;  %9648 = vmatmul.mubr.bf16.gmra.mrb[36].mxu0 %v3388_v47  ;;  %v11036_v54 = vld [vmem:[%s13082_s3 + $0x38] sm:$0xff]  }
 0x30e   : > { %v3234_v53 = vmax.f32 %v3170_v24, %v3202_v55  ;;  %v3203_v1 = vmul.f32 0.1, %v3171_v60  ;;  %9743 = vmatprep.mubr.bf16.mxu1 %v3870_v2  ;;  %9651 = vmatprep.mubr.bf16.mxu0 %v3389_v40 }
 0x30f   : > { %v3232_v10 = vmax.f32 %v3168_v42, %v3200_v35  ;;  %v3201_v18 = vmul.f32 0.1, %v3169_v37  ;;  %9772 = vmatpush3.bf16.msra.mxu1 %v12010_v30  ;;  %9680 = vmatpush3.bf16.msra.mxu0 %v11026_v14  ;;  %v11035_v35 = vld [vmem:[%s13082_s3 + $0xf0] sm:$0xff]  }
 0x310   : > { %3267 = vst [vmem:[#allocation2 + $0x91] sm:$0xff] %v3234_v53  ;;  %v12043_v20 = vmax.f32 %v3171_v60, %v3203_v1  ;;  %9773 = vmatprep.subr.bf16.mxu1 %v11025_v21  ;;  %9681 = vmatprep.subr.bf16.mxu0 %v11028_v23 }
 0x311   : > { %3265 = vst [vmem:[#allocation2 + $0x79] sm:$0xff] %v3232_v10  ;;  %v3233_v50 = vmax.f32 %v3169_v37, %v3201_v18  ;;  %v9609_v51 = vpop.f32.mrb[12].mxu0  ;;  %v3844_v6 = vld [vmem:[#allocation2 + $0x62] sm:$0xff]  ;;  %v3845_v15 = vld [vmem:[#allocation2 + $0x6a] sm:$0xff] }
 0x312   : > { %3268 = vst [vmem:[#allocation2 + $0x99] sm:$0xff] %v12043_v20  ;;  %v3174_v30 = vadd.f32 %v9609_v51, %v12016_v38  ;;  %v3042_v19 = vpop.f32.mrb[13].mxu0  ;;  %v3842_v58 = vld [vmem:[#allocation2 + $0x4a] sm:$0xff]  ;;  %v3843_v48 = vld [vmem:[#allocation2 + $0x52] sm:$0xff]  ;;  %v3391_v59 = vpack.c.bf16 %v12043_v20, %v3234_v53  ;;  %v3872_v39 = vpack.c.bf16 %v3845_v15, %v3844_v6 }
 0x313   : > { %3266 = vst [vmem:[#allocation2 + $0x81] sm:$0xff] %v3233_v50  ;;  %v3172_v3 = vadd.f32 %v12016_v38, %v3042_v19  ;;  %v9610_v4 = vpop.f32.mrb[14].mxu0  ;;  %v3871_v11 = vpack.c.bf16 %v3843_v48, %v3842_v58  ;;  %v12055_v29 = vpack.c.bf16 %v3233_v50, %v3232_v10  ;;  %9774 = vmatpush3.bf16.msra.mxu1 %v11025_v21 }
 0x314   : > { %9682 = vmatpush3.bf16.msra.mxu0 %v11028_v23  ;;  %v3206_v31 = vmul.f32 0.1, %v3174_v30  ;;  %v3175_v34 = vadd.f32 %v9610_v4, %v12016_v38  ;;  %v3045_v36 = vpop.f32.mrb[15].mxu0  ;;  %9775 = vmatprep.subr.bf16.mxu1 %v11027_v28  ;;  %v11037_v4 = vld [vmem:[%s13082_s3 + $0xf8] sm:$0xff]  }
 0x315   : > { %9683 = vmatprep.subr.bf16.mxu0 %v11030_v41  ;;  %v3204_v45 = vmul.f32 0.1, %v3172_v3  ;;  %v3173_v46 = vadd.f32 %v12016_v38, %v3045_v36  ;;  %9744 = vmatmul.mubr.bf16.gmra.mrb[4].mxu1 %v3871_v11 }
 0x316   : > { %9652 = vmatmul.mubr.bf16.gmra.mrb[40].mxu0 %v12055_v29  ;;  %v3238_v52 = vmax.f32 %v3174_v30, %v3206_v31  ;;  %v3207_v56 = vmul.f32 0.1, %v3175_v34  ;;  %9747 = vmatprep.mubr.bf16.mxu1 %v3872_v39 }
 0x317   : > { %9655 = vmatprep.mubr.bf16.mxu0 %v3391_v59  ;;  %v3236_v57 = vmax.f32 %v3172_v3, %v3204_v45  ;;  %v3205_v62 = vmul.f32 0.1, %v3173_v46  ;;  %9776 = vmatpush3.bf16.msra.mxu1 %v11027_v28  ;;  %v12119_v45 = vld [vmem:[%s13082_s3 + $0x100] sm:$0xff]  }
 0x318   : > { %9684 = vmatpush3.bf16.msra.mxu0 %v11030_v41  ;;  %3271 = vst [vmem:[#allocation2 + $0xc1] sm:$0xff] %v3238_v52  ;;  %v3239_v63 = vmax.f32 %v3175_v34, %v3207_v56  ;;  %9777 = vmatprep.subr.bf16.mxu1 %v11029_v43 }
 0x319   : > { %9685 = vmatprep.subr.bf16.mxu0 %v11032_v44  ;;  %3269 = vst [vmem:[#allocation2 + $0xa9] sm:$0xff] %v3236_v57  ;;  %v3237_v5 = vmax.f32 %v3173_v46, %v3205_v62  ;;  %v9613_v7 = vpop.f32.mrb[16].mxu0  ;;  %v3848_v9 = vld [vmem:[#allocation2 + $0x92] sm:$0xff]  ;;  %v3849_v12 = vld [vmem:[#allocation2 + $0x9a] sm:$0xff] }
 0x31a   : > { %3272 = vst [vmem:[#allocation2 + $0xc9] sm:$0xff] %v3239_v63  ;;  %v3178_v13 = vadd.f32 %v9613_v7, %v12016_v38  ;;  %v3058_v14 = vpop.f32.mrb[17].mxu0  ;;  %v3846_v22 = vld [vmem:[#allocation2 + $0x7a] sm:$0xff]  ;;  %v3847_v26 = vld [vmem:[#allocation2 + $0x82] sm:$0xff]  ;;  %v12073_v27 = vpack.c.bf16 %v3239_v63, %v3238_v52  ;;  %v12081_v42 = vpack.c.bf16 %v3849_v12, %v3848_v9 }
 0x31b   : > { %3270 = vst [vmem:[#allocation2 + $0xb1] sm:$0xff] %v3237_v5  ;;  %v3176_v16 = vadd.f32 %v12016_v38, %v3058_v14  ;;  %v9614_v17 = vpop.f32.mrb[18].mxu0  ;;  %v12076_v24 = vpack.c.bf16 %v3847_v26, %v3846_v22  ;;  %v12078_v25 = vpack.c.bf16 %v3237_v5, %v3236_v57  ;;  %9778 = vmatpush3.bf16.msra.mxu1 %v11029_v43 }
 0x31c   : > { %9686 = vmatpush3.bf16.msra.mxu0 %v11032_v44  ;;  %v3210_v32 = vmul.f32 0.1, %v3178_v13  ;;  %v3179_v33 = vadd.f32 %v9614_v17, %v12016_v38  ;;  %v3061_v40 = vpop.f32.mrb[19].mxu0  ;;  %9779 = vmatprep.subr.bf16.mxu1 %v11031_v8 }
 0x31d   : > { %9687 = vmatprep.subr.bf16.mxu0 %v11034_v0  ;;  %v3208_v47 = vmul.f32 0.1, %v3176_v16  ;;  %v3177_v55 = vadd.f32 %v12016_v38, %v3061_v40  ;;  %9748 = vmatmul.mubr.bf16.gmra.mrb[8].mxu1 %v12076_v24 }
 0x31e   : > { %9656 = vmatmul.mubr.bf16.gmra.mrb[44].mxu0 %v12078_v25  ;;  %v3242_v60 = vmax.f32 %v3178_v13, %v3210_v32  ;;  %v3211_v61 = vmul.f32 0.1, %v3179_v33  ;;  %9751 = vmatprep.mubr.bf16.mxu1 %v12081_v42 }
 0x31f   : > { %9659 = vmatprep.mubr.bf16.mxu0 %v12073_v27  ;;  %v3240_v2 = vmax.f32 %v3176_v16, %v3208_v47  ;;  %v3209_v21 = vmul.f32 0.1, %v3177_v55  ;;  %9780 = vmatpush3.bf16.msra.mxu1 %v11031_v8 }
 0x320   : > { %9688 = vmatpush3.bf16.msra.mxu0 %v11034_v0  ;;  %3275 = vst [vmem:[#allocation2 + $0xf1] sm:$0xff] %v3242_v60  ;;  %v3243_v23 = vmax.f32 %v3179_v33, %v3211_v61  ;;  %9781 = vmatprep.subr.bf16.mxu1 %v11033_v49 }
 0x321   : > { %9689 = vmatprep.subr.bf16.mxu0 %v11036_v54  ;;  %3273 = vst [vmem:[#allocation2 + $0xd9] sm:$0xff] %v3240_v2  ;;  %v3241_v37 = vmax.f32 %v3177_v55, %v3209_v21  ;;  %v9617_v53 = vpop.f32.mrb[20].mxu0  ;;  %v3852_v1 = vld [vmem:[#allocation2 + $0xc2] sm:$0xff]  ;;  %v3853_v10 = vld [vmem:[#allocation2 + $0xca] sm:$0xff] }
 0x322   : > { %3276 = vst [vmem:[#allocation2 + $0xf9] sm:$0xff] %v3243_v23  ;;  %v3182_v18 = vadd.f32 %v9617_v53, %v12016_v38  ;;  %v3074_v28 = vpop.f32.mrb[21].mxu0  ;;  %v3850_v41 = vld [vmem:[#allocation2 + $0xaa] sm:$0xff]  ;;  %v3851_v50 = vld [vmem:[#allocation2 + $0xb2] sm:$0xff]  ;;  %v12098_v51 = vpack.c.bf16 %v3243_v23, %v3242_v60  ;;  %v12106_v3 = vpack.c.bf16 %v3853_v10, %v3852_v1 }
 0x323   : > { %3274 = vst [vmem:[#allocation2 + $0xe1] sm:$0xff] %v3241_v37  ;;  %v3180_v6 = vadd.f32 %v12016_v38, %v3074_v28  ;;  %v9618_v15 = vpop.f32.mrb[22].mxu0  ;;  %v12101_v30 = vpack.c.bf16 %v3851_v50, %v3850_v41  ;;  %v12103_v19 = vpack.c.bf16 %v3241_v37, %v3240_v2  ;;  %9782 = vmatpush3.bf16.msra.mxu1 %v11033_v49 }
 0x324   : > { %9690 = vmatpush3.bf16.msra.mxu0 %v11036_v54  ;;  %v3214_v58 = vmul.f32 0.1, %v3182_v18  ;;  %v3183_v48 = vadd.f32 %v9618_v15, %v12016_v38  ;;  %v3077_v59 = vpop.f32.mrb[23].mxu0  ;;  %9783 = vmatprep.subr.bf16.mxu1 %v11035_v35 }
 0x325   : > { %v3212_v11 = vmul.f32 0.1, %v3180_v6  ;;  %v3181_v31 = vadd.f32 %v12016_v38, %v3077_v59  ;;  %9752 = vmatmul.mubr.bf16.gmra.mrb[12].mxu1 %v12101_v30 }
 0x326   : > { %9660 = vmatmul.mubr.bf16.gmra.mrb[48].mxu0 %v12103_v19  ;;  %v3246_v34 = vmax.f32 %v3182_v18, %v3214_v58  ;;  %v3215_v36 = vmul.f32 0.1, %v3183_v48  ;;  %9755 = vmatprep.mubr.bf16.mxu1 %v12106_v3 }
 0x327   : > { %9663 = vmatprep.mubr.bf16.mxu0 %v12098_v51  ;;  %v3244_v39 = vmax.f32 %v3180_v6, %v3212_v11  ;;  %v3213_v43 = vmul.f32 0.1, %v3181_v31  ;;  %9784 = vmatpush3.bf16.msra.mxu1 %v11035_v35 }
 0x328   : > { %3279 = vst [vmem:[#allocation2 + $0x121] sm:$0xff] %v3246_v34  ;;  %v3247_v44 = vmax.f32 %v3183_v48, %v3215_v36  ;;  %9785 = vmatprep.subr.bf16.mxu1 %v11037_v4 }
 0x329   : > { %3277 = vst [vmem:[#allocation2 + $0x109] sm:$0xff] %v3244_v39  ;;  %v3245_v46 = vmax.f32 %v3181_v31, %v3213_v43  ;;  %v9621_v52 = vpop.f32.mrb[24].mxu0  ;;  %v3856_v56 = vld [vmem:[#allocation2 + $0xf2] sm:$0xff]  ;;  %v3857_v57 = vld [vmem:[#allocation2 + $0xfa] sm:$0xff] }
 0x32a   : > { %3280 = vst [vmem:[#allocation2 + $0x129] sm:$0xff] %v3247_v44  ;;  %v3186_v62 = vadd.f32 %v9621_v52, %v12016_v38  ;;  %v3090_v63 = vpop.f32.mrb[25].mxu0  ;;  %v3854_v8 = vld [vmem:[#allocation2 + $0xda] sm:$0xff]  ;;  %v3855_v0 = vld [vmem:[#allocation2 + $0xe2] sm:$0xff]  ;;  %v12122_v5 = vpack.c.bf16 %v3247_v44, %v3246_v34  ;;  %v12130_v16 = vpack.c.bf16 %v3857_v57, %v3856_v56 }
 0x32b   : > { %3278 = vst [vmem:[#allocation2 + $0x111] sm:$0xff] %v3245_v46  ;;  %v3184_v7 = vadd.f32 %v12016_v38, %v3090_v63  ;;  %v9622_v9 = vpop.f32.mrb[26].mxu0  ;;  %v12125_v12 = vpack.c.bf16 %v3855_v0, %v3854_v8  ;;  %v12127_v13 = vpack.c.bf16 %v3245_v46, %v3244_v39  ;;  %9786 = vmatpush3.bf16.msra.mxu1 %v11037_v4  ;;  %v11190_v46 = vld [vmem:[#allocation2] sm:$0xff]  ;;  %v4145_v0 = vld [vmem:[#allocation2 + $0x38] sm:$0xff] }
 0x32c   : > { %v3218_v14 = vmul.f32 0.1, %v3186_v62  ;;  %v3187_v22 = vadd.f32 %v9622_v9, %v12016_v38  ;;  %v3093_v26 = vpop.f32.mrb[27].mxu0  ;;  %9819 = vmatprep.subr.bf16.mxu1 %v12119_v45  ;;  %v12160_v52 = vpack.c.bf16 %v11190_v46, %v11190_v46  ;;  %v4143_v8 = vld [vmem:[#allocation2 + $0x20] sm:$0xff] }
 0x32d   : > { %v3216_v17 = vmul.f32 0.1, %v3184_v7  ;;  %v3185_v32 = vadd.f32 %v12016_v38, %v3093_v26  ;;  %9756 = vmatmul.mubr.bf16.gmra.mrb[16].mxu1 %v12125_v12 }
 0x32e   : > { %9664 = vmatmul.mubr.bf16.gmra.mrb[52].mxu0 %v12127_v13  ;;  %v3250_v33 = vmax.f32 %v3186_v62, %v3218_v14  ;;  %v3219_v40 = vmul.f32 0.1, %v3187_v22  ;;  %9759 = vmatprep.mubr.bf16.mxu1 %v12130_v16  ;;  %v4142_v14 = vld [vmem:[#allocation2 + $0x18] sm:$0xff] }
 0x32f   : > { %9667 = vmatprep.mubr.bf16.mxu0 %v12122_v5  ;;  %v3248_v49 = vmax.f32 %v3184_v7, %v3216_v17  ;;  %v3217_v54 = vmul.f32 0.1, %v3185_v32  ;;  %v4174_v26 = vpack.c.bf16 %v4143_v8, %v4142_v14  ;;  %v4144_v17 = vld [vmem:[#allocation2 + $0x30] sm:$0xff]  ;;  %v11045_v8 = vld [vmem:[%s13082_s3 + $0x138] sm:$0xff]  }
 0x330   : > { %3283 = vst [vmem:[#allocation2 + $0x151] sm:$0xff] %v3250_v33  ;;  %v3251_v47 = vmax.f32 %v3187_v22, %v3219_v40  ;;  %v4149_v40 = vld [vmem:[#allocation2 + $0x68] sm:$0xff] }
 0x331   : > { %3281 = vst [vmem:[#allocation2 + $0x139] sm:$0xff] %v3248_v49  ;;  %v3249_v55 = vmax.f32 %v3185_v32, %v3217_v54  ;;  %v9625_v60 = vpop.f32.mrb[28].mxu0  ;;  %v3860_v61 = vld [vmem:[#allocation2 + $0x122] sm:$0xff]  ;;  %v3861_v2 = vld [vmem:[#allocation2 + $0x12a] sm:$0xff]  ;;  %v12176_v32 = vpack.c.bf16 %v4145_v0, %v4144_v17 }
 0x332   : > { %3284 = vst [vmem:[#allocation2 + $0x159] sm:$0xff] %v3251_v47  ;;  %v3190_v21 = vadd.f32 %v9625_v60, %v12016_v38  ;;  %v3106_v23 = vpop.f32.mrb[29].mxu0  ;;  %v3858_v35 = vld [vmem:[#allocation2 + $0x10a] sm:$0xff]  ;;  %v3859_v37 = vld [vmem:[#allocation2 + $0x112] sm:$0xff]  ;;  %v12139_v53 = vpack.c.bf16 %v3251_v47, %v3250_v33  ;;  %v12147_v15 = vpack.c.bf16 %v3861_v2, %v3860_v61  ;;  %v4148_v47 = vld [vmem:[#allocation2 + $0x60] sm:$0xff] }
 0x333   : > { %3282 = vst [vmem:[#allocation2 + $0x141] sm:$0xff] %v3249_v55  ;;  %v3188_v1 = vadd.f32 %v12016_v38, %v3106_v23  ;;  %v9626_v10 = vpop.f32.mrb[30].mxu0  ;;  %v12142_v18 = vpack.c.bf16 %v3859_v37, %v3858_v35  ;;  %v12144_v28 = vpack.c.bf16 %v3249_v55, %v3248_v49  ;;  %v4147_v33 = vld [vmem:[#allocation2 + $0x50] sm:$0xff]  ;;  %v4146_v49 = vld [vmem:[#allocation2 + $0x48] sm:$0xff]  ;;  %v12182_v55 = vpack.c.bf16 %v4149_v40, %v4148_v47  ;;  %v4151_v61 = vld [vmem:[#allocation2 + $0x80] sm:$0xff] }
 0x334   : > { %v3222_v41 = vmul.f32 0.1, %v3190_v21  ;;  %v3191_v50 = vadd.f32 %v9626_v10, %v12016_v38  ;;  %v3109_v6 = vpop.f32.mrb[31].mxu0  ;;  %v12180_v54 = vpack.c.bf16 %v4147_v33, %v4146_v49  ;;  %v11039_v60 = vld [vmem:[%s13082_s3 + $0x108] sm:$0xff]   ;;  %v11040_v2 = vld [vmem:[%s13082_s3 + $0x110] sm:$0xff]   ;;  %v4150_v23 = vld [vmem:[#allocation2 + $0x78] sm:$0xff] }
 0x335   : > { %v3220_v58 = vmul.f32 0.1, %v3188_v1  ;;  %v3189_v48 = vadd.f32 %v12016_v38, %v3109_v6  ;;  %9760 = vmatmul.mubr.bf16.gmra.mrb[20].mxu1 %v12142_v18  ;;  %v12195_v35 = vpack.c.bf16 %v4151_v61, %v4150_v23  ;;  %v4152_v37 = vld [vmem:[#allocation2 + $0x90] sm:$0xff]  ;;  %v11041_v10 = vld [vmem:[%s13082_s3 + $0x118] sm:$0xff]   ;;  %v4154_v6 = vld [vmem:[#allocation2 + $0xa8] sm:$0xff] }
 0x336   : > { %9668 = vmatmul.mubr.bf16.gmra.mrb[56].mxu0 %v12144_v28  ;;  %v12152_v59 = vmax.f32 %v3190_v21, %v3222_v41  ;;  %v3223_v4 = vmul.f32 0.1, %v3191_v50  ;;  %9763 = vmatprep.mubr.bf16.mxu1 %v12147_v15  ;;  %v4153_v21 = vld [vmem:[#allocation2 + $0x98] sm:$0xff]  ;;  %v11042_v41 = vld [vmem:[%s13082_s3 + $0x120] sm:$0xff]   ;;  %v4163_v0 = vld [vmem:[#allocation2 + $0x110] sm:$0xff] }
 0x337   : > { %9671 = vmatprep.mubr.bf16.mxu0 %v12139_v53  ;;  %v3252_v11 = vmax.f32 %v3188_v1, %v3220_v58  ;;  %v3221_v31 = vmul.f32 0.1, %v3189_v48  ;;  %v12197_v1 = vpack.c.bf16 %v4153_v21, %v4152_v37  ;;  %v4162_v14 = vld [vmem:[#allocation2 + $0x108] sm:$0xff]  ;;  %v4164_v17 = vld [vmem:[#allocation2 + $0x120] sm:$0xff]  ;;  %v4168_v61 = vld [vmem:[#allocation2 + $0x150] sm:$0xff] }
 0x338   : > { %3287 = vst [vmem:[#allocation2 + $0x181] sm:$0xff] %v12152_v59  ;;  %v12157_v34 = vmax.f32 %v3191_v50, %v3223_v4  ;;  %v4157_v50 = vld [vmem:[#allocation2 + $0xc8] sm:$0xff]  ;;  %v4166_v47 = vld [vmem:[#allocation2 + $0x138] sm:$0xff] }
 0x339   : > { %3285 = vst [vmem:[#allocation2 + $0x169] sm:$0xff] %v3252_v11  ;;  %v3253_v36 = vmax.f32 %v3189_v48, %v3221_v31  ;;  %v3864_v38 = vld [vmem:[#allocation2 + $0x152] sm:$0xff]  ;;  %v3865_v39 = vld [vmem:[#allocation2 + $0x15a] sm:$0xff] }
 0x33a   : > { %3288 = vst [vmem:[#allocation2 + $0x189] sm:$0xff] %v12157_v34  ;;  %v3862_v43 = vld [vmem:[#allocation2 + $0x13a] sm:$0xff]  ;;  %v3863_v44 = vld [vmem:[#allocation2 + $0x142] sm:$0xff]  ;;  %v4495_v56 = vpack.c.bf16 %v12157_v34, %v12152_v59  ;;  %v12168_v63 = vpack.c.bf16 %v3865_v39, %v3864_v38  ;;  %v4761_v34 = vld [vmem:[#allocation2 + $0x6a] sm:$0xff] }
 0x33b   : > { %3286 = vst [vmem:[#allocation2 + $0x171] sm:$0xff] %v3253_v36  ;;  %v12164_v57 = vpack.c.bf16 %v3863_v44, %v3862_v43  ;;  %v12166_v62 = vpack.c.bf16 %v3253_v36, %v3252_v11  ;;  %v4156_v48 = vld [vmem:[#allocation2 + $0xc0] sm:$0xff]  ;;  %v11043_v11 = vld [vmem:[%s13082_s3 + $0x128] sm:$0xff]   ;;  %v11044_v36 = vld [vmem:[%s13082_s3 + $0x130] sm:$0xff]  }
 0x33c   : > { %v12211_v4 = vpack.c.bf16 %v4157_v50, %v4156_v48  ;;  %v4159_v31 = vld [vmem:[#allocation2 + $0xe0] sm:$0xff]  ;;  %v4161_v38 = vld [vmem:[#allocation2 + $0xf8] sm:$0xff]  ;;  %v4160_v44 = vld [vmem:[#allocation2 + $0xf0] sm:$0xff] }
 0x33d   : > { %9764 = vmatmul.mubr.bf16.gmra.mrb[24].mxu1 %v12164_v57  ;;  %v4158_v39 = vld [vmem:[#allocation2 + $0xd8] sm:$0xff]  ;;  %v12225_v46 = vpack.c.bf16 %v4161_v38, %v4160_v44  ;;  %v4167_v40 = vld [vmem:[#allocation2 + $0x140] sm:$0xff]  ;;  %v11047_v44 = vld [vmem:[%s13082_s3 + $0x148] sm:$0xff]  }
 0x33e   : > { %9672 = vmatmul.mubr.bf16.gmra.mrb[60].mxu0 %v12166_v62  ;;  %9767 = vmatprep.mubr.bf16.mxu1 %v12168_v63  ;;  %v12223_v43 = vpack.c.bf16 %v4159_v31, %v4158_v39  ;;  %v4169_v49 = vld [vmem:[#allocation2 + $0x158] sm:$0xff]  ;;  %v4452_v39 = vld [vmem:[#allocation2 + $0x49] sm:$0xff] }
 0x33f   : > { %9691 = vmatprep.mubr.bf16.mxu0 %v12160_v52  ;;  %v4453_v31 = vld [vmem:[#allocation2 + $0x51] sm:$0xff]  ;;  %v4760_v59 = vld [vmem:[#allocation2 + $0x62] sm:$0xff] }
 0x340   : > { %v4170_v23 = vld [vmem:[#allocation2 + $0x168] sm:$0xff] }
 0x342   : > { %v3866_v7 = vld [vmem:[#allocation2 + $0x16a] sm:$0xff]  ;;  %v3867_v9 = vld [vmem:[#allocation2 + $0x172] sm:$0xff] }
 0x343   : > { %v12174_v22 = vpack.c.bf16 %v3867_v9, %v3866_v7  ;;  %v11046_v7 = vld [vmem:[%s13082_s3 + $0x140] sm:$0xff]   ;;  %v4165_v9 = vld [vmem:[#allocation2 + $0x128] sm:$0xff]  ;;  %v4171_v21 = vld [vmem:[#allocation2 + $0x170] sm:$0xff] }
 0x344   : > { %v12239_v33 = vpack.c.bf16 %v4165_v9, %v4164_v17  ;;  %v12253_v37 = vpack.c.bf16 %v4171_v21, %v4170_v23  ;;  %v4455_v9 = vld [vmem:[#allocation2 + $0x69] sm:$0xff]  ;;  %v4756_v23 = vld [vmem:[#allocation2 + $0x32] sm:$0xff] }
 0x345   : > { %9768 = vmatmul.mubr.bf16.gmra.mrb[28].mxu1 %v12174_v22 }
 0x346   : > { %9692 = vmatmul.mubr.bf16.vlgmr.msra.gmra.mrb[32].mxu0 %v4174_v26  ;;  %9787 = vmatprep.mubr.bf16.mxu1 %v4174_v26  ;;  %v12237_v26 = vpack.c.bf16 %v4163_v0, %v4162_v14  ;;  %v11048_v0 = vld [vmem:[%s13082_s3 + $0x150] sm:$0xff]   ;;  %v4454_v14 = vld [vmem:[#allocation2 + $0x61] sm:$0xff] }
 0x347   : > { %9695 = vmatprep.mubr.bf16.mxu0 %v12176_v32  ;;  %v12273_v17 = vpack.c.bf16 %v4455_v9, %v4454_v14 }
 0x34d   : > { %9788 = vmatmul.mubr.bf16.vlgmr.msra.gmra.mrb[0].mxu1 %v12176_v32 }
 0x34e   : > { %9696 = vmatmul.mubr.bf16.gmra.mrb[36].mxu0 %v12180_v54  ;;  %9791 = vmatprep.mubr.bf16.mxu1 %v12180_v54 }
 0x34f   : > { %9699 = vmatprep.mubr.bf16.mxu0 %v12182_v55  ;;  %9820 = vmatpush3.bf16.msra.mxu1 %v12119_v45  ;;  %v4155_v45 = vld [vmem:[#allocation2 + $0xb0] sm:$0xff] }
 0x350   : > { %9821 = vmatprep.subr.bf16.mxu1 %v11039_v60  ;;  %v12209_v58 = vpack.c.bf16 %v4155_v45, %v4154_v6  ;;  %v4449_v45 = vld [vmem:[#allocation2 + $0x21] sm:$0xff]  ;;  %v4448_v6 = vld [vmem:[#allocation2 + $0x19] sm:$0xff] }
 0x351   : > { %v4480_v48 = vpack.c.bf16 %v4449_v45, %v4448_v6  ;;  %v11059_v6 = vld [vmem:[%s13082_s3 + $0x1a8] sm:$0xff]  }
 0x353   : > { %9822 = vmatpush3.bf16.msra.mxu1 %v11039_v60  ;;  %v12245_v60 = vpack.c.bf16 %v4167_v40, %v4166_v47  ;;  %v11049_v40 = vld [vmem:[%s13082_s3 + $0x158] sm:$0xff]  }
 0x354   : > { %9823 = vmatprep.subr.bf16.mxu1 %v11040_v2 }
 0x355   : > { %9792 = vmatmul.mubr.bf16.gmra.mrb[4].mxu1 %v12182_v55 }
 0x356   : > { %9700 = vmatmul.mubr.bf16.gmra.mrb[40].mxu0 %v12195_v35  ;;  %9795 = vmatprep.mubr.bf16.mxu1 %v12195_v35 }
 0x357   : > { %9703 = vmatprep.mubr.bf16.mxu0 %v12197_v1  ;;  %9824 = vmatpush3.bf16.msra.mxu1 %v11040_v2  ;;  %v12247_v2 = vpack.c.bf16 %v4169_v49, %v4168_v61  ;;  %v12283_v49 = vld [vmem:[#allocation2 + $0x91] sm:$0xff]  ;;  %v11051_v61 = vld [vmem:[%s13082_s3 + $0x168] sm:$0xff]  }
 0x358   : > { %9825 = vmatprep.subr.bf16.mxu1 %v11041_v10  ;;  %v4485_v47 = vpack.c.bf16 %v12043_v20, %v12283_v49  ;;  %v11053_v20 = vld [vmem:[%s13082_s3 + $0x178] sm:$0xff]  }
 0x35b   : > { %9826 = vmatpush3.bf16.msra.mxu1 %v11041_v10  ;;  %v4173_v10 = vld [vmem:[#allocation2 + $0x188] sm:$0xff] }
 0x35c   : > { %9827 = vmatprep.subr.bf16.mxu1 %v11042_v41 }
 0x35d   : > { %9796 = vmatmul.mubr.bf16.gmra.mrb[8].mxu1 %v12197_v1 }
 0x35e   : > { %9704 = vmatmul.mubr.bf16.gmra.mrb[44].mxu0 %v12209_v58  ;;  %9799 = vmatprep.mubr.bf16.mxu1 %v12209_v58 }
 0x35f   : > { %9707 = vmatprep.mubr.bf16.mxu0 %v12211_v4  ;;  %9828 = vmatpush3.bf16.msra.mxu1 %v11042_v41  ;;  %v4172_v41 = vld [vmem:[#allocation2 + $0x180] sm:$0xff] }
 0x360   : > { %9829 = vmatprep.subr.bf16.mxu1 %v11043_v11  ;;  %v12258_v50 = vpack.c.bf16 %v4173_v10, %v4172_v41  ;;  %v4758_v10 = vld [vmem:[#allocation2 + $0x4a] sm:$0xff]  ;;  %v11058_v41 = vld [vmem:[%s13082_s3 + $0x1a0] sm:$0xff]  }
 0x363   : > { %9830 = vmatpush3.bf16.msra.mxu1 %v11043_v11  ;;  %v4451_v11 = vld [vmem:[#allocation2 + $0x39] sm:$0xff] }
 0x364   : > { %9831 = vmatprep.subr.bf16.mxu1 %v11044_v36 }
 0x365   : > { %9800 = vmatmul.mubr.bf16.gmra.mrb[12].mxu1 %v12211_v4 }
 0x366   : > { %9708 = vmatmul.mubr.bf16.gmra.mrb[48].mxu0 %v12223_v43  ;;  %9803 = vmatprep.mubr.bf16.mxu1 %v12223_v43 }
 0x367   : > { %9711 = vmatprep.mubr.bf16.mxu0 %v12225_v46  ;;  %9832 = vmatpush3.bf16.msra.mxu1 %v11044_v36  ;;  %v4450_v36 = vld [vmem:[#allocation2 + $0x31] sm:$0xff] }
 0x368   : > { %9833 = vmatprep.subr.bf16.mxu1 %v11045_v8  ;;  %v12261_v38 = vpack.c.bf16 %v4451_v11, %v4450_v36 }
 0x36b   : > { %9834 = vmatpush3.bf16.msra.mxu1 %v11045_v8  ;;  %v12266_v8 = vpack.c.bf16 %v4453_v31, %v4452_v39 }
 0x36c   : > { %9867 = vmatprep.subr.bf16.mxu1 %v11046_v7 }
 0x36d   : > { %9804 = vmatmul.mubr.bf16.gmra.mrb[16].mxu1 %v12225_v46 }
 0x36e   : > { %9712 = vmatmul.mubr.bf16.gmra.mrb[52].mxu0 %v12237_v26  ;;  %9807 = vmatprep.mubr.bf16.mxu1 %v12237_v26 }
 0x36f   : > { %9715 = vmatprep.mubr.bf16.mxu0 %v12239_v33 }
 0x375   : > { %9808 = vmatmul.mubr.bf16.gmra.mrb[20].mxu1 %v12239_v33 }
 0x376   : > { %9716 = vmatmul.mubr.bf16.gmra.mrb[56].mxu0 %v12245_v60  ;;  %9811 = vmatprep.mubr.bf16.mxu1 %v12245_v60 }
 0x377   : > { %9719 = vmatprep.mubr.bf16.mxu0 %v12247_v2 }
 0x37d   : > { %9812 = vmatmul.mubr.bf16.gmra.mrb[24].mxu1 %v12247_v2 }
 0x37e   : > { %9720 = vmatmul.mubr.bf16.gmra.mrb[60].mxu0 %v12253_v37  ;;  %9815 = vmatprep.mubr.bf16.mxu1 %v12253_v37 }
 0x385   : > { %9816 = vmatmul.mubr.bf16.gmra.mrb[28].mxu1 %v12258_v50 }
 0x386   : > { %9835 = vmatprep.mubr.bf16.mxu1 %v4480_v48  ;;  %v11061_v48 = vld [vmem:[%s13082_s3 + $0x1b8] sm:$0xff]  }
 0x38d   : > { %9836 = vmatmul.mubr.bf16.vlgmr.msra.gmra.mrb[0].mxu1 %v12261_v38 }
 0x38e   : > { %9839 = vmatprep.mubr.bf16.mxu1 %v12266_v8  ;;  %9868 = vmatpush3.bf16.msra.mxu1 %v11046_v7  ;;  %v11050_v7 = vld [vmem:[%s13082_s3 + $0x160] sm:$0xff]  }
 0x38f   : > { %9869 = vmatprep.subr.bf16.mxu1 %v11047_v44 }
 0x392   : > { %9870 = vmatpush3.bf16.msra.mxu1 %v11047_v44 }
 0x393   : > { %9871 = vmatprep.subr.bf16.mxu1 %v11048_v0 }
 0x395   : > { %9840 = vmatmul.mubr.bf16.gmra.mrb[4].mxu1 %v12273_v17 }
 0x396   : > { %9843 = vmatprep.mubr.bf16.mxu1 %v12055_v29  ;;  %9872 = vmatpush3.bf16.msra.mxu1 %v11048_v0  ;;  %v11052_v29 = vld [vmem:[%s13082_s3 + $0x170] sm:$0xff]  }
 0x397   : > { %9873 = vmatprep.subr.bf16.mxu1 %v11049_v40 }
 0x39a   : > { %9874 = vmatpush3.bf16.msra.mxu1 %v11049_v40 }
 0x39b   : > { %9875 = vmatprep.subr.bf16.mxu1 %v11050_v7 }
 0x39d   : > { %9844 = vmatmul.mubr.bf16.gmra.mrb[8].mxu1 %v4485_v47 }
 0x39e   : > { %9847 = vmatprep.mubr.bf16.mxu1 %v12078_v25  ;;  %9876 = vmatpush3.bf16.msra.mxu1 %v11050_v7  ;;  %v11054_v25 = vld [vmem:[%s13082_s3 + $0x180] sm:$0xff]  }
 0x39f   : > { %9877 = vmatprep.subr.bf16.mxu1 %v11051_v61 }
 0x3a2   : > { %9878 = vmatpush3.bf16.msra.mxu1 %v11051_v61 }
 0x3a3   : > { %9879 = vmatprep.subr.bf16.mxu1 %v11052_v29 }
 0x3a5   : > { %9848 = vmatmul.mubr.bf16.gmra.mrb[12].mxu1 %v12073_v27  ;;  %v4754_v27 = vld [vmem:[#allocation2 + $0x1a] sm:$0xff] }
 0x3a6   : > { %9851 = vmatprep.mubr.bf16.mxu1 %v12103_v19  ;;  %9880 = vmatpush3.bf16.msra.mxu1 %v11052_v29  ;;  %v4755_v19 = vld [vmem:[#allocation2 + $0x22] sm:$0xff] }
 0x3a7   : > { %9881 = vmatprep.subr.bf16.mxu1 %v11053_v20  ;;  %v4786_v21 = vpack.c.bf16 %v4755_v19, %v4754_v27 }
 0x3aa   : > { %9882 = vmatpush3.bf16.msra.mxu1 %v11053_v20 }
 0x3ab   : > { %9915 = vmatprep.subr.bf16.mxu1 %v11054_v25 }
 0x3ad   : > { %9852 = vmatmul.mubr.bf16.gmra.mrb[16].mxu1 %v12098_v51  ;;  %v4757_v51 = vld [vmem:[#allocation2 + $0x3a] sm:$0xff] }
 0x3ae   : > { %9855 = vmatprep.mubr.bf16.mxu1 %v12127_v13  ;;  %v4759_v13 = vld [vmem:[#allocation2 + $0x52] sm:$0xff]  ;;  %v12311_v45 = vpack.c.bf16 %v4757_v51, %v4756_v23 }
 0x3af   : > { %v5373_v51 = vld [vmem:[#allocation2 + $0x79] sm:$0xff] }
 0x3b5   : > { %9856 = vmatmul.mubr.bf16.gmra.mrb[20].mxu1 %v12122_v5  ;;  %v11055_v5 = vld [vmem:[%s13082_s3 + $0x188] sm:$0xff]  }
 0x3b6   : > { %9859 = vmatprep.mubr.bf16.mxu1 %v12144_v28  ;;  %v11056_v28 = vld [vmem:[%s13082_s3 + $0x190] sm:$0xff]  }
 0x3bd   : > { %9860 = vmatmul.mubr.bf16.gmra.mrb[24].mxu1 %v12139_v53  ;;  %v12316_v53 = vpack.c.bf16 %v4759_v13, %v4758_v10 }
 0x3be   : > { %9863 = vmatprep.mubr.bf16.mxu1 %v12166_v62  ;;  %v11057_v62 = vld [vmem:[%s13082_s3 + $0x198] sm:$0xff]  }
 0x3c5   : > { %9864 = vmatmul.mubr.bf16.gmra.mrb[28].mxu1 %v4495_v56  ;;  %v12323_v56 = vpack.c.bf16 %v4761_v34, %v4760_v59  ;;  %v5378_v59 = vld [vmem:[#allocation2 + $0xb1] sm:$0xff]  ;;  %v5380_v34 = vld [vmem:[#allocation2 + $0xc9] sm:$0xff] }
 0x3c6   : > { %9883 = vmatprep.mubr.bf16.mxu1 %v4786_v21  ;;  %v5376_v21 = vld [vmem:[#allocation2 + $0x99] sm:$0xff] }
 0x3cd   : > { %9884 = vmatmul.mubr.bf16.vlgmr.msra.gmra.mrb[0].mxu1 %v12311_v45 }
 0x3ce   : > { %9887 = vmatprep.mubr.bf16.mxu1 %v12316_v53  ;;  %9916 = vmatpush3.bf16.msra.mxu1 %v11054_v25 }
 0x3cf   : > { %9917 = vmatprep.subr.bf16.mxu1 %v11055_v5 }
 0x3d2   : > { %9918 = vmatpush3.bf16.msra.mxu1 %v11055_v5  ;;  %v5403_v5 = vpack.c.bf16 %v5376_v21, %v12283_v49  ;;  %v5392_v21 = vld [vmem:[#allocation2 + $0x159] sm:$0xff] }
 0x3d3   : > { %9919 = vmatprep.subr.bf16.mxu1 %v11056_v28 }
 0x3d5   : > { %9888 = vmatmul.mubr.bf16.gmra.mrb[4].mxu1 %v12323_v56 }
 0x3d6   : > { %9891 = vmatprep.mubr.bf16.mxu1 %v12076_v24  ;;  %9920 = vmatpush3.bf16.msra.mxu1 %v11056_v28  ;;  %v11060_v24 = vld [vmem:[%s13082_s3 + $0x1b0] sm:$0xff]   ;;  %v11074_v28 = vld [vmem:[%s13082_s3 + $0x220] sm:$0xff]  }
 0x3d7   : > { %9921 = vmatprep.subr.bf16.mxu1 %v11057_v62 }
 0x3da   : > { %9922 = vmatpush3.bf16.msra.mxu1 %v11057_v62  ;;  %v5377_v62 = vld [vmem:[#allocation2 + $0xa9] sm:$0xff] }
 0x3db   : > { %9923 = vmatprep.subr.bf16.mxu1 %v11058_v41 }
 0x3dd   : > { %9892 = vmatmul.mubr.bf16.gmra.mrb[8].mxu1 %v12081_v42  ;;  %v11062_v42 = vld [vmem:[%s13082_s3 + $0x1c0] sm:$0xff]  }
 0x3de   : > { %9895 = vmatprep.mubr.bf16.mxu1 %v12101_v30  ;;  %9924 = vmatpush3.bf16.msra.mxu1 %v11058_v41  ;;  %v4784_v30 = vld [vmem:[#allocation2 + $0x182] sm:$0xff]  ;;  %v5404_v41 = vpack.c.bf16 %v5378_v59, %v5377_v62 }
 0x3df   : > { %9925 = vmatprep.subr.bf16.mxu1 %v11059_v6  ;;  %v5396_v59 = vld [vmem:[#allocation2 + $0x189] sm:$0xff] }
 0x3e2   : > { %9926 = vmatpush3.bf16.msra.mxu1 %v11059_v6  ;;  %v5379_v6 = vld [vmem:[#allocation2 + $0xc1] sm:$0xff] }
 0x3e3   : > { %9927 = vmatprep.subr.bf16.mxu1 %v11060_v24  ;;  %v5405_v49 = vpack.c.bf16 %v5380_v34, %v5379_v6  ;;  %v5393_v34 = vld [vmem:[#allocation2 + $0x169] sm:$0xff] }
 0x3e5   : > { %9896 = vmatmul.mubr.bf16.gmra.mrb[12].mxu1 %v12106_v3  ;;  %v4785_v3 = vld [vmem:[#allocation2 + $0x18a] sm:$0xff] }
 0x3e6   : > { %9899 = vmatprep.mubr.bf16.mxu1 %v12125_v12  ;;  %9928 = vmatpush3.bf16.msra.mxu1 %v11060_v24  ;;  %v12355_v12 = vpack.c.bf16 %v4785_v3, %v4784_v30  ;;  %v11075_v24 = vld [vmem:[%s13082_s3 + $0x228] sm:$0xff]   ;;  %v5384_v30 = vld [vmem:[#allocation2 + $0xf9] sm:$0xff] }
 0x3e7   : > { %9929 = vmatprep.subr.bf16.mxu1 %v11061_v48  ;;  %v5381_v3 = vld [vmem:[#allocation2 + $0xd9] sm:$0xff] }
 0x3ea   : > { %9930 = vmatpush3.bf16.msra.mxu1 %v11061_v48  ;;  %v11076_v48 = vld [vmem:[%s13082_s3 + $0x230] sm:$0xff]  }
 0x3eb   : > { %9963 = vmatprep.subr.bf16.mxu1 %v11062_v42 }
 0x3ed   : > { %9900 = vmatmul.mubr.bf16.gmra.mrb[16].mxu1 %v12130_v16  ;;  %v11063_v16 = vld [vmem:[%s13082_s3 + $0x1c8] sm:$0xff]  }
 0x3ee   : > { %9903 = vmatprep.mubr.bf16.mxu1 %v12142_v18  ;;  %v11064_v18 = vld [vmem:[%s13082_s3 + $0x1d0] sm:$0xff]  }
 0x3f5   : > { %9904 = vmatmul.mubr.bf16.gmra.mrb[20].mxu1 %v12147_v15  ;;  %v11065_v15 = vld [vmem:[%s13082_s3 + $0x1d8] sm:$0xff]  }
 0x3f6   : > { %9907 = vmatprep.mubr.bf16.mxu1 %v12164_v57  ;;  %v11066_v57 = vld [vmem:[%s13082_s3 + $0x1e0] sm:$0xff]  }
 0x3fd   : > { %9908 = vmatmul.mubr.bf16.gmra.mrb[24].mxu1 %v12168_v63 }
 0x3fe   : > { %9911 = vmatprep.mubr.bf16.mxu1 %v12174_v22 }
 0x405   : > { %9912 = vmatmul.mubr.bf16.gmra.mrb[28].mxu1 %v12355_v12 }
 0x406   : > { %9931 = vmatprep.mubr.bf16.mxu1 %v12176_v32 }
 0x40d   : > { %9932 = vmatmul.mubr.bf16.vlgmr.msra.gmra.mrb[0].mxu1 %v12180_v54 }
 0x40e   : > { %9935 = vmatprep.mubr.bf16.mxu1 %v12182_v55  ;;  %9964 = vmatpush3.bf16.msra.mxu1 %v11062_v42  ;;  %v11067_v55 = vld [vmem:[%s13082_s3 + $0x1e8] sm:$0xff]  }
 0x40f   : > { %9965 = vmatprep.subr.bf16.mxu1 %v11063_v16  ;;  %v5382_v42 = vld [vmem:[#allocation2 + $0xe1] sm:$0xff] }
 0x412   : > { %9966 = vmatpush3.bf16.msra.mxu1 %v11063_v16  ;;  %v5406_v16 = vpack.c.bf16 %v5382_v42, %v5381_v3  ;;  %v5679_v42 = vld [vmem:[#allocation2 + $0x7a] sm:$0xff]  ;;  %v5681_v3 = vld [vmem:[#allocation2 + $0x92] sm:$0xff] }
 0x413   : > { %9967 = vmatprep.subr.bf16.mxu1 %v11064_v18 }
 0x415   : > { %9936 = vmatmul.mubr.bf16.gmra.mrb[4].mxu1 %v12195_v35  ;;  %v11068_v35 = vld [vmem:[%s13082_s3 + $0x1f0] sm:$0xff]  }
 0x416   : > { %9939 = vmatprep.mubr.bf16.mxu1 %v12197_v1  ;;  %9968 = vmatpush3.bf16.msra.mxu1 %v11064_v18  ;;  %v5383_v18 = vld [vmem:[#allocation2 + $0xf1] sm:$0xff] }
 0x417   : > { %9969 = vmatprep.subr.bf16.mxu1 %v11065_v15 }
 0x419   : > { %v12375_v63 = vpop.f32.mrb[32].mxu0 }
 0x41a   : > { %v12377_v22 = vpop.f32.mrb[33].mxu0  ;;  %9970 = vmatpush3.bf16.msra.mxu1 %v11065_v15  ;;  %v11077_v15 = vld [vmem:[%s13082_s3 + $0x238] sm:$0xff]  }
 0x41b   : > { %v12379_v32 = vpop.f32.mrb[34].mxu0  ;;  %9971 = vmatprep.subr.bf16.mxu1 %v11066_v57 }
 0x41c   : > { %v12381_v54 = vpop.f32.mrb[35].mxu0 }
 0x41d   : > { %9940 = vmatmul.mubr.bf16.gmra.mrb[8].mxu1 %v12209_v58  ;;  %v11069_v58 = vld [vmem:[%s13082_s3 + $0x1f8] sm:$0xff]  }
 0x41e   : > { %9943 = vmatprep.mubr.bf16.mxu1 %v12211_v4  ;;  %9972 = vmatpush3.bf16.msra.mxu1 %v11066_v57  ;;  %v11070_v4 = vld [vmem:[%s13082_s3 + $0x200] sm:$0xff]   ;;  %v5407_v57 = vpack.c.bf16 %v5384_v30, %v5383_v18 }
 0x41f   : > { %9973 = vmatprep.subr.bf16.mxu1 %v11067_v55  ;;  %v5680_v30 = vld [vmem:[#allocation2 + $0x82] sm:$0xff] }
 0x420   : > { %v5708_v18 = vpack.c.bf16 %v5680_v30, %v5679_v42  ;;  %v5700_v42 = vld [vmem:[#allocation2 + $0x172] sm:$0xff] }
 0x421   : > { %v12391_v1 = vpop.f32.mrb[36].mxu0 }
 0x422   : > { %v12393_v11 = vpop.f32.mrb[37].mxu0  ;;  %9974 = vmatpush3.bf16.msra.mxu1 %v11067_v55  ;;  %v5386_v55 = vld [vmem:[#allocation2 + $0x111] sm:$0xff] }
 0x423   : > { %v12395_v31 = vpop.f32.mrb[38].mxu0  ;;  %9975 = vmatprep.subr.bf16.mxu1 %v11068_v35 }
 0x424   : > { %v12397_v36 = vpop.f32.mrb[39].mxu0 }
 0x425   : > { %9944 = vmatmul.mubr.bf16.gmra.mrb[12].mxu1 %v12223_v43 }
 0x426   : > { %9947 = vmatprep.mubr.bf16.mxu1 %v12225_v46  ;;  %9976 = vmatpush3.bf16.msra.mxu1 %v11068_v35  ;;  %v5388_v35 = vld [vmem:[#allocation2 + $0x129] sm:$0xff] }
 0x427   : > { %9977 = vmatprep.subr.bf16.mxu1 %v11069_v58 }
 0x429   : > { %v12407_v39 = vpop.f32.mrb[40].mxu0 }
 0x42a   : > { %v12409_v44 = vpop.f32.mrb[41].mxu0  ;;  %9978 = vmatpush3.bf16.msra.mxu1 %v11069_v58  ;;  %v5385_v58 = vld [vmem:[#allocation2 + $0x109] sm:$0xff] }
 0x42b   : > { %v12411_v0 = vpop.f32.mrb[42].mxu0  ;;  %10011 = vmatprep.subr.bf16.mxu1 %v11070_v4 }
 0x42c   : > { %v12413_v9 = vpop.f32.mrb[43].mxu0 }
 0x42d   : > { %9948 = vmatmul.mubr.bf16.gmra.mrb[16].mxu1 %v12237_v26 }
 0x42e   : > { %9951 = vmatprep.mubr.bf16.mxu1 %v12239_v33 }
 0x431   : > { %v12417_v43 = vpop.f32.mrb[44].mxu0 }
 0x432   : > { %v12419_v46 = vpop.f32.mrb[45].mxu0 }
 0x433   : > { %v12421_v14 = vpop.f32.mrb[46].mxu0 }
 0x434   : > { %v12423_v40 = vpop.f32.mrb[47].mxu0 }
 0x435   : > { %9952 = vmatmul.mubr.bf16.gmra.mrb[20].mxu1 %v12245_v60 }
 0x436   : > { %9955 = vmatprep.mubr.bf16.mxu1 %v12247_v2 }
 0x439   : > { %v12427_v7 = vpop.f32.mrb[48].mxu0 }
 0x43a   : > { %v12429_v47 = vpop.f32.mrb[49].mxu0 }
 0x43b   : > { %v12431_v61 = vpop.f32.mrb[50].mxu0 }
 0x43c   : > { %v12433_v26 = vpop.f32.mrb[51].mxu0 }
 0x43d   : > { %9956 = vmatmul.mubr.bf16.gmra.mrb[24].mxu1 %v12253_v37 }
 0x43e   : > { %9959 = vmatprep.mubr.bf16.mxu1 %v12258_v50  ;;  %v11071_v50 = vld [vmem:[%s13082_s3 + $0x208] sm:$0xff]  }
 0x441   : > { %v12437_v33 = vpop.f32.mrb[52].mxu0 }
 0x442   : > { %v12439_v29 = vpop.f32.mrb[53].mxu0 }
 0x443   : > { %v12441_v20 = vpop.f32.mrb[54].mxu0 }
 0x444   : > { %v12443_v60 = vpop.f32.mrb[55].mxu0 }
 0x445   : > { %9960 = vmatmul.mubr.bf16.gmra.mrb[28].mxu1 %v12160_v52  ;;  %v11072_v52 = vld [vmem:[%s13082_s3 + $0x210] sm:$0xff]  }
 0x446   : > { %9979 = vmatprep.mubr.bf16.mxu1 %v12261_v38  ;;  %v5374_v38 = vld [vmem:[#allocation2 + $0x81] sm:$0xff] }
 0x447   : > { %v5402_v13 = vpack.c.bf16 %v5374_v38, %v5373_v51  ;;  %v5390_v38 = vld [vmem:[#allocation2 + $0x141] sm:$0xff]  ;;  %v5389_v51 = vld [vmem:[#allocation2 + $0x139] sm:$0xff] }
 0x449   : > { %v12447_v2 = vpop.f32.mrb[56].mxu0 }
 0x44a   : > { %v12449_v25 = vpop.f32.mrb[57].mxu0 }
 0x44b   : > { %v12451_v27 = vpop.f32.mrb[58].mxu0 }
 0x44c   : > { %v12453_v37 = vpop.f32.mrb[59].mxu0 }
 0x44d   : > { %9980 = vmatmul.mubr.bf16.vlgmr.msra.gmra.mrb[0].mxu1 %v12266_v8 }
 0x44e   : > { %9983 = vmatprep.mubr.bf16.mxu1 %v12273_v17  ;;  %10012 = vmatpush3.bf16.msra.mxu1 %v11070_v4  ;;  %v11073_v17 = vld [vmem:[%s13082_s3 + $0x218] sm:$0xff]   ;;  %v5408_v4 = vpack.c.bf16 %v5386_v55, %v5385_v58  ;;  %v5686_v58 = vld [vmem:[#allocation2 + $0xca] sm:$0xff] }
 0x44f   : > { %10013 = vmatprep.subr.bf16.mxu1 %v11071_v50  ;;  %v5684_v55 = vld [vmem:[#allocation2 + $0xb2] sm:$0xff] }
 0x451   : > { %v12463_v19 = vpop.f32.mrb[60].mxu0 }
 0x452   : > { %v12465_v23 = vpop.f32.mrb[61].mxu0  ;;  %10014 = vmatpush3.bf16.msra.mxu1 %v11071_v50  ;;  %v5387_v50 = vld [vmem:[#allocation2 + $0x121] sm:$0xff] }
 0x453   : > { %v12467_v10 = vpop.f32.mrb[62].mxu0  ;;  %10015 = vmatprep.subr.bf16.mxu1 %v11072_v52 }
 0x454   : > { %v12469_v8 = vpop.f32.mrb[63].mxu0 }
 0x455   : > { %9984 = vmatmul.mubr.bf16.gmra.mrb[4].mxu1 %v5402_v13  ;;  %v5410_v13 = vpack.c.bf16 %v5390_v38, %v5389_v51  ;;  %v5691_v51 = vld [vmem:[#allocation2 + $0x10a] sm:$0xff] }
 0x456   : > { %9987 = vmatprep.mubr.bf16.mxu1 %v5403_v5  ;;  %10016 = vmatpush3.bf16.msra.mxu1 %v11072_v52  ;;  %v5409_v52 = vpack.c.bf16 %v5388_v35, %v5387_v50  ;;  %v5685_v35 = vld [vmem:[#allocation2 + $0xc2] sm:$0xff] }
 0x457   : > { %10017 = vmatprep.subr.bf16.mxu1 %v11073_v17  ;;  %v5711_v50 = vpack.c.bf16 %v5686_v58, %v5685_v35 }
 0x45a   : > { %10018 = vmatpush3.bf16.msra.mxu1 %v11073_v17  ;;  %v5391_v17 = vld [vmem:[#allocation2 + $0x151] sm:$0xff] }
 0x45b   : > { %10019 = vmatprep.subr.bf16.mxu1 %v11074_v28  ;;  %v5411_v5 = vpack.c.bf16 %v5392_v21, %v5391_v17  ;;  %v5693_v17 = vld [vmem:[#allocation2 + $0x122] sm:$0xff] }
 0x45d   : > { %9988 = vmatmul.mubr.bf16.gmra.mrb[8].mxu1 %v5404_v41  ;;  %v5395_v41 = vld [vmem:[#allocation2 + $0x181] sm:$0xff] }
 0x45e   : > { %9991 = vmatprep.mubr.bf16.mxu1 %v5405_v49  ;;  %10020 = vmatpush3.bf16.msra.mxu1 %v11074_v28  ;;  %v5394_v28 = vld [vmem:[#allocation2 + $0x171] sm:$0xff]  ;;  %v5413_v6 = vpack.c.bf16 %v5396_v59, %v5395_v41  ;;  %v5398_v49 = vld [vmem:[#allocation2 + $0x1a1] sm:$0xff] }
 0x45f   : > { %10021 = vmatprep.subr.bf16.mxu1 %v11075_v24  ;;  %v5412_v62 = vpack.c.bf16 %v5394_v28, %v5393_v34  ;;  %v5695_v34 = vld [vmem:[#allocation2 + $0x13a] sm:$0xff]  ;;  %v5697_v41 = vld [vmem:[#allocation2 + $0x152] sm:$0xff] }
 0x462   : > { %10022 = vmatpush3.bf16.msra.mxu1 %v11075_v24  ;;  %v5397_v24 = vld [vmem:[#allocation2 + $0x199] sm:$0xff] }
 0x463   : > { %10023 = vmatprep.subr.bf16.mxu1 %v11076_v48 }
 0x465   : > { %9992 = vmatmul.mubr.bf16.gmra.mrb[12].mxu1 %v5406_v16  ;;  %v5682_v16 = vld [vmem:[#allocation2 + $0x9a] sm:$0xff] }
 0x466   : > { %9995 = vmatprep.mubr.bf16.mxu1 %v5407_v57  ;;  %10024 = vmatpush3.bf16.msra.mxu1 %v11076_v48  ;;  %v5414_v48 = vpack.c.bf16 %v5398_v49, %v5397_v24  ;;  %v5683_v57 = vld [vmem:[#allocation2 + $0xaa] sm:$0xff] }
 0x467   : > { %10025 = vmatprep.subr.bf16.mxu1 %v11077_v15 }
 0x46a   : > { %10026 = vmatpush3.bf16.msra.mxu1 %v11077_v15  ;;  %v5709_v15 = vpack.c.bf16 %v5682_v16, %v5681_v3  ;;  %v5703_v3 = vld [vmem:[#allocation2 + $0x19a] sm:$0xff]  ;;  %v5704_v16 = vld [vmem:[#allocation2 + $0x1a2] sm:$0xff] }
 0x46d   : > { %9996 = vmatmul.mubr.bf16.gmra.mrb[16].mxu1 %v5408_v4  ;;  %v5710_v4 = vpack.c.bf16 %v5684_v55, %v5683_v57  ;;  %v11078_v57 = vld [vmem:[%s13084_s5 + $0x40] sm:$0xff]   ;;  %v11079_v55 = vld [vmem:[%s13084_s5 + $0x48] sm:$0xff]  }
 0x46e   : > { %9999 = vmatprep.mubr.bf16.mxu1 %v5409_v52  ;;  %v5689_v52 = vld [vmem:[#allocation2 + $0xf2] sm:$0xff]  ;;  %10059 = vmatprep.subr.bf16.mxu1 %v11078_v57 }
 0x475   : > { %10000 = vmatmul.mubr.bf16.gmra.mrb[20].mxu1 %v5410_v13  ;;  %v5692_v13 = vld [vmem:[#allocation2 + $0x112] sm:$0xff] }
 0x476   : > { %10003 = vmatprep.mubr.bf16.mxu1 %v5411_v5  ;;  %v5694_v5 = vld [vmem:[#allocation2 + $0x12a] sm:$0xff]  ;;  %v5714_v28 = vpack.c.bf16 %v5692_v13, %v5691_v51 }
 0x477   : > { %v5715_v59 = vpack.c.bf16 %v5694_v5, %v5693_v17 }
 0x47d   : > { %10004 = vmatmul.mubr.bf16.gmra.mrb[24].mxu1 %v5412_v62  ;;  %v5696_v62 = vld [vmem:[#allocation2 + $0x142] sm:$0xff] }
 0x47e   : > { %10007 = vmatprep.mubr.bf16.mxu1 %v5413_v6  ;;  %v5698_v6 = vld [vmem:[#allocation2 + $0x15a] sm:$0xff]  ;;  %v5716_v24 = vpack.c.bf16 %v5696_v62, %v5695_v34 }
 0x47f   : > { %v5717_v49 = vpack.c.bf16 %v5698_v6, %v5697_v41 }
 0x485   : > { %10008 = vmatmul.mubr.bf16.gmra.mrb[28].mxu1 %v5414_v48  ;;  %v5699_v48 = vld [vmem:[#allocation2 + $0x16a] sm:$0xff] }
 0x486   : > { %10027 = vmatprep.mubr.bf16.mxu1 %v12311_v45  ;;  %v5687_v45 = vld [vmem:[#allocation2 + $0xda] sm:$0xff]  ;;  %v5718_v30 = vpack.c.bf16 %v5700_v42, %v5699_v48 }
 0x48d   : > { %10028 = vmatmul.mubr.bf16.vlgmr.msra.gmra.mrb[0].mxu1 %v12316_v53  ;;  %v5688_v53 = vld [vmem:[#allocation2 + $0xe2] sm:$0xff] }
 0x48e   : > { %10031 = vmatprep.mubr.bf16.mxu1 %v12323_v56  ;;  %v5690_v56 = vld [vmem:[#allocation2 + $0xfa] sm:$0xff]  ;;  %v5712_v38 = vpack.c.bf16 %v5688_v53, %v5687_v45  ;;  %10060 = vmatpush3.bf16.msra.mxu1 %v11078_v57 }
 0x48f   : > { %v5713_v21 = vpack.c.bf16 %v5690_v56, %v5689_v52  ;;  %10061 = vmatprep.subr.bf16.mxu1 %v11079_v55 }
 0x492   : > { %10062 = vmatpush3.bf16.msra.mxu1 %v11079_v55 }
 0x495   : > { %10032 = vmatmul.mubr.bf16.gmra.mrb[4].mxu1 %v5708_v18  ;;  %v5720_v18 = vpack.c.bf16 %v5704_v16, %v5703_v3 }
 0x496   : > { %10035 = vmatprep.mubr.bf16.mxu1 %v5709_v15  ;;  %v5980_v15 = vld [vmem:[%s13089_s10 + $0x8] sm:$0xff] }
 0x497   : > { %6066 = vmatprep.mubr.f32.mxu0 %v5980_v15 }
 0x49d   : > { %10036 = vmatmul.mubr.bf16.gmra.mrb[8].mxu1 %v5710_v4 }
 0x49e   : > { %10039 = vmatprep.mubr.bf16.mxu1 %v5711_v50 }
 0x4a5   : > { %10040 = vmatmul.mubr.bf16.gmra.mrb[12].mxu1 %v5712_v38 }
 0x4a6   : > { %10043 = vmatprep.mubr.bf16.mxu1 %v5713_v21 }
 0x4ad   : > { %10044 = vmatmul.mubr.bf16.gmra.mrb[16].mxu1 %v5714_v28 }
 0x4ae   : > { %10047 = vmatprep.mubr.bf16.mxu1 %v5715_v59 }
 0x4b5   : > { %10048 = vmatmul.mubr.bf16.gmra.mrb[20].mxu1 %v5716_v24 }
 0x4b6   : > { %10051 = vmatprep.mubr.bf16.mxu1 %v5717_v49 }
 0x4bd   : > { %10052 = vmatmul.mubr.bf16.gmra.mrb[24].mxu1 %v5718_v30 }
 0x4be   : > { %10055 = vmatprep.mubr.bf16.mxu1 %v12355_v12  ;;  %v11080_v12 = vld [vmem:[%s13084_s5 + $0x50] sm:$0xff]  }
 0x4bf   : > { %10063 = vmatprep.subr.bf16.mxu1 %v11080_v12 }
 0x4c0   : > { %10064 = vmatpush3.bf16.msra.mxu1 %v11080_v12 }
 0x4c5   : > { %10056 = vmatmul.mubr.bf16.gmra.mrb[28].mxu1 %v5720_v18 }
 0x560   : > { %v10029_v35 = vpop.f32.mrb[0].mxu1 }
 0x561   : > { %v10347_v58 = vadd.f32 %v10029_v35, %v12375_v63  ;;  %v5820_v4 = vpop.f32.mrb[1].mxu1 }
 0x562   : > { %v10348_v50 = vadd.f32 %v5820_v4, %v12377_v22  ;;  %v10030_v45 = vpop.f32.mrb[2].mxu1 }
 0x563   : > { %v10349_v53 = vadd.f32 %v10030_v45, %v12379_v32  ;;  %v5823_v52 = vpop.f32.mrb[3].mxu1 }
 0x564   : > { %v10350_v56 = vadd.f32 %v5823_v52, %v12381_v54 }
 0x565   : > { %v10305_v38 = vpack.c.bf16 %v10349_v53, %v10347_v58 }
 0x566   : > { %v10301_v21 = vpack.c.bf16 %v10350_v56, %v10348_v50 }
 0x568   : > { %v10033_v51 = vpop.f32.mrb[4].mxu1 }
 0x569   : > { %v12508_v13 = vadd.f32 %v10033_v51, %v12391_v1  ;;  %v5836_v17 = vpop.f32.mrb[5].mxu1 }
 0x56a   : > { %v10352_v5 = vadd.f32 %v5836_v17, %v12393_v11  ;;  %v10034_v28 = vpop.f32.mrb[6].mxu1 }
 0x56b   : > { %v10353_v63 = vadd.f32 %v10034_v28, %v12395_v31  ;;  %v5839_v59 = vpop.f32.mrb[7].mxu1 }
 0x56c   : > { %v10354_v22 = vadd.f32 %v5839_v59, %v12397_v36 }
 0x56d   : > { %v10313_v32 = vpack.c.bf16 %v10353_v63, %v12508_v13 }
 0x56e   : > { %v10309_v34 = vpack.c.bf16 %v10354_v22, %v10352_v5 }
 0x570   : > { %v10037_v62 = vpop.f32.mrb[8].mxu1 }
 0x571   : > { %v12515_v54 = vadd.f32 %v10037_v62, %v12407_v39  ;;  %v5852_v41 = vpop.f32.mrb[9].mxu1 }
 0x572   : > { %v10356_v1 = vadd.f32 %v5852_v41, %v12409_v44  ;;  %v10038_v6 = vpop.f32.mrb[10].mxu1  ;;  %v5985_v41 = vld [vmem:[%s13089_s10 + $0x30] sm:$0xff] }
 0x573   : > { %v12519_v24 = vadd.f32 %v10038_v6, %v12411_v0  ;;  %v5855_v11 = vpop.f32.mrb[11].mxu1  ;;  %v5987_v6 = vld [vmem:[%s13089_s10 + $0x40] sm:$0xff] }
 0x574   : > { %v10358_v31 = vadd.f32 %v5855_v11, %v12413_v9  ;;  %v5989_v11 = vld [vmem:[%s13089_s10 + $0x50] sm:$0xff] }
 0x575   : > { %v10321_v36 = vpack.c.bf16 %v12519_v24, %v12515_v54  ;;  %v5986_v54 = vld [vmem:[%s13089_s10 + $0x38] sm:$0xff] }
 0x576   : > { %v10317_v49 = vpack.c.bf16 %v10358_v31, %v10356_v1  ;;  %v5988_v1 = vld [vmem:[%s13089_s10 + $0x48] sm:$0xff]  ;;  %v5990_v24 = vld [vmem:[%s13089_s10 + $0x58] sm:$0xff] }
 0x577   : > { %v5992_v31 = vld [vmem:[%s13089_s10 + $0x68] sm:$0xff] }
 0x578   : > { %v10041_v48 = vpop.f32.mrb[12].mxu1 }
 0x579   : > { %v12525_v42 = vadd.f32 %v10041_v48, %v12417_v43  ;;  %v5868_v39 = vpop.f32.mrb[13].mxu1  ;;  %v5993_v48 = vld [vmem:[%s13089_s10 + $0x70] sm:$0xff] }
 0x57a   : > { %v10360_v30 = vadd.f32 %v5868_v39, %v12419_v46  ;;  %v10042_v3 = vpop.f32.mrb[14].mxu1  ;;  %v11082_v39 = vld [vmem:[%s13084_s5 + $0x60] sm:$0xff]  }
 0x57b   : > { %v10361_v44 = vadd.f32 %v10042_v3, %v12421_v14  ;;  %v5871_v16 = vpop.f32.mrb[15].mxu1  ;;  %v11084_v3 = vld [vmem:[%s13084_s5 + $0x70] sm:$0xff]  }
 0x57c   : > { %v10362_v0 = vadd.f32 %v5871_v16, %v12423_v40  ;;  %v11086_v16 = vld [vmem:[%s13084_s5] sm:$0xff]  }
 0x57d   : > { %v10329_v18 = vpack.c.bf16 %v10361_v44, %v12525_v42  ;;  %v11081_v42 = vld [vmem:[%s13084_s5 + $0x58] sm:$0xff]  }
 0x57e   : > { %v10325_v9 = vpack.c.bf16 %v10362_v0, %v10360_v30  ;;  %10065 = vmatprep.subr.bf16.mxu1 %v11081_v42  ;;  %v11083_v30 = vld [vmem:[%s13084_s5 + $0x68] sm:$0xff]   ;;  %v11085_v44 = vld [vmem:[%s13084_s5 + $0x78] sm:$0xff]  }
 0x57f   : > { %10066 = vmatpush3.bf16.msra.mxu1 %v11081_v42 }
 0x580   : > { %v10045_v15 = vpop.f32.mrb[16].mxu1  ;;  %10067 = vmatprep.subr.bf16.mxu1 %v11082_v39 }
 0x581   : > { %v10363_v57 = vadd.f32 %v10045_v15, %v12427_v7  ;;  %v5884_v55 = vpop.f32.mrb[17].mxu1 }
 0x582   : > { %v10364_v12 = vadd.f32 %v5884_v55, %v12429_v47  ;;  %v10046_v43 = vpop.f32.mrb[18].mxu1 }
 0x583   : > { %v10365_v35 = vadd.f32 %v10046_v43, %v12431_v61  ;;  %v5887_v58 = vpop.f32.mrb[19].mxu1  ;;  %10068 = vmatpush3.bf16.msra.mxu1 %v11082_v39 }
 0x584   : > { %v10366_v46 = vadd.f32 %v5887_v58, %v12433_v26  ;;  %10069 = vmatprep.subr.bf16.mxu1 %v11083_v30  ;;  %v6160_v58 = vld [vmem:[#allocation3 + $0x1] sm:$0xff] }
 0x585   : > { %v10303_v4 = vpack.c.bf16 %v10365_v35, %v10363_v57 }
 0x586   : > { %v10299_v14 = vpack.c.bf16 %v10366_v46, %v10364_v12 }
 0x587   : > { %10070 = vmatpush3.bf16.msra.mxu1 %v11083_v30 }
 0x588   : > { %v10049_v50 = vpop.f32.mrb[20].mxu1  ;;  %10300 = vmatprep.subr.bf16.mxu0 %v10299_v14  ;;  %10071 = vmatprep.subr.bf16.mxu1 %v11084_v3 }
 0x589   : > { %v10367_v40 = vadd.f32 %v10049_v50, %v12437_v33  ;;  %v5900_v45 = vpop.f32.mrb[21].mxu1  ;;  %10302 = vmatpush3.bf16.msra.mxu0 %v10301_v21 }
 0x58a   : > { %v10368_v53 = vadd.f32 %v5900_v45, %v12439_v29  ;;  %v10050_v7 = vpop.f32.mrb[22].mxu1  ;;  %10304 = vmatprep.subr.bf16.mxu0 %v10303_v4 }
 0x58b   : > { %v10369_v47 = vadd.f32 %v10050_v7, %v12441_v20  ;;  %v5903_v52 = vpop.f32.mrb[23].mxu1  ;;  %10072 = vmatpush3.bf16.msra.mxu1 %v11084_v3 }
 0x58c   : > { %v10370_v61 = vadd.f32 %v5903_v52, %v12443_v60  ;;  %10073 = vmatprep.subr.bf16.mxu1 %v11085_v44 }
 0x58d   : > { %v10311_v56 = vpack.c.bf16 %v10369_v47, %v10367_v40  ;;  %10306 = vmatpush3.bf16.msra.mxu0 %v10305_v38 }
 0x58e   : > { %v10307_v26 = vpack.c.bf16 %v10370_v61, %v10368_v53 }
 0x58f   : > { %10074 = vmatpush3.bf16.msra.mxu1 %v11085_v44 }
 0x590   : > { %v10053_v51 = vpop.f32.mrb[24].mxu1  ;;  %10308 = vmatprep.subr.bf16.mxu0 %v10307_v26  ;;  %10083 = vmatprep.subr.bf16.mxu1 %v11086_v16 }
 0x591   : > { %v10371_v13 = vadd.f32 %v10053_v51, %v12447_v2  ;;  %v5916_v17 = vpop.f32.mrb[25].mxu1  ;;  %10310 = vmatpush3.bf16.msra.mxu0 %v10309_v34 }
 0x592   : > { %v10372_v33 = vadd.f32 %v5916_v17, %v12449_v25  ;;  %v10054_v21 = vpop.f32.mrb[26].mxu1  ;;  %10312 = vmatprep.subr.bf16.mxu0 %v10311_v56 }
 0x593   : > { %v10373_v29 = vadd.f32 %v10054_v21, %v12451_v27  ;;  %v5919_v5 = vpop.f32.mrb[27].mxu1 }
 0x594   : > { %v10374_v20 = vadd.f32 %v5919_v5, %v12453_v37 }
 0x595   : > { %v10319_v28 = vpack.c.bf16 %v10373_v29, %v10371_v13  ;;  %10314 = vmatpush3.bf16.msra.mxu0 %v10313_v32  ;;  %v5983_v32 = vld [vmem:[%s13089_s10 + $0x20] sm:$0xff] }
 0x596   : > { %v10315_v60 = vpack.c.bf16 %v10374_v20, %v10372_v33 }
 0x598   : > { %v10057_v38 = vpop.f32.mrb[28].mxu1  ;;  %10316 = vmatprep.subr.bf16.mxu0 %v10315_v60 }
 0x599   : > { %v10375_v63 = vadd.f32 %v10057_v38, %v12463_v19  ;;  %v5932_v59 = vpop.f32.mrb[29].mxu1  ;;  %10318 = vmatpush3.bf16.msra.mxu0 %v10317_v49  ;;  %v5979_v19 = vld [vmem:[%s13089_s10] sm:$0xff]  ;;  %v5994_v49 = vld [vmem:[%s13089_s10 + $0x78] sm:$0xff] }
 0x59a   : > { %v10376_v2 = vadd.f32 %v5932_v59, %v12465_v23  ;;  %v10058_v22 = vpop.f32.mrb[30].mxu1  ;;  %10320 = vmatprep.subr.bf16.mxu0 %v10319_v28  ;;  %v5982_v23 = vld [vmem:[%s13089_s10 + $0x18] sm:$0xff]  ;;  %v11087_v28 = vld [vmem:[%s13084_s5 + $0x8] sm:$0xff]  }
 0x59b   : > { %v10377_v25 = vadd.f32 %v10058_v22, %v12467_v10  ;;  %v5935_v34 = vpop.f32.mrb[31].mxu1  ;;  %v5981_v10 = vld [vmem:[%s13089_s10 + $0x10] sm:$0xff] }
 0x59c   : > { %v10378_v27 = vadd.f32 %v5935_v34, %v12469_v8  ;;  %v5984_v8 = vld [vmem:[%s13089_s10 + $0x28] sm:$0xff]  ;;  %v11088_v34 = vld [vmem:[%s13084_s5 + $0x10] sm:$0xff]  }
 0x59d   : > { %v10327_v62 = vpack.c.bf16 %v10377_v25, %v10375_v63  ;;  %10322 = vmatpush3.bf16.msra.mxu0 %v10321_v36  ;;  %v5991_v36 = vld [vmem:[%s13089_s10 + $0x60] sm:$0xff] }
 0x59e   : > { %v10323_v37 = vpack.c.bf16 %v10378_v27, %v10376_v2 }
 0x5a0   : > { %10324 = vmatprep.subr.bf16.mxu0 %v10323_v37 }
 0x5a1   : > { %10326 = vmatpush3.bf16.msra.mxu0 %v10325_v9 }
 0x5a2   : > { %10328 = vmatprep.subr.bf16.mxu0 %v10327_v62 }
 0x5a5   : > { %10330 = vmatpush3.bf16.msra.mxu0 %v10329_v18  ;;  %v12613_v18 = vld [vmem:[%s13083_s4] ss:$0 sm:$0xff] }
 0x5a8   : > { %6067 = vmatmul.mubr.f32.vlgmr.msra.gmra.mrb[64].mxu0 %v5979_v19 }
 0x5a9   : > { %6071 = vmatprep.mubr.f32.mxu0 %v5982_v23 }
 0x5ac   : > { %6072 = vmatmul.mubr.f32.gmra.mrb[66].mxu0 %v5981_v10 }
 0x5ad   : > { %6076 = vmatprep.mubr.f32.mxu0 %v5984_v8 }
 0x5b0   : > { %6077 = vmatmul.mubr.f32.gmra.mrb[68].mxu0 %v5983_v32 }
 0x5b1   : > { %6081 = vmatprep.mubr.f32.mxu0 %v5986_v54 }
 0x5b4   : > { %6082 = vmatmul.mubr.f32.gmra.mrb[70].mxu0 %v5985_v41  ;;  %v11089_v41 = vld [vmem:[%s13084_s5 + $0x18] sm:$0xff]  }
 0x5b5   : > { %6086 = vmatprep.mubr.f32.mxu0 %v5988_v1 }
 0x5b8   : > { %6087 = vmatmul.mubr.f32.gmra.mrb[72].mxu0 %v5987_v6 }
 0x5b9   : > { %6091 = vmatprep.mubr.f32.mxu0 %v5990_v24 }
 0x5bc   : > { %6092 = vmatmul.mubr.f32.gmra.mrb[74].mxu0 %v5989_v11 }
 0x5bd   : > { %6096 = vmatprep.mubr.f32.mxu0 %v5992_v31 }
 0x5c0   : > { %6097 = vmatmul.mubr.f32.gmra.mrb[76].mxu0 %v5991_v36 }
 0x5c1   : > { %6101 = vmatprep.mubr.f32.mxu0 %v5994_v49 }
 0x5c4   : > { %6102 = vmatmul.mubr.f32.gmra.mrb[78].mxu0 %v5993_v48  ;;  %v11090_v48 = vld [vmem:[%s13084_s5 + $0x20] sm:$0xff]  }
 0x67b   : > { %v9051_v0 = vpop.f32.mrb[64].mxu0 }
 0x67c   : > { %v9052_v9 = vpop.f32.mrb[65].mxu0 }
 0x67d   : > { %v9053_v15 = vadd.f32 %v9052_v9, %v9051_v0  ;;  %v11091_v9 = vld [vmem:[%s13084_s5 + $0x28] sm:$0xff]  }
 0x67f   : > { %v6069_v57 = vadd.f32 %v9053_v15, %v12613_v18  ;;  %v9054_v55 = vpop.f32.mrb[66].mxu0 }
 0x680   : > { %v9055_v12 = vpop.f32.mrb[67].mxu0 }
 0x681   : > { %v6107_v43 = vmul.f32 0.1, %v6069_v57  ;;  %v9056_v35 = vadd.f32 %v9055_v12, %v9054_v55  ;;  %v12694_v55 = vld [vmem:[#allocation2] sm:$0xff] }
 0x683   : > { %v12616_v46 = vmax.f32 %v6069_v57, %v6107_v43  ;;  %v6074_v4 = vadd.f32 %v9056_v35, %v12613_v18  ;;  %v9057_v14 = vpop.f32.mrb[68].mxu0 }
 0x684   : > { %v9058_v50 = vpop.f32.mrb[69].mxu0 }
 0x685   : > { %6124 = vst [vmem:[#allocation3 + $0x11] sm:$0xff] %v12616_v46  ;;  %v6108_v40 = vmul.f32 0.1, %v6074_v4  ;;  %v9059_v45 = vadd.f32 %v9058_v50, %v9057_v14  ;;  %v6168_v53 = vpack.c.bf16 %v12616_v46, %v6160_v58  ;;  %v11092_v58 = vld [vmem:[%s13084_s5 + $0x30] sm:$0xff]   ;;  %v11093_v50 = vld [vmem:[%s13084_s5 + $0x38] sm:$0xff]  }
 0x687   : > { %v12621_v7 = vmax.f32 %v6074_v4, %v6108_v40  ;;  %v6079_v47 = vadd.f32 %v9059_v45, %v12613_v18  ;;  %v9060_v52 = vpop.f32.mrb[70].mxu0  ;;  %10075 = vmatprep.mubr.bf16.mxu1 %v6168_v53  ;;  %v11094_v40 = vld [vmem:[%s13084_s5 + $0x80] sm:$0xff]  }
 0x688   : > { %v9061_v61 = vpop.f32.mrb[71].mxu0 }
 0x689   : > { %6125 = vst [vmem:[#allocation3 + $0x21] sm:$0xff] %v12621_v7  ;;  %v6109_v56 = vmul.f32 0.1, %v6079_v47  ;;  %v9062_v26 = vadd.f32 %v9061_v61, %v9060_v52  ;;  %v6723_v51 = vpack.c.bf16 %v12621_v7, %v12616_v46  ;;  %v11095_v61 = vld [vmem:[%s13084_s5 + $0x88] sm:$0xff]   ;;  %v11117_v46 = vld [vmem:[%s13084_s5 + $0x138] sm:$0xff]  }
 0x68b   : > { %v12627_v13 = vmax.f32 %v6079_v47, %v6109_v56  ;;  %v6084_v17 = vadd.f32 %v9062_v26, %v12613_v18  ;;  %v9063_v33 = vpop.f32.mrb[72].mxu0 }
 0x68c   : > { %v9064_v21 = vpop.f32.mrb[73].mxu0  ;;  %v12648_v27 = vld [vmem:[#allocation3 + $0x12] sm:$0xff] }
 0x68d   : > { %6126 = vst [vmem:[#allocation3 + $0x31] sm:$0xff] %v12627_v13  ;;  %v6110_v29 = vmul.f32 0.1, %v6084_v17  ;;  %v9065_v5 = vadd.f32 %v9064_v21, %v9063_v33  ;;  %v12633_v20 = vpack.c.bf16 %v12627_v13, %v12621_v7  ;;  %v6415_v21 = vld [vmem:[#allocation3 + $0x2] sm:$0xff]  ;;  %v11118_v7 = vld [vmem:[%s13084_s5 + $0x140] sm:$0xff]  }
 0x68f   : > { %v12638_v60 = vmax.f32 %v6084_v17, %v6110_v29  ;;  %v6089_v38 = vadd.f32 %v9065_v5, %v12613_v18  ;;  %v9066_v63 = vpop.f32.mrb[74].mxu0  ;;  %10076 = vmatmul.mubr.bf16.vlgmr.msra.gmra.mrb[32].mxu1 %v12633_v20  ;;  %v11096_v17 = vld [vmem:[%s13084_s5 + $0x90] sm:$0xff]  }
 0x690   : > { %v9067_v59 = vpop.f32.mrb[75].mxu0  ;;  %10084 = vmatpush3.bf16.msra.mxu1 %v11086_v16  ;;  %v12642_v2 = vld [vmem:[#allocation3 + $0x22] sm:$0xff]  ;;  %v12683_v16 = vld [vmem:[#allocation3 + $0x10] sm:$0xff] }
 0x691   : > { %6127 = vst [vmem:[#allocation3 + $0x41] sm:$0xff] %v12638_v60  ;;  %v6111_v22 = vmul.f32 0.1, %v6089_v38  ;;  %v9068_v25 = vadd.f32 %v9067_v59, %v9066_v63  ;;  %10085 = vmatprep.subr.bf16.mxu1 %v11087_v28  ;;  %v6724_v62 = vpack.c.bf16 %v12638_v60, %v12627_v13  ;;  %v6873_v37 = vpack.c.bf16 %v12642_v2, %v12648_v27  ;;  %v6134_v47 = vld [vmem:[#allocation3 + $0x20] sm:$0xff]  ;;  %v11098_v63 = vld [vmem:[%s13084_s5 + $0xa0] sm:$0xff]   ;;  %v11099_v59 = vld [vmem:[%s13084_s5 + $0xa8] sm:$0xff]  }
 0x692   : > { %v6140_v12 = vpack.c.bf16 %v12683_v16, %v12694_v55  ;;  %v12862_v13 = vld [vmem:[%s13086_s7] sm:$0xff]  }
 0x693   : > { %v12654_v19 = vmax.f32 %v6089_v38, %v6111_v22  ;;  %v6094_v23 = vadd.f32 %v9068_v25, %v12613_v18  ;;  %v9069_v10 = vpop.f32.mrb[76].mxu0  ;;  %v6423_v38 = vpack.c.bf16 %v12648_v27, %v6415_v21  ;;  %v11100_v22 = vld [vmem:[%s13084_s5 + $0xb0] sm:$0xff]   ;;  %v11101_v25 = vld [vmem:[%s13084_s5 + $0xb8] sm:$0xff]   ;;  %10275 = vmatprep.subr.bf16.mxu0 %v12862_v13 }
 0x694   : > { %v9070_v8 = vpop.f32.mrb[77].mxu0  ;;  %10086 = vmatpush3.bf16.msra.mxu1 %v11087_v28  ;;  %v12675_v39 = vld [vmem:[#allocation3 + $0x32] sm:$0xff]  ;;  %v11097_v28 = vld [vmem:[%s13084_s5 + $0x98] sm:$0xff]   ;;  %10276 = vmatpush3.bf16.msra.mxu0 %v12862_v13 }
 0x695   : > { %6128 = vst [vmem:[#allocation3 + $0x51] sm:$0xff] %v12654_v19  ;;  %v6112_v32 = vmul.f32 0.1, %v6094_v23  ;;  %v9071_v54 = vadd.f32 %v9070_v8, %v9069_v10  ;;  %10087 = vmatprep.subr.bf16.mxu1 %v11088_v34  ;;  %v12663_v1 = vpack.c.bf16 %v12654_v19, %v12638_v60  ;;  %v12719_v45 = vld [vmem:[#allocation3 + $0x30] sm:$0xff]  ;;  %v11103_v10 = vld [vmem:[%s13084_s5 + $0xc8] sm:$0xff]   ;;  %v12891_v27 = vld [vmem:[%s13086_s7 + $0x18] sm:$0xff]  }
 0x696   : > { %v12724_v52 = vpack.c.bf16 %v12719_v45, %v6134_v47  ;;  %v12867_v60 = vld [vmem:[%s13086_s7 + $0x8] sm:$0xff]  }
 0x697   : > { %v12665_v6 = vmax.f32 %v6094_v23, %v6112_v32  ;;  %v6099_v24 = vadd.f32 %v9071_v54, %v12613_v18  ;;  %10079 = vmatprep.mubr.bf16.mxu1 %v12663_v1  ;;  %v9072_v11 = vpop.f32.mrb[78].mxu0  ;;  %v12767_v23 = vpack.c.bf16 %v12675_v39, %v12642_v2  ;;  %v11104_v32 = vld [vmem:[%s13084_s5 + $0xd0] sm:$0xff]   ;;  %10277 = vmatprep.subr.bf16.mxu0 %v12867_v60  ;;  %v11123_v2 = vld [vmem:[%s13084_s5 + $0x168] sm:$0xff]  }
 0x698   : > { %10088 = vmatpush3.bf16.msra.mxu1 %v11088_v34  ;;  %v9073_v31 = vpop.f32.mrb[79].mxu0  ;;  %v12669_v36 = vld [vmem:[#allocation3 + $0x42] sm:$0xff]  ;;  %v11102_v34 = vld [vmem:[%s13084_s5 + $0xc0] sm:$0xff]   ;;  %10278 = vmatpush3.bf16.msra.mxu0 %v12867_v60 }
 0x699   : > { %6129 = vst [vmem:[#allocation3 + $0x61] sm:$0xff] %v12665_v6  ;;  %v6113_v49 = vmul.f32 0.1, %v6099_v24  ;;  %10089 = vmatprep.subr.bf16.mxu1 %v11089_v41  ;;  %v9074_v42 = vadd.f32 %v9073_v31, %v9072_v11  ;;  %v6725_v30 = vpack.c.bf16 %v12665_v6, %v12654_v19  ;;  %v6874_v3 = vpack.c.bf16 %v12669_v36, %v12675_v39  ;;  %v12729_v56 = vld [vmem:[#allocation3 + $0x40] sm:$0xff]  ;;  %v11106_v31 = vld [vmem:[%s13084_s5 + $0xe0] sm:$0xff]  }
 0x69a   : > { %v6573_v11 = vpack.c.bf16 %v6134_v47, %v12683_v16  ;;  %v11110_v16 = vld [vmem:[%s13084_s5 + $0x100] sm:$0xff]   ;;  %v11116_v47 = vld [vmem:[%s13084_s5 + $0x130] sm:$0xff]  }
 0x69b   : > { %v12681_v44 = vmax.f32 %v6099_v24, %v6113_v49  ;;  %v6104_v0 = vadd.f32 %v9074_v42, %v12613_v18  ;;  %v11105_v24 = vld [vmem:[%s13084_s5 + $0xd8] sm:$0xff]   ;;  %v11107_v49 = vld [vmem:[%s13084_s5 + $0xe8] sm:$0xff]   ;;  %v12881_v19 = vld [vmem:[%s13086_s7 + $0x10] sm:$0xff]  }
 0x69c   : > { %10090 = vmatpush3.bf16.msra.mxu1 %v11089_v41  ;;  %v12701_v43 = vld [vmem:[#allocation3 + $0x52] sm:$0xff]  ;;  %v11109_v42 = vld [vmem:[%s13084_s5 + $0xf8] sm:$0xff]   ;;  %10279 = vmatprep.subr.bf16.mxu0 %v12881_v19 }
 0x69d   : > { %6130 = vst [vmem:[#allocation3 + $0x71] sm:$0xff] %v12681_v44  ;;  %10091 = vmatprep.subr.bf16.mxu1 %v11090_v48  ;;  %v12692_v15 = vpack.c.bf16 %v12681_v44, %v12665_v6  ;;  %v6114_v57 = vmul.f32 0.1, %v6104_v0  ;;  %v12721_v53 = vld [vmem:[#allocation3 + $0x50] sm:$0xff]  ;;  %v12774_v8 = vpack.c.bf16 %v12701_v43, %v12669_v36  ;;  %10280 = vmatpush3.bf16.msra.mxu0 %v12881_v19  ;;  %v11129_v36 = vld [vmem:[%s13084_s5 + $0x198] sm:$0xff]  }
 0x69e   : > { %v12733_v26 = vpack.c.bf16 %v12721_v53, %v12729_v56  ;;  %10281 = vmatprep.subr.bf16.mxu0 %v12891_v27  ;;  %v12901_v6 = vld [vmem:[%s13086_s7 + $0x20] sm:$0xff]  }
 0x69f   : > { %10080 = vmatmul.mubr.bf16.gmra.mrb[36].mxu1 %v12692_v15  ;;  %v12699_v18 = vmax.f32 %v6104_v0, %v6114_v57  ;;  %v6574_v0 = vpack.c.bf16 %v12729_v56, %v12719_v45  ;;  %v11114_v45 = vld [vmem:[%s13084_s5 + $0x120] sm:$0xff]   ;;  %v11121_v56 = vld [vmem:[%s13084_s5 + $0x158] sm:$0xff]  }
 0x6a0   : > { %10092 = vmatpush3.bf16.msra.mxu1 %v11090_v48  ;;  %10099 = vmatprep.mubr.bf16.mxu1 %v6140_v12  ;;  %v12703_v35 = vld [vmem:[#allocation3 + $0x62] sm:$0xff]  ;;  %v11130_v39 = vld [vmem:[%s13084_s5 + $0x1a0] sm:$0xff]  }
 0x6a1   : > { %10093 = vmatprep.subr.bf16.mxu1 %v11091_v9  ;;  %6131 = vst [vmem:[#allocation3 + $0x81] sm:$0xff] %v12699_v18  ;;  %v6726_v4 = vpack.c.bf16 %v12699_v18, %v12681_v44  ;;  %v6875_v14 = vpack.c.bf16 %v12703_v35, %v12701_v43  ;;  %v6138_v29 = vld [vmem:[#allocation3 + $0x60] sm:$0xff]  ;;  %10282 = vmatpush3.bf16.msra.mxu0 %v12891_v27  ;;  %v11126_v44 = vld [vmem:[%s13084_s5 + $0x180] sm:$0xff]  }
 0x6a2   : > { %v11108_v48 = vld [vmem:[%s13084_s5 + $0xf0] sm:$0xff]   ;;  %v6575_v57 = vpack.c.bf16 %v6138_v29, %v12721_v53  ;;  %v11115_v53 = vld [vmem:[%s13084_s5 + $0x128] sm:$0xff]   ;;  %10283 = vmatprep.subr.bf16.mxu0 %v12901_v6 }
 0x6a3   : > { %v11112_v12 = vld [vmem:[%s13084_s5 + $0x110] sm:$0xff]  }
 0x6a4   : > { %10094 = vmatpush3.bf16.msra.mxu1 %v11091_v9  ;;  %v12740_v33 = vld [vmem:[#allocation3 + $0x70] sm:$0xff]  ;;  %v11111_v9 = vld [vmem:[%s13084_s5 + $0x108] sm:$0xff]   ;;  %v11132_v43 = vld [vmem:[%s13084_s5 + $0x1b0] sm:$0xff]  }
 0x6a5   : > { %10095 = vmatprep.subr.bf16.mxu1 %v11092_v58  ;;  %v12743_v5 = vpack.c.bf16 %v12740_v33, %v6138_v29  ;;  %v12781_v54 = vld [vmem:[#allocation3 + $0x72] sm:$0xff]  ;;  %10284 = vmatpush3.bf16.msra.mxu0 %v12901_v6  ;;  %v11136_v29 = vld [vmem:[%s13084_s5 + $0x1d0] sm:$0xff]  }
 0x6a6   : > { %v12785_v41 = vpack.c.bf16 %v12781_v54, %v12703_v35  ;;  %v11133_v35 = vld [vmem:[%s13084_s5 + $0x1b8] sm:$0xff]  }
 0x6a8   : > { %10096 = vmatpush3.bf16.msra.mxu1 %v11092_v58  ;;  %v12816_v58 = vld [vmem:[#allocation3 + $0x80] sm:$0xff] }
 0x6a9   : > { %10097 = vmatprep.subr.bf16.mxu1 %v11093_v50 }
 0x6ac   : > { %10098 = vmatpush3.bf16.msra.mxu1 %v11093_v50  ;;  %v6576_v50 = vpack.c.bf16 %v12816_v58, %v12740_v33  ;;  %v12924_v33 = vld [vmem:[#allocation3 + $0x82] sm:$0xff] }
 0x6ad   : > { %10107 = vmatprep.subr.bf16.mxu1 %v11094_v40  ;;  %v6876_v21 = vpack.c.bf16 %v12924_v33, %v12781_v54 }
 0x6af   : > { %10100 = vmatmul.mubr.bf16.vlgmr.msra.gmra.mrb[32].mxu1 %v12724_v52 }
 0x6b0   : > { %10108 = vmatpush3.bf16.msra.mxu1 %v11094_v40  ;;  %10103 = vmatprep.mubr.bf16.mxu1 %v12733_v26  ;;  %v11113_v40 = vld [vmem:[%s13084_s5 + $0x118] sm:$0xff]  }
 0x6b1   : > { %10109 = vmatprep.subr.bf16.mxu1 %v11095_v61 }
 0x6b4   : > { %10110 = vmatpush3.bf16.msra.mxu1 %v11095_v61  ;;  %v11120_v61 = vld [vmem:[%s13084_s5 + $0x150] sm:$0xff]  }
 0x6b5   : > { %10111 = vmatprep.subr.bf16.mxu1 %v11096_v17 }
 0x6b7   : > { %10104 = vmatmul.mubr.bf16.gmra.mrb[36].mxu1 %v12743_v5 }
 0x6b8   : > { %10112 = vmatpush3.bf16.msra.mxu1 %v11096_v17  ;;  %10123 = vmatprep.mubr.bf16.mxu1 %v6423_v38  ;;  %v11128_v17 = vld [vmem:[%s13084_s5 + $0x190] sm:$0xff]   ;;  %v11137_v38 = vld [vmem:[%s13084_s5 + $0x1d8] sm:$0xff]  }
 0x6b9   : > { %10113 = vmatprep.subr.bf16.mxu1 %v11097_v28 }
 0x6bc   : > { %10114 = vmatpush3.bf16.msra.mxu1 %v11097_v28  ;;  %v7027_v28 = vpack.c.bf16 %v12694_v55, %v12816_v58  ;;  %v11139_v55 = vld [vmem:[%s13084_s5 + $0x1e8] sm:$0xff]  }
 0x6bd   : > { %10115 = vmatprep.subr.bf16.mxu1 %v11098_v63 }
 0x6c0   : > { %10116 = vmatpush3.bf16.msra.mxu1 %v11098_v63  ;;  %v11142_v63 = vld [vmem:[%s13084_s5 + $0x200] sm:$0xff]  }
 0x6c1   : > { %10117 = vmatprep.subr.bf16.mxu1 %v11099_v59 }
 0x6c4   : > { %10118 = vmatpush3.bf16.msra.mxu1 %v11099_v59  ;;  %v11143_v59 = vld [vmem:[%s13084_s5 + $0x208] sm:$0xff]  }
 0x6c5   : > { %10119 = vmatprep.subr.bf16.mxu1 %v11100_v22 }
 0x6c8   : > { %10120 = vmatpush3.bf16.msra.mxu1 %v11100_v22  ;;  %v11144_v22 = vld [vmem:[%s13084_s5 + $0x210] sm:$0xff]  }
 0x6c9   : > { %10121 = vmatprep.subr.bf16.mxu1 %v11101_v25 }
 0x6cc   : > { %10122 = vmatpush3.bf16.msra.mxu1 %v11101_v25  ;;  %v7173_v25 = vld [vmem:[#allocation3 + $0x91] sm:$0xff] }
 0x6cd   : > { %10131 = vmatprep.subr.bf16.mxu1 %v11102_v34 }
 0x6cf   : > { %10124 = vmatmul.mubr.bf16.vlgmr.msra.gmra.mrb[32].mxu1 %v12767_v23 }
 0x6d0   : > { %10127 = vmatprep.mubr.bf16.mxu1 %v12774_v8  ;;  %10132 = vmatpush3.bf16.msra.mxu1 %v11102_v34  ;;  %v7177_v34 = vpack.c.bf16 %v7173_v25, %v12699_v18  ;;  %v11148_v18 = vld [vmem:[%s13084_s5 + $0x230] sm:$0xff]  }
 0x6d1   : > { %10133 = vmatprep.subr.bf16.mxu1 %v11103_v10 }
 0x6d4   : > { %10134 = vmatpush3.bf16.msra.mxu1 %v11103_v10  ;;  %v11145_v10 = vld [vmem:[%s13084_s5 + $0x218] sm:$0xff]  }
 0x6d5   : > { %10135 = vmatprep.subr.bf16.mxu1 %v11104_v32 }
 0x6d7   : > { %10128 = vmatmul.mubr.bf16.gmra.mrb[36].mxu1 %v12785_v41 }
 0x6d8   : > { %10136 = vmatpush3.bf16.msra.mxu1 %v11104_v32  ;;  %10147 = vmatprep.mubr.bf16.mxu1 %v6573_v11  ;;  %v7323_v32 = vld [vmem:[#allocation3 + $0x92] sm:$0xff]  ;;  %v8566_v11 = vld [vmem:[%s13085_s6] ss:$0 sm:$0xff] }
 0x6d9   : > { %10137 = vmatprep.subr.bf16.mxu1 %v11105_v24  ;;  %v7327_v54 = vpack.c.bf16 %v7323_v32, %v12924_v33 }
 0x6dc   : > { %10138 = vmatpush3.bf16.msra.mxu1 %v11105_v24  ;;  %v11157_v24 = vld [vmem:[%s13086_s7 + $0x38] sm:$0xff]  }
 0x6dd   : > { %10139 = vmatprep.subr.bf16.mxu1 %v11106_v31 }
 0x6e0   : > { %10140 = vmatpush3.bf16.msra.mxu1 %v11106_v31 }
 0x6e1   : > { %10141 = vmatprep.subr.bf16.mxu1 %v11107_v49 }
 0x6e4   : > { %10142 = vmatpush3.bf16.msra.mxu1 %v11107_v49 }
 0x6e5   : > { %10143 = vmatprep.subr.bf16.mxu1 %v11108_v48 }
 0x6e8   : > { %10144 = vmatpush3.bf16.msra.mxu1 %v11108_v48 }
 0x6e9   : > { %10145 = vmatprep.subr.bf16.mxu1 %v11109_v42 }
 0x6ec   : > { %10146 = vmatpush3.bf16.msra.mxu1 %v11109_v42 }
 0x6ed   : > { %10155 = vmatprep.subr.bf16.mxu1 %v11110_v16 }
 0x6ef   : > { %10148 = vmatmul.mubr.bf16.vlgmr.msra.gmra.mrb[32].mxu1 %v6574_v0 }
 0x6f0   : > { %10151 = vmatprep.mubr.bf16.mxu1 %v6575_v57  ;;  %10156 = vmatpush3.bf16.msra.mxu1 %v11110_v16 }
 0x6f1   : > { %10157 = vmatprep.subr.bf16.mxu1 %v11111_v9 }
 0x6f4   : > { %10158 = vmatpush3.bf16.msra.mxu1 %v11111_v9 }
 0x6f5   : > { %10159 = vmatprep.subr.bf16.mxu1 %v11112_v12 }
 0x6f7   : > { %10152 = vmatmul.mubr.bf16.gmra.mrb[36].mxu1 %v6576_v50 }
 0x6f8   : > { %10160 = vmatpush3.bf16.msra.mxu1 %v11112_v12  ;;  %10171 = vmatprep.mubr.bf16.mxu1 %v6723_v51  ;;  %v11119_v51 = vld [vmem:[%s13084_s5 + $0x148] sm:$0xff]  }
 0x6f9   : > { %10161 = vmatprep.subr.bf16.mxu1 %v11113_v40 }
 0x6fc   : > { %10162 = vmatpush3.bf16.msra.mxu1 %v11113_v40 }
 0x6fd   : > { %10163 = vmatprep.subr.bf16.mxu1 %v11114_v45 }
 0x700   : > { %10164 = vmatpush3.bf16.msra.mxu1 %v11114_v45 }
 0x701   : > { %10165 = vmatprep.subr.bf16.mxu1 %v11115_v53 }
 0x704   : > { %10166 = vmatpush3.bf16.msra.mxu1 %v11115_v53 }
 0x705   : > { %10167 = vmatprep.subr.bf16.mxu1 %v11116_v47 }
 0x708   : > { %10168 = vmatpush3.bf16.msra.mxu1 %v11116_v47 }
 0x709   : > { %10169 = vmatprep.subr.bf16.mxu1 %v11117_v46 }
 0x70c   : > { %10170 = vmatpush3.bf16.msra.mxu1 %v11117_v46 }
 0x70d   : > { %10179 = vmatprep.subr.bf16.mxu1 %v11118_v7 }
 0x70f   : > { %10172 = vmatmul.mubr.bf16.vlgmr.msra.gmra.mrb[32].mxu1 %v6724_v62  ;;  %v11122_v62 = vld [vmem:[%s13084_s5 + $0x160] sm:$0xff]  }
 0x710   : > { %10175 = vmatprep.mubr.bf16.mxu1 %v6725_v30  ;;  %10180 = vmatpush3.bf16.msra.mxu1 %v11118_v7  ;;  %v11125_v30 = vld [vmem:[%s13084_s5 + $0x178] sm:$0xff]  }
 0x711   : > { %10181 = vmatprep.subr.bf16.mxu1 %v11119_v51 }
 0x714   : > { %10182 = vmatpush3.bf16.msra.mxu1 %v11119_v51 }
 0x715   : > { %10183 = vmatprep.subr.bf16.mxu1 %v11120_v61 }
 0x717   : > { %10176 = vmatmul.mubr.bf16.gmra.mrb[36].mxu1 %v6726_v4  ;;  %v11127_v4 = vld [vmem:[%s13084_s5 + $0x188] sm:$0xff]  }
 0x718   : > { %10184 = vmatpush3.bf16.msra.mxu1 %v11120_v61  ;;  %10195 = vmatprep.mubr.bf16.mxu1 %v6873_v37  ;;  %v11124_v37 = vld [vmem:[%s13084_s5 + $0x170] sm:$0xff]  }
 0x719   : > { %10185 = vmatprep.subr.bf16.mxu1 %v11121_v56 }
 0x71c   : > { %10186 = vmatpush3.bf16.msra.mxu1 %v11121_v56 }
 0x71d   : > { %10187 = vmatprep.subr.bf16.mxu1 %v11122_v62 }
 0x720   : > { %10188 = vmatpush3.bf16.msra.mxu1 %v11122_v62 }
 0x721   : > { %10189 = vmatprep.subr.bf16.mxu1 %v11123_v2 }
 0x724   : > { %10190 = vmatpush3.bf16.msra.mxu1 %v11123_v2 }
 0x725   : > { %10191 = vmatprep.subr.bf16.mxu1 %v11124_v37 }
 0x728   : > { %10192 = vmatpush3.bf16.msra.mxu1 %v11124_v37 }
 0x729   : > { %10193 = vmatprep.subr.bf16.mxu1 %v11125_v30 }
 0x72c   : > { %10194 = vmatpush3.bf16.msra.mxu1 %v11125_v30 }
 0x72d   : > { %10203 = vmatprep.subr.bf16.mxu1 %v11126_v44 }
 0x72f   : > { %10196 = vmatmul.mubr.bf16.vlgmr.msra.gmra.mrb[32].mxu1 %v6874_v3  ;;  %v11131_v3 = vld [vmem:[%s13084_s5 + $0x1a8] sm:$0xff]  }
 0x730   : > { %10199 = vmatprep.mubr.bf16.mxu1 %v6875_v14  ;;  %10204 = vmatpush3.bf16.msra.mxu1 %v11126_v44  ;;  %v11134_v14 = vld [vmem:[%s13084_s5 + $0x1c0] sm:$0xff]  }
 0x731   : > { %10205 = vmatprep.subr.bf16.mxu1 %v11127_v4 }
 0x734   : > { %10206 = vmatpush3.bf16.msra.mxu1 %v11127_v4 }
 0x735   : > { %10207 = vmatprep.subr.bf16.mxu1 %v11128_v17 }
 0x737   : > { %10200 = vmatmul.mubr.bf16.gmra.mrb[36].mxu1 %v6876_v21 }
 0x738   : > { %10208 = vmatpush3.bf16.msra.mxu1 %v11128_v17  ;;  %10219 = vmatprep.mubr.bf16.mxu1 %v12724_v52  ;;  %v11135_v52 = vld [vmem:[%s13084_s5 + $0x1c8] sm:$0xff]  }
 0x739   : > { %10209 = vmatprep.subr.bf16.mxu1 %v11129_v36 }
 0x73c   : > { %10210 = vmatpush3.bf16.msra.mxu1 %v11129_v36 }
 0x73d   : > { %10211 = vmatprep.subr.bf16.mxu1 %v11130_v39 }
 0x740   : > { %10212 = vmatpush3.bf16.msra.mxu1 %v11130_v39 }
 0x741   : > { %10213 = vmatprep.subr.bf16.mxu1 %v11131_v3 }
 0x744   : > { %10214 = vmatpush3.bf16.msra.mxu1 %v11131_v3  ;;  %v8567_v3 = vld [vmem:[%s13087_s8] ss:$0 sm:$0xff] }
 0x745   : > { %10215 = vmatprep.subr.bf16.mxu1 %v11132_v43 }
 0x748   : > { %10216 = vmatpush3.bf16.msra.mxu1 %v11132_v43 }
 0x749   : > { %10217 = vmatprep.subr.bf16.mxu1 %v11133_v35 }
 0x74c   : > { %10218 = vmatpush3.bf16.msra.mxu1 %v11133_v35 }
 0x74d   : > { %10227 = vmatprep.subr.bf16.mxu1 %v11134_v14 }
 0x74f   : > { %10220 = vmatmul.mubr.bf16.vlgmr.msra.gmra.mrb[32].mxu1 %v12733_v26  ;;  %v11138_v26 = vld [vmem:[%s13084_s5 + $0x1e0] sm:$0xff]  }
 0x750   : > { %10223 = vmatprep.mubr.bf16.mxu1 %v12743_v5  ;;  %10228 = vmatpush3.bf16.msra.mxu1 %v11134_v14  ;;  %v11140_v5 = vld [vmem:[%s13084_s5 + $0x1f0] sm:$0xff]  }
 0x751   : > { %10229 = vmatprep.subr.bf16.mxu1 %v11135_v52 }
 0x754   : > { %10230 = vmatpush3.bf16.msra.mxu1 %v11135_v52 }
 0x755   : > { %10231 = vmatprep.subr.bf16.mxu1 %v11136_v29 }
 0x757   : > { %10224 = vmatmul.mubr.bf16.gmra.mrb[36].mxu1 %v7027_v28 }
 0x758   : > { %10232 = vmatpush3.bf16.msra.mxu1 %v11136_v29  ;;  %10243 = vmatprep.mubr.bf16.mxu1 %v12633_v20  ;;  %v11141_v20 = vld [vmem:[%s13084_s5 + $0x1f8] sm:$0xff]  }
 0x759   : > { %10233 = vmatprep.subr.bf16.mxu1 %v11137_v38 }
 0x75c   : > { %10234 = vmatpush3.bf16.msra.mxu1 %v11137_v38 }
 0x75d   : > { %10235 = vmatprep.subr.bf16.mxu1 %v11138_v26 }
 0x760   : > { %10236 = vmatpush3.bf16.msra.mxu1 %v11138_v26 }
 0x761   : > { %10237 = vmatprep.subr.bf16.mxu1 %v11139_v55 }
 0x764   : > { %10238 = vmatpush3.bf16.msra.mxu1 %v11139_v55 }
 0x765   : > { %10239 = vmatprep.subr.bf16.mxu1 %v11140_v5 }
 0x768   : > { %10240 = vmatpush3.bf16.msra.mxu1 %v11140_v5 }
 0x769   : > { %10241 = vmatprep.subr.bf16.mxu1 %v11141_v20 }
 0x76c   : > { %10242 = vmatpush3.bf16.msra.mxu1 %v11141_v20 }
 0x76d   : > { %10251 = vmatprep.subr.bf16.mxu1 %v11142_v63 }
 0x76f   : > { %10244 = vmatmul.mubr.bf16.vlgmr.msra.gmra.mrb[32].mxu1 %v12663_v1  ;;  %v11146_v1 = vld [vmem:[%s13084_s5 + $0x220] sm:$0xff]  }
 0x770   : > { %10247 = vmatprep.mubr.bf16.mxu1 %v12692_v15  ;;  %10252 = vmatpush3.bf16.msra.mxu1 %v11142_v63  ;;  %v11147_v15 = vld [vmem:[%s13084_s5 + $0x228] sm:$0xff]  }
 0x771   : > { %10253 = vmatprep.subr.bf16.mxu1 %v11143_v59 }
 0x774   : > { %10254 = vmatpush3.bf16.msra.mxu1 %v11143_v59 }
 0x775   : > { %10255 = vmatprep.subr.bf16.mxu1 %v11144_v22 }
 0x777   : > { %10248 = vmatmul.mubr.bf16.gmra.mrb[36].mxu1 %v7177_v34  ;;  %v7688_v34 = vlaneseq }
 0x778   : > { %10256 = vmatpush3.bf16.msra.mxu1 %v11144_v22  ;;  %10267 = vmatprep.mubr.bf16.mxu1 %v12767_v23  ;;  %v11149_v23 = vld [vmem:[%s13084_s5 + $0x238] sm:$0xff]  }
 0x779   : > { %10257 = vmatprep.subr.bf16.mxu1 %v11145_v10 }
 0x77c   : > { %10258 = vmatpush3.bf16.msra.mxu1 %v11145_v10 }
 0x77d   : > { %10259 = vmatprep.subr.bf16.mxu1 %v11146_v1 }
 0x780   : > { %10260 = vmatpush3.bf16.msra.mxu1 %v11146_v1 }
 0x781   : > { %10261 = vmatprep.subr.bf16.mxu1 %v11147_v15 }
 0x784   : > { %10262 = vmatpush3.bf16.msra.mxu1 %v11147_v15 }
 0x785   : > { %10263 = vmatprep.subr.bf16.mxu1 %v11148_v18 }
 0x788   : > { %10264 = vmatpush3.bf16.msra.mxu1 %v11148_v18 }
 0x789   : > { %10265 = vmatprep.subr.bf16.mxu1 %v11149_v23 }
 0x78c   : > { %10266 = vmatpush3.bf16.msra.mxu1 %v11149_v23 }
 0x78d   : > { %10331 = vmatprep.subr.bf16.mxu1 %v12862_v13 }
 0x78f   : > { %10268 = vmatmul.mubr.bf16.vlgmr.msra.gmra.mrb[32].mxu1 %v12774_v8  ;;  %v11155_v8 = vld [vmem:[%s13086_s7 + $0x28] sm:$0xff]  }
 0x790   : > { %10271 = vmatprep.mubr.bf16.mxu1 %v12785_v41  ;;  %10339 = vmatpush3.bf16.msra.mxu1 %v12862_v13  ;;  %v11156_v41 = vld [vmem:[%s13086_s7 + $0x30] sm:$0xff]  }
 0x791   : > { %10332 = vmatprep.subr.bf16.mxu1 %v12867_v60  ;;  %10285 = vmatprep.subr.bf16.mxu0 %v11155_v8 }
 0x792   : > { %10286 = vmatpush3.bf16.msra.mxu0 %v11155_v8 }
 0x793   : > { %10287 = vmatprep.subr.bf16.mxu0 %v11156_v41 }
 0x794   : > { %10340 = vmatpush3.bf16.msra.mxu1 %v12867_v60 }
 0x795   : > { %10333 = vmatprep.subr.bf16.mxu1 %v12881_v19 }
 0x796   : > { %10288 = vmatpush3.bf16.msra.mxu0 %v11156_v41 }
 0x797   : > { %10272 = vmatmul.mubr.bf16.gmra.mrb[36].mxu1 %v7327_v54  ;;  %10289 = vmatprep.subr.bf16.mxu0 %v11157_v24 }
 0x798   : > { %10341 = vmatpush3.bf16.msra.mxu1 %v12881_v19 }
 0x799   : > { %10334 = vmatprep.subr.bf16.mxu1 %v12891_v27 }
 0x79a   : > { %10290 = vmatpush3.bf16.msra.mxu0 %v11157_v24 }
 0x79c   : > { %10342 = vmatpush3.bf16.msra.mxu1 %v12891_v27 }
 0x79d   : > { %10335 = vmatprep.subr.bf16.mxu1 %v12901_v6 }
 0x7a0   : > { %10343 = vmatpush3.bf16.msra.mxu1 %v12901_v6 }
 0x7a1   : > { %10336 = vmatprep.subr.bf16.mxu1 %v11155_v8 }
 0x7a4   : > { %10344 = vmatpush3.bf16.msra.mxu1 %v11155_v8  ;;  %v7637_v8 = vld [vmem:[%s13088_s9] sm:$0x1] }
 0x7a5   : > { %10337 = vmatprep.subr.bf16.mxu1 %v11156_v41  ;;  %vm7638_vm0 = vcmp.ne.f32.partialorder %v7637_v8, 0.0 }
 0x7a8   : > { %10345 = vmatpush3.bf16.msra.mxu1 %v11156_v41 }
 0x7a9   : > { %10338 = vmatprep.subr.bf16.mxu1 %v11157_v24 }
 0x7ac   : > { %10346 = vmatpush3.bf16.msra.mxu1 %v11157_v24  ;;  %v7689_v24 = vshrl.u32 %v7688_v34, 7 }
 0x862   : > { %v10269_v31 = vpop.f32.mrb[32].mxu1 }
 0x863   : > { %v7475_v49 = vadd.f32 %v10269_v31, %v8566_v11  ;;  %v7427_v48 = vpop.f32.mrb[33].mxu1 }
 0x864   : > { %v7473_v42 = vadd.f32 %v8566_v11, %v7427_v48  ;;  %v10270_v16 = vpop.f32.mrb[34].mxu1 }
 0x865   : > { %v7483_v0 = vmul.f32 0.1, %v7475_v49  ;;  %v7476_v9 = vadd.f32 %v10270_v16, %v8566_v11  ;;  %v7430_v57 = vpop.f32.mrb[35].mxu1 }
 0x866   : > { %v7481_v12 = vmul.f32 0.1, %v7473_v42  ;;  %v7474_v58 = vadd.f32 %v8566_v11, %v7430_v57 }
 0x867   : > { %v7484_v50 = vmul.f32 0.1, %v7476_v9  ;;  %v7491_v45 = vmax.f32 %v7475_v49, %v7483_v0 }
 0x868   : > { %v7482_v40 = vmul.f32 0.1, %v7474_v58  ;;  %v7489_v47 = vmax.f32 %v7473_v42, %v7481_v12  ;;  %v11201_v12 = vmov 0  }
 0x869   : > { %v7492_v53 = vmax.f32 %v7476_v9, %v7484_v50  ;;  %v7690_v9 = vsub.s32 0, %v7689_v24 }
 0x86a   : > { %v7490_v46 = vmax.f32 %v7474_v58, %v7482_v40  ;;  %v10273_v7 = vpop.f32.mrb[36].mxu1  ;;  %v7687_v58 = vsel %vm7638_vm0, 1, %v11201_v12 }
 0x86b   : > { %v7498_v51 = vpack.c.bf16 %v7492_v53, %v7491_v45  ;;  %v7479_v61 = vadd.f32 %v10273_v7, %v8566_v11  ;;  %v7443_v56 = vpop.f32.mrb[37].mxu1  ;;  %v7691_v40 = vrot.slane %v7687_v58, %v7690_v9 }
 0x86c   : > { %v7477_v13 = vadd.f32 %v8566_v11, %v7443_v56  ;;  %v10274_v60 = vpop.f32.mrb[38].mxu1  ;;  %v7497_v62 = vpack.c.bf16 %v7490_v46, %v7489_v47 }
 0x86d   : > { %v7487_v19 = vmul.f32 0.1, %v7479_v61  ;;  %v7480_v2 = vadd.f32 %v10274_v60, %v8566_v11  ;;  %v7446_v27 = vpop.f32.mrb[39].mxu1  ;;  %vm7692_vm1 = vcmp.eq.s32.totalorder %v7691_v40, 1 }
 0x86e   : > { %v7485_v37 = vmul.f32 0.1, %v7477_v13  ;;  %v7478_v6 = vadd.f32 %v8566_v11, %v7446_v27  ;;  %10291 = vmatprep.mubr.bf16.mxu0 %v7497_v62 }
 0x86f   : > { %v7488_v30 = vmul.f32 0.1, %v7480_v2  ;;  %10292 = vmatmul.mubr.bf16.vlgmr.msra.gmra.mrb[80].mxu0 %v7498_v51  ;;  %v7495_v4 = vmax.f32 %v7479_v61, %v7487_v19 }
 0x870   : > { %v7486_v44 = vmul.f32 0.1, %v7478_v6  ;;  %v7493_v33 = vmax.f32 %v7477_v13, %v7485_v37 }
 0x871   : > { %v7496_v17 = vmax.f32 %v7480_v2, %v7488_v30 }
 0x872   : > { %v7494_v21 = vmax.f32 %v7478_v6, %v7486_v44 }
 0x873   : > { %v7500_v36 = vpack.c.bf16 %v7496_v17, %v7495_v4 }
 0x874   : > { %v7499_v39 = vpack.c.bf16 %v7494_v21, %v7493_v33 }
 0x876   : > { %10295 = vmatprep.mubr.bf16.mxu1 %v7499_v39 }
 0x877   : > { %10296 = vmatmul.mubr.bf16.vlgmr.msra.gmra.mrb[40].mxu1 %v7500_v36 }
 0x942   : > { %v10293_v43 = vpop.f32.mrb[80].mxu0 }
 0x943   : > { %v13029_v35 = vadd.f32 %v10293_v43, %v8567_v3  ;;  %v7606_v14 = vpop.f32.mrb[81].mxu0 }
 0x944   : > { %v13031_v52 = vadd.f32 %v8567_v3, %v7606_v14  ;;  %v10294_v29 = vpop.f32.mrb[82].mxu0 }
 0x945   : > { %v8578_v28 = vmul.f32 -1.442695, %v13029_v35  ;;  %v13034_v38 = vadd.f32 %v10294_v29, %v8567_v3  ;;  %v7609_v26 = vpop.f32.mrb[83].mxu0 }
 0x946   : > { %v8576_v55 = vmul.f32 -1.442695, %v13031_v52  ;;  %v13037_v5 = vadd.f32 %v8567_v3, %v7609_v26 }
 0x947   : > { %11158 = vpow2.f32 %v8578_v28  ;;  %v8579_v20 = vmul.f32 -1.442695, %v13034_v38 }
 0x948   : > { %11160 = vpow2.f32 %v8576_v55  ;;  %v8577_v63 = vmul.f32 -1.442695, %v13037_v5 }
 0x949   : > { %11162 = vpow2.f32 %v8579_v20 }
 0x94a   : > { %11164 = vpow2.f32 %v8577_v63  ;;  %v10297_v59 = vpop.f32.mrb[40].mxu1 }
 0x94b   : > { %v13041_v22 = vadd.f32 %v10297_v59, %v8567_v3  ;;  %v7622_v25 = vpop.f32.mrb[41].mxu1 }
 0x94c   : > { %v13043_v10 = vadd.f32 %v8567_v3, %v7622_v25  ;;  %v10298_v1 = vpop.f32.mrb[42].mxu1 }
 0x94d   : > { %v8582_v15 = vmul.f32 -1.442695, %v13041_v22  ;;  %v13046_v18 = vadd.f32 %v10298_v1, %v8567_v3  ;;  %v7625_v23 = vpop.f32.mrb[43].mxu1 }
 0x94e   : > { %v8580_v32 = vmul.f32 -1.442695, %v13043_v10  ;;  %v13049_v54 = vadd.f32 %v8567_v3, %v7625_v23 }
 0x94f   : > { %11166 = vpow2.f32 %v8582_v15  ;;  %v8583_v41 = vmul.f32 -1.442695, %v13046_v18 }
 0x950   : > { %11168 = vpow2.f32 %v8580_v32  ;;  %v8581_v11 = vmul.f32 -1.442695, %v13049_v54 }
 0x951   : > { %v11159_v31 = vpop.eup %11158  ;;  %11170 = vpow2.f32 %v8583_v41 }
 0x952   : > { %v11161_v49 = vpop.eup %11160  ;;  %v7665_v48 = vadd.f32 1.0, %v11159_v31  ;;  %11172 = vpow2.f32 %v8581_v11 }
 0x953   : > { %v11163_v42 = vpop.eup %11162  ;;  %v7663_v16 = vadd.f32 1.0, %v11161_v49 }
 0x954   : > { %v11165_v0 = vpop.eup %11164  ;;  %11174 = vrcp.f32 %v7665_v48  ;;  %v7666_v57 = vadd.f32 1.0, %v11163_v42 }
 0x955   : > { %11176 = vrcp.f32 %v7663_v16  ;;  %v7664_v50 = vadd.f32 1.0, %v11165_v0 }
 0x956   : > { %11178 = vrcp.f32 %v7666_v57 }
 0x957   : > { %11180 = vrcp.f32 %v7664_v50 }
 0x959   : > { %v11167_v45 = vpop.eup %11166 }
 0x95a   : > { %v11169_v53 = vpop.eup %11168  ;;  %v7669_v47 = vadd.f32 1.0, %v11167_v45 }
 0x95b   : > { %v11171_v46 = vpop.eup %11170  ;;  %v7667_v7 = vadd.f32 1.0, %v11169_v53 }
 0x95c   : > { %v11173_v51 = vpop.eup %11172  ;;  %11182 = vrcp.f32 %v7669_v47  ;;  %v7670_v61 = vadd.f32 1.0, %v11171_v46 }
 0x95d   : > { %11184 = vrcp.f32 %v7667_v7  ;;  %v7668_v56 = vadd.f32 1.0, %v11173_v51 }
 0x95e   : > { %v11175_v13 = vpop.eup %11174  ;;  %11186 = vrcp.f32 %v7670_v61 }
 0x95f   : > { %v11177_v60 = vpop.eup %11176  ;;  %v7695_v62 = vsel %vm7692_vm1, %v11175_v13, %v13029_v35  ;;  %11188 = vrcp.f32 %v7668_v56 }
 0x960   : > { %v11179_v19 = vpop.eup %11178  ;;  %7703 = vst [vmem:[%s386_s13 + $0x10] sm:$0xff] %v7695_v62  ;;  %v7693_v2 = vsel %vm7692_vm1, %v11177_v60, %v13031_v52 }
 0x961   : > { %v11181_v27 = vpop.eup %11180  ;;  %7701 = vst [vmem:[%s386_s13] sm:$0xff] %v7693_v2  ;;  %v7696_v37 = vsel %vm7692_vm1, %v11179_v19, %v13034_v38 }
 0x962   : > { %7704 = vst [vmem:[%s386_s13 + $0x18] sm:$0xff] %v7696_v37  ;;  %v7694_v6 = vsel %vm7692_vm1, %v11181_v27, %v13037_v5 }
 0x963   : > { %7702 = vst [vmem:[%s386_s13 + $0x8] sm:$0xff] %v7694_v6 }
 0x966   : > { %v11183_v30 = vpop.eup %11182 }
 0x967   : > { %v11185_v44 = vpop.eup %11184  ;;  %v7699_v4 = vsel %vm7692_vm1, %v11183_v30, %v13041_v22 }
 0x968   : > { %v11187_v17 = vpop.eup %11186  ;;  %7707 = vst [vmem:[%s386_s13 + $0x30] sm:$0xff] %v7699_v4  ;;  %v7697_v33 = vsel %vm7692_vm1, %v11185_v44, %v13043_v10 }
 0x969   : > { %v11189_v21 = vpop.eup %11188  ;;  %7705 = vst [vmem:[%s386_s13 + $0x20] sm:$0xff] %v7697_v33  ;;  %v7700_v36 = vsel %vm7692_vm1, %v11187_v17, %v13046_v18 }
 0x96a   : > { %7708 = vst [vmem:[%s386_s13 + $0x38] sm:$0xff] %v7700_v36  ;;  %v7698_v39 = vsel %vm7692_vm1, %v11189_v21, %v13049_v54 }
 0x96b   : > { %7706 = vst [vmem:[%s386_s13 + $0x28] sm:$0xff] %v7698_v39 }
 0x96c PF: > { %s21_s17 = sadd.s32 1, %s11198_s17  }
 0x96d   : > { %p18_p4 = scmp.ge.s32.totalorder %s21_s17, 4  }
 0x96f   :  { %20 = sbr.rel (!%p18_p4) target bundleno = 1 (0x1), region = 124 }

</bundles_post_ra>
